<compile_context>
chip_gen: v7x
topology: tpu7x:2x2x1
jax: 0.10.0
libtpu: 0.0.40
codegen_flags: <defaults>
</compile_context>

<pallas_src>
import functools
import math

import jax
import jax.numpy as jnp
from jax import lax
from jax.experimental import pallas as pl
from jax.experimental.pallas import tpu as pltpu


COMPUTE_DTYPE = jnp.bfloat16  # MXU operand dtype; accumulation stays f32.


# ----------------------------- in-kernel helpers -----------------------------

def _layer_norm(x, g, b, eps=1e-5):
    mu = jnp.mean(x, axis=-1, keepdims=True)
    d = x - mu
    var = jnp.mean(d * d, axis=-1, keepdims=True)
    return d * lax.rsqrt(var + eps) * g + b


def _gelu(x):
    # TODO(synk): torch.nn.GELU default is exact erf-GELU; tanh approximation used here.
    c = math.sqrt(2.0 / math.pi)
    return 0.5 * x * (1.0 + jnp.tanh(c * (x + 0.044715 * x * x * x)))


# --------------------------------- kernel ------------------------------------

def encoder_kernel(x_ref, posb_ref,
                   w_in_ref,
                   wqkv_ref, bqkv_ref,
                   wo_ref, bo_ref,
                   g1_ref, be1_ref,
                   w1_ref, b1_ref, w2_ref, b2_ref,
                   g2_ref, be2_ref,
                   o_ref, *, num_heads):
    x = x_ref[0].astype(COMPUTE_DTYPE)                       # (T, F)

    # Input projection (custom_src_module Linear). Positional encoding and the
    # input-projection bias are pre-folded host-side into posb_ref (T, D).
    h = jnp.dot(x, w_in_ref[...],
                preferred_element_type=jnp.float32) + posb_ref[...]   # (T, D) f32

    T, D = h.shape
    dh = D // num_heads

    h_lo = h.astype(COMPUTE_DTYPE)                            # reused bf16 copy

    # Fused QKV projection: one wide bf16 MXU matmul (q weights pre-scaled by
    # 1/sqrt(dh) host-side, so no extra scaling here).
    qkv = jnp.dot(h_lo, wqkv_ref[...],
                  preferred_element_type=jnp.float32) + bqkv_ref[...]  # (T, 3D) f32

    # Per-head attention. The output projection is folded into the head loop
    # (attn += ctx_h @ wo[h]) so there is no lane-dim concatenate, and scores
    # contract the last dims directly (no explicit K transpose). Head slices
    # are lane-aligned (dh multiple of 128).
    attn = jnp.zeros((T, D), jnp.float32)
    for hd in range(num_heads):
        q_lo = hd * dh
        k_lo = D + hd * dh
        v_lo = 2 * D + hd * dh
        qh = qkv[:, q_lo:q_lo + dh].astype(COMPUTE_DTYPE)    # (T, dh)
        kh = qkv[:, k_lo:k_lo + dh].astype(COMPUTE_DTYPE)    # (T, dh)
        vh = qkv[:, v_lo:v_lo + dh].astype(COMPUTE_DTYPE)    # (T, dh)

        s = lax.dot_general(qh, kh, (((1,), (1,)), ((), ())),
                            preferred_element_type=jnp.float32)        # (T, T)
        s = s - jnp.max(s, axis=-1, keepdims=True)
        p = jnp.exp(s)
        p = p * pl.reciprocal(jnp.sum(p, axis=-1, keepdims=True), approx=True)

        ctx = jnp.dot(p.astype(COMPUTE_DTYPE), vh,
                      preferred_element_type=jnp.float32)               # (T, dh)
        attn = attn + jnp.dot(ctx.astype(COMPUTE_DTYPE), wo_ref[hd],
                              preferred_element_type=jnp.float32)       # (T, D)
    attn = attn + bo_ref[...]

    # Residual + post-LayerNorm (f32 elementwise math).
    h1 = _layer_norm(h + attn, g1_ref[...], be1_ref[...])

    # Feed-forward: D -> d_ffn (GELU) -> D, bf16 MXU operands, f32 accumulate.
    ff = jnp.dot(h1.astype(COMPUTE_DTYPE), w1_ref[...],
                 preferred_element_type=jnp.float32) + b1_ref[...]
    ff = _gelu(ff)
    ff = jnp.dot(ff.astype(COMPUTE_DTYPE), w2_ref[...],
                 preferred_element_type=jnp.float32) + b2_ref[...]

    h2 = _layer_norm(h1 + ff, g2_ref[...], be2_ref[...])

    o_ref[0] = h2.astype(o_ref.dtype)


# ------------------------------ host-side glue --------------------------------

def sinusoidal_pe(T, D, dtype=jnp.float32):
    pos = jnp.arange(T, dtype=jnp.float32)[:, None]           # (T, 1)
    i = jnp.arange(0, D, 2, dtype=jnp.float32)[None, :]       # (1, D/2)
    inv = jnp.exp(-(jnp.log(10000.0)) * i / D)
    ang = pos * inv                                           # (T, D/2)
    pe = jnp.zeros((T, D), dtype=jnp.float32)
    pe = pe.at[:, 0::2].set(jnp.sin(ang))
    pe = pe.at[:, 1::2].set(jnp.cos(ang))
    return pe.astype(dtype)


def init_params(key, feat_in, d_model, d_ffn):
    ks = jax.random.split(key, 8)
    s = 0.02
    return {
        "w_in": s * jax.random.normal(ks[0], (feat_in, d_model), jnp.float32),
        "b_in": jnp.zeros((1, d_model), jnp.float32),
        "wq": s * jax.random.normal(ks[1], (d_model, d_model), jnp.float32),
        "bq": jnp.zeros((1, d_model), jnp.float32),
        "wk": s * jax.random.normal(ks[2], (d_model, d_model), jnp.float32),
        "bk": jnp.zeros((1, d_model), jnp.float32),
        "wv": s * jax.random.normal(ks[3], (d_model, d_model), jnp.float32),
        "bv": jnp.zeros((1, d_model), jnp.float32),
        "wo": s * jax.random.normal(ks[4], (d_model, d_model), jnp.float32),
        "bo": jnp.zeros((1, d_model), jnp.float32),
        "g1": jnp.ones((1, d_model), jnp.float32),
        "be1": jnp.zeros((1, d_model), jnp.float32),
        "w1": s * jax.random.normal(ks[5], (d_model, d_ffn), jnp.float32),
        "b1": jnp.zeros((1, d_ffn), jnp.float32),
        "w2": s * jax.random.normal(ks[6], (d_ffn, d_model), jnp.float32),
        "b2": jnp.zeros((1, d_model), jnp.float32),
        "g2": jnp.ones((1, d_model), jnp.float32),
        "be2": jnp.zeros((1, d_model), jnp.float32),
    }


def _full_spec(a):
    n = a.ndim
    return pl.BlockSpec(a.shape, lambda b, n=n: (0,) * n)


def encoder_wrapper_forward(x, params, num_heads):
    """EncoderWrapper.forward(x) -> transformer.encode(x).

    TODO(synk): wav_lens / src_key_padding_mask is not applied (mask-free path).
    """
    B, T, F = x.shape
    D = params["w_in"].shape[1]
    dh = D // num_heads
    scale = 1.0 / math.sqrt(dh)

    # Host-side operand preparation (cheap one-time XLA ops under jit).
    posb = sinusoidal_pe(T, D) + params["b_in"]                       # fold b_in into PE
    wqkv = jnp.concatenate([params["wq"] * scale, params["wk"], params["wv"]],
                           axis=1).astype(COMPUTE_DTYPE)              # (D, 3D), q pre-scaled
    bqkv = jnp.concatenate([params["bq"] * scale, params["bk"], params["bv"]],
                           axis=1)                                    # (1, 3D)
    wo_h = params["wo"].reshape(num_heads, dh, D).astype(COMPUTE_DTYPE)

    operands = [
        x, posb,
        params["w_in"].astype(COMPUTE_DTYPE),
        wqkv, bqkv,
        wo_h, params["bo"],
        params["g1"], params["be1"],
        params["w1"].astype(COMPUTE_DTYPE), params["b1"],
        params["w2"].astype(COMPUTE_DTYPE), params["b2"],
        params["g2"], params["be2"],
    ]

    in_specs = [pl.BlockSpec((1, T, F), lambda b: (b, 0, 0))] + \
               [_full_spec(a) for a in operands[1:]]

    out = pl.pallas_call(
        functools.partial(encoder_kernel, num_heads=num_heads),
        out_shape=jax.ShapeDtypeStruct((B, T, D), jnp.float32),
        grid_spec=pltpu.PrefetchScalarGridSpec(
            num_scalar_prefetch=0,
            grid=(B,),
            in_specs=in_specs,
            out_specs=pl.BlockSpec((1, T, D), lambda b: (b, 0, 0)),
        ),
        compiler_params=pltpu.CompilerParams(
            dimension_semantics=("parallel",)),
    )(*operands)
    return out


# ------------------------------ pure-JAX reference -----------------------------

def reference_forward(x, params, num_heads):
    B, T, F = x.shape
    D = params["w_in"].shape[1]
    dh = D // num_heads
    pos = sinusoidal_pe(T, D)

    def one(xb):
        h = xb @ params["w_in"] + params["b_in"][0] + pos
        q = h @ params["wq"] + params["bq"][0]
        k = h @ params["wk"] + params["bk"][0]
        v = h @ params["wv"] + params["bv"][0]
        heads = []
        for hd in range(num_heads):
            sl = slice(hd * dh, (hd + 1) * dh)
            s = (q[:, sl] @ k[:, sl].T) / math.sqrt(dh)
            p = jax.nn.softmax(s, axis=-1)
            heads.append(p @ v[:, sl])
        ctx = jnp.concatenate(heads, axis=-1)
        attn = ctx @ params["wo"] + params["bo"][0]
        h1 = _layer_norm(h + attn, params["g1"][0], params["be1"][0])
        ff = _gelu(h1 @ params["w1"] + params["b1"][0]) @ params["w2"] + params["b2"][0]
        return _layer_norm(h1 + ff, params["g2"][0], params["be2"][0])

    return jax.vmap(one)(x)


# ----------------------------------- main --------------------------------------

if __name__ == "__main__":
    # Small, lane-dense shapes consistent with the module (src: [B, T, feat]).
    # D, dh, d_ffn multiples of 128 so stores are unmasked and head slices are
    # lane-aligned; B=2 keeps the "parallel" grid axis even for v7x megacore.
    B, T, FEAT = 2, 128, 80
    D_MODEL, N_HEADS, D_FFN = 256, 2, 512

    key = jax.random.PRNGKey(0)
    k_x, k_p = jax.random.split(key)
    x = jax.random.normal(k_x, (B, T, FEAT), jnp.float32)
    params = init_params(k_p, FEAT, D_MODEL, D_FFN)

    fwd = jax.jit(encoder_wrapper_forward, static_argnums=2)
    out = fwd(x, params, N_HEADS)
    out = jax.block_until_ready(out)

    ref = reference_forward(x, params, N_HEADS)
    assert out.shape == (B, T, D_MODEL)
    assert bool(jnp.all(jnp.isfinite(out)))
    # bf16 MXU operands (f32 accumulation) + approx reciprocal vs. pure-f32 ref.
    assert jnp.allclose(out, ref, atol=2e-2, rtol=2e-2), "mismatch vs. reference"

    print("KERNEL_OK")
</pallas_src>

<mosaic_0001>
module attributes {stable_mosaic.version = 11 : i64} {
  func.func @encoder_kernel(%arg0: i32, %arg1: memref<1x128x80xf32, #tpu.memory_space<vmem>>, %arg2: memref<128x256xf32, #tpu.memory_space<vmem>>, %arg3: memref<80x256xbf16, #tpu.memory_space<vmem>>, %arg4: memref<256x768xbf16, #tpu.memory_space<vmem>>, %arg5: memref<1x768xf32, #tpu.memory_space<vmem>>, %arg6: memref<2x128x256xbf16, #tpu.memory_space<vmem>>, %arg7: memref<1x256xf32, #tpu.memory_space<vmem>>, %arg8: memref<1x256xf32, #tpu.memory_space<vmem>>, %arg9: memref<1x256xf32, #tpu.memory_space<vmem>>, %arg10: memref<256x512xbf16, #tpu.memory_space<vmem>>, %arg11: memref<1x512xf32, #tpu.memory_space<vmem>>, %arg12: memref<512x256xbf16, #tpu.memory_space<vmem>>, %arg13: memref<1x256xf32, #tpu.memory_space<vmem>>, %arg14: memref<1x256xf32, #tpu.memory_space<vmem>>, %arg15: memref<1x256xf32, #tpu.memory_space<vmem>>, %arg16: memref<1x128x256xf32, #tpu.memory_space<vmem>>) attributes {dimension_semantics = [#tpu.dimension_semantics<parallel>], iteration_bounds = array<i64: 2>, scalar_prefetch = 0 : i64, scratch_operands = 0 : i64, tpu.core_type = #tpu.core_type<tc>, window_params = [{transform_indices = @transform_0, window_bounds = array<i64: 1, 128, 80>}, {pipeline_mode = #tpu.pipeline_mode<synchronous>, transform_indices = @transform_1, window_bounds = array<i64: 128, 256>}, {pipeline_mode = #tpu.pipeline_mode<synchronous>, transform_indices = @transform_2, window_bounds = array<i64: 80, 256>}, {pipeline_mode = #tpu.pipeline_mode<synchronous>, transform_indices = @transform_3, window_bounds = array<i64: 256, 768>}, {pipeline_mode = #tpu.pipeline_mode<synchronous>, transform_indices = @transform_4, window_bounds = array<i64: 1, 768>}, {pipeline_mode = #tpu.pipeline_mode<synchronous>, transform_indices = @transform_5, window_bounds = array<i64: 2, 128, 256>}, {pipeline_mode = #tpu.pipeline_mode<synchronous>, transform_indices = @transform_6, window_bounds = array<i64: 1, 256>}, {pipeline_mode = #tpu.pipeline_mode<synchronous>, transform_indices = @transform_7, window_bounds = array<i64: 1, 256>}, {pipeline_mode = #tpu.pipeline_mode<synchronous>, transform_indices = @transform_8, window_bounds = array<i64: 1, 256>}, {pipeline_mode = #tpu.pipeline_mode<synchronous>, transform_indices = @transform_9, window_bounds = array<i64: 256, 512>}, {pipeline_mode = #tpu.pipeline_mode<synchronous>, transform_indices = @transform_10, window_bounds = array<i64: 1, 512>}, {pipeline_mode = #tpu.pipeline_mode<synchronous>, transform_indices = @transform_11, window_bounds = array<i64: 512, 256>}, {pipeline_mode = #tpu.pipeline_mode<synchronous>, transform_indices = @transform_12, window_bounds = array<i64: 1, 256>}, {pipeline_mode = #tpu.pipeline_mode<synchronous>, transform_indices = @transform_13, window_bounds = array<i64: 1, 256>}, {pipeline_mode = #tpu.pipeline_mode<synchronous>, transform_indices = @transform_14, window_bounds = array<i64: 1, 256>}, {transform_indices = @transform_15, window_bounds = array<i64: 1, 128, 256>}]} {
    %c0 = arith.constant 0 : index
    %c0_0 = arith.constant 0 : index
    %c0_1 = arith.constant 0 : index
    %0 = vector.load %arg1[%c0, %c0_0, %c0_1] : memref<1x128x80xf32, #tpu.memory_space<vmem>>, vector<1x128x80xf32>
    %1 = vector.shape_cast %0 : vector<1x128x80xf32> to vector<128x80xf32>
    %2 = arith.truncf %1 : vector<128x80xf32> to vector<128x80xbf16>
    %c0_2 = arith.constant 0 : index
    %c0_3 = arith.constant 0 : index
    %3 = vector.load %arg3[%c0_2, %c0_3] : memref<80x256xbf16, #tpu.memory_space<vmem>>, vector<80x256xbf16>
    %cst = arith.constant dense<0.000000e+00> : vector<128x256xf32>
    %4 = tpu.matmul %2, %3, %cst {dimension_numbers = #tpu.dot_dimension_numbers<[1], [0], [0], [1], [0, 0, 1, 1], [], []>} : vector<128x80xbf16>, vector<80x256xbf16>, vector<128x256xf32> -> vector<128x256xf32>
    %c0_4 = arith.constant 0 : index
    %c0_5 = arith.constant 0 : index
    %5 = vector.load %arg2[%c0_4, %c0_5] : memref<128x256xf32, #tpu.memory_space<vmem>>, vector<128x256xf32>
    %6 = arith.addf %4, %5 : vector<128x256xf32>
    %7 = arith.truncf %6 : vector<128x256xf32> to vector<128x256xbf16>
    %c0_6 = arith.constant 0 : index
    %c0_7 = arith.constant 0 : index
    %8 = vector.load %arg4[%c0_6, %c0_7] : memref<256x768xbf16, #tpu.memory_space<vmem>>, vector<256x768xbf16>
    %cst_8 = arith.constant dense<0.000000e+00> : vector<128x768xf32>
    %9 = tpu.matmul %7, %8, %cst_8 {dimension_numbers = #tpu.dot_dimension_numbers<[1], [0], [0], [1], [0, 0, 1, 1], [], []>} : vector<128x256xbf16>, vector<256x768xbf16>, vector<128x768xf32> -> vector<128x768xf32>
    %c0_9 = arith.constant 0 : index
    %c0_10 = arith.constant 0 : index
    %10 = vector.load %arg5[%c0_9, %c0_10] : memref<1x768xf32, #tpu.memory_space<vmem>>, vector<1x768xf32>
    %11 = vector.broadcast %10 : vector<1x768xf32> to vector<128x768xf32>
    %12 = arith.addf %9, %11 : vector<128x768xf32>
    %cst_11 = arith.constant 0.000000e+00 : f32
    %13 = vector.broadcast %cst_11 : f32 to vector<128x256xf32>
    %14 = vector.extract_strided_slice %12 {offsets = [0, 0], sizes = [128, 128], strides = [1, 1]} : vector<128x768xf32> to vector<128x128xf32>
    %15 = arith.truncf %14 : vector<128x128xf32> to vector<128x128xbf16>
    %16 = vector.extract_strided_slice %12 {offsets = [0, 256], sizes = [128, 128], strides = [1, 1]} : vector<128x768xf32> to vector<128x128xf32>
    %17 = arith.truncf %16 : vector<128x128xf32> to vector<128x128xbf16>
    %18 = vector.extract_strided_slice %12 {offsets = [0, 512], sizes = [128, 128], strides = [1, 1]} : vector<128x768xf32> to vector<128x128xf32>
    %19 = arith.truncf %18 : vector<128x128xf32> to vector<128x128xbf16>
    %cst_12 = arith.constant dense<0.000000e+00> : vector<128x128xf32>
    %20 = tpu.matmul %15, %17, %cst_12 {dimension_numbers = #tpu.dot_dimension_numbers<[1], [1], [0], [0], [0, 0, 1, 0], [], []>} : vector<128x128xbf16>, vector<128x128xbf16>, vector<128x128xf32> -> vector<128x128xf32>
    %cst_13 = arith.constant dense<0xFF800000> : vector<128xf32>
    %21 = vector.multi_reduction <maximumf>, %20, %cst_13 [1] : vector<128x128xf32> to vector<128xf32>
    %22 = vector.shape_cast %21 : vector<128xf32> to vector<128x1xf32>
    %23 = vector.broadcast %22 : vector<128x1xf32> to vector<128x128xf32>
    %24 = arith.subf %20, %23 : vector<128x128xf32>
    %25 = math.exp %24 : vector<128x128xf32>
    %cst_14 = arith.constant dense<0.000000e+00> : vector<128xf32>
    %26 = vector.multi_reduction <add>, %25, %cst_14 [1] : vector<128x128xf32> to vector<128xf32>
    %27 = vector.shape_cast %26 : vector<128xf32> to vector<128x1xf32>
    %28 = tpu.reciprocal %27 {approx = true} : vector<128x1xf32> -> vector<128x1xf32>
    %29 = vector.broadcast %28 : vector<128x1xf32> to vector<128x128xf32>
    %30 = arith.mulf %25, %29 : vector<128x128xf32>
    %31 = arith.truncf %30 : vector<128x128xf32> to vector<128x128xbf16>
    %cst_15 = arith.constant dense<0.000000e+00> : vector<128x128xf32>
    %32 = tpu.matmul %31, %19, %cst_15 {dimension_numbers = #tpu.dot_dimension_numbers<[1], [0], [0], [1], [0, 0, 1, 1], [], []>} : vector<128x128xbf16>, vector<128x128xbf16>, vector<128x128xf32> -> vector<128x128xf32>
    %33 = arith.truncf %32 : vector<128x128xf32> to vector<128x128xbf16>
    %c0_16 = arith.constant 0 : index
    %c0_17 = arith.constant 0 : index
    %c0_18 = arith.constant 0 : index
    %34 = vector.load %arg6[%c0_16, %c0_17, %c0_18] : memref<2x128x256xbf16, #tpu.memory_space<vmem>>, vector<1x128x256xbf16>
    %35 = vector.shape_cast %34 : vector<1x128x256xbf16> to vector<128x256xbf16>
    %cst_19 = arith.constant dense<0.000000e+00> : vector<128x256xf32>
    %36 = tpu.matmul %33, %35, %cst_19 {dimension_numbers = #tpu.dot_dimension_numbers<[1], [0], [0], [1], [0, 0, 1, 1], [], []>} : vector<128x128xbf16>, vector<128x256xbf16>, vector<128x256xf32> -> vector<128x256xf32>
    %37 = arith.addf %13, %36 : vector<128x256xf32>
    %38 = vector.extract_strided_slice %12 {offsets = [0, 128], sizes = [128, 128], strides = [1, 1]} : vector<128x768xf32> to vector<128x128xf32>
    %39 = arith.truncf %38 : vector<128x128xf32> to vector<128x128xbf16>
    %40 = vector.extract_strided_slice %12 {offsets = [0, 384], sizes = [128, 128], strides = [1, 1]} : vector<128x768xf32> to vector<128x128xf32>
    %41 = arith.truncf %40 : vector<128x128xf32> to vector<128x128xbf16>
    %42 = vector.extract_strided_slice %12 {offsets = [0, 640], sizes = [128, 128], strides = [1, 1]} : vector<128x768xf32> to vector<128x128xf32>
    %43 = arith.truncf %42 : vector<128x128xf32> to vector<128x128xbf16>
    %cst_20 = arith.constant dense<0.000000e+00> : vector<128x128xf32>
    %44 = tpu.matmul %39, %41, %cst_20 {dimension_numbers = #tpu.dot_dimension_numbers<[1], [1], [0], [0], [0, 0, 1, 0], [], []>} : vector<128x128xbf16>, vector<128x128xbf16>, vector<128x128xf32> -> vector<128x128xf32>
    %cst_21 = arith.constant dense<0xFF800000> : vector<128xf32>
    %45 = vector.multi_reduction <maximumf>, %44, %cst_21 [1] : vector<128x128xf32> to vector<128xf32>
    %46 = vector.shape_cast %45 : vector<128xf32> to vector<128x1xf32>
    %47 = vector.broadcast %46 : vector<128x1xf32> to vector<128x128xf32>
    %48 = arith.subf %44, %47 : vector<128x128xf32>
    %49 = math.exp %48 : vector<128x128xf32>
    %cst_22 = arith.constant dense<0.000000e+00> : vector<128xf32>
    %50 = vector.multi_reduction <add>, %49, %cst_22 [1] : vector<128x128xf32> to vector<128xf32>
    %51 = vector.shape_cast %50 : vector<128xf32> to vector<128x1xf32>
    %52 = tpu.reciprocal %51 {approx = true} : vector<128x1xf32> -> vector<128x1xf32>
    %53 = vector.broadcast %52 : vector<128x1xf32> to vector<128x128xf32>
    %54 = arith.mulf %49, %53 : vector<128x128xf32>
    %55 = arith.truncf %54 : vector<128x128xf32> to vector<128x128xbf16>
    %cst_23 = arith.constant dense<0.000000e+00> : vector<128x128xf32>
    %56 = tpu.matmul %55, %43, %cst_23 {dimension_numbers = #tpu.dot_dimension_numbers<[1], [0], [0], [1], [0, 0, 1, 1], [], []>} : vector<128x128xbf16>, vector<128x128xbf16>, vector<128x128xf32> -> vector<128x128xf32>
    %57 = arith.truncf %56 : vector<128x128xf32> to vector<128x128xbf16>
    %c1 = arith.constant 1 : index
    %c0_24 = arith.constant 0 : index
    %c0_25 = arith.constant 0 : index
    %58 = vector.load %arg6[%c1, %c0_24, %c0_25] : memref<2x128x256xbf16, #tpu.memory_space<vmem>>, vector<1x128x256xbf16>
    %59 = vector.shape_cast %58 : vector<1x128x256xbf16> to vector<128x256xbf16>
    %cst_26 = arith.constant dense<0.000000e+00> : vector<128x256xf32>
    %60 = tpu.matmul %57, %59, %cst_26 {dimension_numbers = #tpu.dot_dimension_numbers<[1], [0], [0], [1], [0, 0, 1, 1], [], []>} : vector<128x128xbf16>, vector<128x256xbf16>, vector<128x256xf32> -> vector<128x256xf32>
    %61 = arith.addf %37, %60 : vector<128x256xf32>
    %c0_27 = arith.constant 0 : index
    %c0_28 = arith.constant 0 : index
    %62 = vector.load %arg7[%c0_27, %c0_28] : memref<1x256xf32, #tpu.memory_space<vmem>>, vector<1x256xf32>
    %63 = vector.broadcast %62 : vector<1x256xf32> to vector<128x256xf32>
    %64 = arith.addf %61, %63 : vector<128x256xf32>
    %65 = arith.addf %6, %64 : vector<128x256xf32>
    %c0_29 = arith.constant 0 : index
    %c0_30 = arith.constant 0 : index
    %66 = vector.load %arg8[%c0_29, %c0_30] : memref<1x256xf32, #tpu.memory_space<vmem>>, vector<1x256xf32>
    %c0_31 = arith.constant 0 : index
    %c0_32 = arith.constant 0 : index
    %67 = vector.load %arg9[%c0_31, %c0_32] : memref<1x256xf32, #tpu.memory_space<vmem>>, vector<1x256xf32>
    %cst_33 = arith.constant dense<0.000000e+00> : vector<128xf32>
    %68 = vector.multi_reduction <add>, %65, %cst_33 [1] : vector<128x256xf32> to vector<128xf32>
    %69 = vector.shape_cast %68 : vector<128xf32> to vector<128x1xf32>
    %cst_34 = arith.constant 2.560000e+02 : f32
    %70 = vector.broadcast %cst_34 : f32 to vector<128x1xf32>
    %71 = arith.divf %69, %70 : vector<128x1xf32>
    %72 = vector.broadcast %71 : vector<128x1xf32> to vector<128x256xf32>
    %73 = arith.subf %65, %72 : vector<128x256xf32>
    %74 = arith.mulf %73, %73 : vector<128x256xf32>
    %cst_35 = arith.constant dense<0.000000e+00> : vector<128xf32>
    %75 = vector.multi_reduction <add>, %74, %cst_35 [1] : vector<128x256xf32> to vector<128xf32>
    %76 = vector.shape_cast %75 : vector<128xf32> to vector<128x1xf32>
    %cst_36 = arith.constant 2.560000e+02 : f32
    %77 = vector.broadcast %cst_36 : f32 to vector<128x1xf32>
    %78 = arith.divf %76, %77 : vector<128x1xf32>
    %cst_37 = arith.constant 9.99999974E-6 : f32
    %79 = vector.broadcast %cst_37 : f32 to vector<128x1xf32>
    %80 = arith.addf %78, %79 : vector<128x1xf32>
    %81 = math.rsqrt %80 : vector<128x1xf32>
    %82 = vector.broadcast %81 : vector<128x1xf32> to vector<128x256xf32>
    %83 = arith.mulf %73, %82 : vector<128x256xf32>
    %84 = vector.broadcast %66 : vector<1x256xf32> to vector<128x256xf32>
    %85 = arith.mulf %83, %84 : vector<128x256xf32>
    %86 = vector.broadcast %67 : vector<1x256xf32> to vector<128x256xf32>
    %87 = arith.addf %85, %86 : vector<128x256xf32>
    %88 = arith.truncf %87 : vector<128x256xf32> to vector<128x256xbf16>
    %c0_38 = arith.constant 0 : index
    %c0_39 = arith.constant 0 : index
    %89 = vector.load %arg10[%c0_38, %c0_39] : memref<256x512xbf16, #tpu.memory_space<vmem>>, vector<256x512xbf16>
    %cst_40 = arith.constant dense<0.000000e+00> : vector<128x512xf32>
    %90 = tpu.matmul %88, %89, %cst_40 {dimension_numbers = #tpu.dot_dimension_numbers<[1], [0], [0], [1], [0, 0, 1, 1], [], []>} : vector<128x256xbf16>, vector<256x512xbf16>, vector<128x512xf32> -> vector<128x512xf32>
    %c0_41 = arith.constant 0 : index
    %c0_42 = arith.constant 0 : index
    %91 = vector.load %arg11[%c0_41, %c0_42] : memref<1x512xf32, #tpu.memory_space<vmem>>, vector<1x512xf32>
    %92 = vector.broadcast %91 : vector<1x512xf32> to vector<128x512xf32>
    %93 = arith.addf %90, %92 : vector<128x512xf32>
    %cst_43 = arith.constant 5.000000e-01 : f32
    %94 = vector.broadcast %cst_43 : f32 to vector<128x512xf32>
    %95 = arith.mulf %94, %93 : vector<128x512xf32>
    %cst_44 = arith.constant 4.471500e-02 : f32
    %96 = vector.broadcast %cst_44 : f32 to vector<128x512xf32>
    %97 = arith.mulf %96, %93 : vector<128x512xf32>
    %98 = arith.mulf %97, %93 : vector<128x512xf32>
    %99 = arith.mulf %98, %93 : vector<128x512xf32>
    %100 = arith.addf %93, %99 : vector<128x512xf32>
    %cst_45 = arith.constant 0.797884583 : f32
    %101 = vector.broadcast %cst_45 : f32 to vector<128x512xf32>
    %102 = arith.mulf %101, %100 : vector<128x512xf32>
    %103 = math.tanh %102 : vector<128x512xf32>
    %cst_46 = arith.constant 1.000000e+00 : f32
    %104 = vector.broadcast %cst_46 : f32 to vector<128x512xf32>
    %105 = arith.addf %104, %103 : vector<128x512xf32>
    %106 = arith.mulf %95, %105 : vector<128x512xf32>
    %107 = arith.truncf %106 : vector<128x512xf32> to vector<128x512xbf16>
    %c0_47 = arith.constant 0 : index
    %c0_48 = arith.constant 0 : index
    %108 = vector.load %arg12[%c0_47, %c0_48] : memref<512x256xbf16, #tpu.memory_space<vmem>>, vector<512x256xbf16>
    %cst_49 = arith.constant dense<0.000000e+00> : vector<128x256xf32>
    %109 = tpu.matmul %107, %108, %cst_49 {dimension_numbers = #tpu.dot_dimension_numbers<[1], [0], [0], [1], [0, 0, 1, 1], [], []>} : vector<128x512xbf16>, vector<512x256xbf16>, vector<128x256xf32> -> vector<128x256xf32>
    %c0_50 = arith.constant 0 : index
    %c0_51 = arith.constant 0 : index
    %110 = vector.load %arg13[%c0_50, %c0_51] : memref<1x256xf32, #tpu.memory_space<vmem>>, vector<1x256xf32>
    %111 = vector.broadcast %110 : vector<1x256xf32> to vector<128x256xf32>
    %112 = arith.addf %109, %111 : vector<128x256xf32>
    %113 = arith.addf %87, %112 : vector<128x256xf32>
    %c0_52 = arith.constant 0 : index
    %c0_53 = arith.constant 0 : index
    %114 = vector.load %arg14[%c0_52, %c0_53] : memref<1x256xf32, #tpu.memory_space<vmem>>, vector<1x256xf32>
    %c0_54 = arith.constant 0 : index
    %c0_55 = arith.constant 0 : index
    %115 = vector.load %arg15[%c0_54, %c0_55] : memref<1x256xf32, #tpu.memory_space<vmem>>, vector<1x256xf32>
    %cst_56 = arith.constant dense<0.000000e+00> : vector<128xf32>
    %116 = vector.multi_reduction <add>, %113, %cst_56 [1] : vector<128x256xf32> to vector<128xf32>
    %117 = vector.shape_cast %116 : vector<128xf32> to vector<128x1xf32>
    %cst_57 = arith.constant 2.560000e+02 : f32
    %118 = vector.broadcast %cst_57 : f32 to vector<128x1xf32>
    %119 = arith.divf %117, %118 : vector<128x1xf32>
    %120 = vector.broadcast %119 : vector<128x1xf32> to vector<128x256xf32>
    %121 = arith.subf %113, %120 : vector<128x256xf32>
    %122 = arith.mulf %121, %121 : vector<128x256xf32>
    %cst_58 = arith.constant dense<0.000000e+00> : vector<128xf32>
    %123 = vector.multi_reduction <add>, %122, %cst_58 [1] : vector<128x256xf32> to vector<128xf32>
    %124 = vector.shape_cast %123 : vector<128xf32> to vector<128x1xf32>
    %cst_59 = arith.constant 2.560000e+02 : f32
    %125 = vector.broadcast %cst_59 : f32 to vector<128x1xf32>
    %126 = arith.divf %124, %125 : vector<128x1xf32>
    %cst_60 = arith.constant 9.99999974E-6 : f32
    %127 = vector.broadcast %cst_60 : f32 to vector<128x1xf32>
    %128 = arith.addf %126, %127 : vector<128x1xf32>
    %129 = math.rsqrt %128 : vector<128x1xf32>
    %130 = vector.broadcast %129 : vector<128x1xf32> to vector<128x256xf32>
    %131 = arith.mulf %121, %130 : vector<128x256xf32>
    %132 = vector.broadcast %114 : vector<1x256xf32> to vector<128x256xf32>
    %133 = arith.mulf %131, %132 : vector<128x256xf32>
    %134 = vector.broadcast %115 : vector<1x256xf32> to vector<128x256xf32>
    %135 = arith.addf %133, %134 : vector<128x256xf32>
    %c0_61 = arith.constant 0 : index
    %c0_62 = arith.constant 0 : index
    %c0_63 = arith.constant 0 : index
    %136 = vector.load %arg16[%c0_61, %c0_62, %c0_63] : memref<1x128x256xf32, #tpu.memory_space<vmem>>, vector<1x128x256xf32>
    %137 = vector.shape_cast %136 : vector<1x128x256xf32> to vector<128x256xf32>
    %138 = vector.shape_cast %135 : vector<128x256xf32> to vector<1x128x256xf32>
    tpu.vector_store %arg16[%c0_61, %c0_62, %c0_63], %138 {strides = array<i32>} : memref<1x128x256xf32, #tpu.memory_space<vmem>>, vector<1x128x256xf32>,
    return
  }
  func.func @transform_0(%arg0: i32) -> (i32, i32, i32) {
    %c0_i32 = arith.constant 0 : i32
    %c0_i32_0 = arith.constant 0 : i32
    %c0_i32_1 = arith.constant 0 : i32
    return %arg0, %c0_i32, %c0_i32_0 : i32, i32, i32
  }
  func.func @transform_1(%arg0: i32) -> (i32, i32) {
    %c0_i32 = arith.constant 0 : i32
    %c0_i32_0 = arith.constant 0 : i32
    %c0_i32_1 = arith.constant 0 : i32
    return %c0_i32, %c0_i32_0 : i32, i32
  }
  func.func @transform_2(%arg0: i32) -> (i32, i32) {
    %c0_i32 = arith.constant 0 : i32
    %c0_i32_0 = arith.constant 0 : i32
    %c0_i32_1 = arith.constant 0 : i32
    return %c0_i32, %c0_i32_0 : i32, i32
  }
  func.func @transform_3(%arg0: i32) -> (i32, i32) {
    %c0_i32 = arith.constant 0 : i32
    %c0_i32_0 = arith.constant 0 : i32
    %c0_i32_1 = arith.constant 0 : i32
    return %c0_i32, %c0_i32_0 : i32, i32
  }
  func.func @transform_4(%arg0: i32) -> (i32, i32) {
    %c0_i32 = arith.constant 0 : i32
    %c0_i32_0 = arith.constant 0 : i32
    %c0_i32_1 = arith.constant 0 : i32
    return %c0_i32, %c0_i32_0 : i32, i32
  }
  func.func @transform_5(%arg0: i32) -> (i32, i32, i32) {
    %c0_i32 = arith.constant 0 : i32
    %c0_i32_0 = arith.constant 0 : i32
    %c0_i32_1 = arith.constant 0 : i32
    %c0_i32_2 = arith.constant 0 : i32
    return %c0_i32, %c0_i32_0, %c0_i32_1 : i32, i32, i32
  }
  func.func @transform_6(%arg0: i32) -> (i32, i32) {
    %c0_i32 = arith.constant 0 : i32
    %c0_i32_0 = arith.constant 0 : i32
    %c0_i32_1 = arith.constant 0 : i32
    return %c0_i32, %c0_i32_0 : i32, i32
  }
  func.func @transform_7(%arg0: i32) -> (i32, i32) {
    %c0_i32 = arith.constant 0 : i32
    %c0_i32_0 = arith.constant 0 : i32
    %c0_i32_1 = arith.constant 0 : i32
    return %c0_i32, %c0_i32_0 : i32, i32
  }
  func.func @transform_8(%arg0: i32) -> (i32, i32) {
    %c0_i32 = arith.constant 0 : i32
    %c0_i32_0 = arith.constant 0 : i32
    %c0_i32_1 = arith.constant 0 : i32
    return %c0_i32, %c0_i32_0 : i32, i32
  }
  func.func @transform_9(%arg0: i32) -> (i32, i32) {
    %c0_i32 = arith.constant 0 : i32
    %c0_i32_0 = arith.constant 0 : i32
    %c0_i32_1 = arith.constant 0 : i32
    return %c0_i32, %c0_i32_0 : i32, i32
  }
  func.func @transform_10(%arg0: i32) -> (i32, i32) {
    %c0_i32 = arith.constant 0 : i32
    %c0_i32_0 = arith.constant 0 : i32
    %c0_i32_1 = arith.constant 0 : i32
    return %c0_i32, %c0_i32_0 : i32, i32
  }
  func.func @transform_11(%arg0: i32) -> (i32, i32) {
    %c0_i32 = arith.constant 0 : i32
    %c0_i32_0 = arith.constant 0 : i32
    %c0_i32_1 = arith.constant 0 : i32
    return %c0_i32, %c0_i32_0 : i32, i32
  }
  func.func @transform_12(%arg0: i32) -> (i32, i32) {
    %c0_i32 = arith.constant 0 : i32
    %c0_i32_0 = arith.constant 0 : i32
    %c0_i32_1 = arith.constant 0 : i32
    return %c0_i32, %c0_i32_0 : i32, i32
  }
  func.func @transform_13(%arg0: i32) -> (i32, i32) {
    %c0_i32 = arith.constant 0 : i32
    %c0_i32_0 = arith.constant 0 : i32
    %c0_i32_1 = arith.constant 0 : i32
    return %c0_i32, %c0_i32_0 : i32, i32
  }
  func.func @transform_14(%arg0: i32) -> (i32, i32) {
    %c0_i32 = arith.constant 0 : i32
    %c0_i32_0 = arith.constant 0 : i32
    %c0_i32_1 = arith.constant 0 : i32
    return %c0_i32, %c0_i32_0 : i32, i32
  }
  func.func @transform_15(%arg0: i32) -> (i32, i32, i32) {
    %c0_i32 = arith.constant 0 : i32
    %c0_i32_0 = arith.constant 0 : i32
    %c0_i32_1 = arith.constant 0 : i32
    return %arg0, %c0_i32, %c0_i32_0 : i32, i32, i32
  }
}

</mosaic_0001>

<bundles_post_ra>
// kernel: encoder_wrapper_forward.1
= control target key start
LH: loop header
LB: loop body
LE: loop exit
PB: predicated region body
PF: predicated region fallthrough
CT: control target
= control target key end

     0   :  { %20 = vsyncpa [#allocation3], 0  ;;  %s10780_s0 = inlined_call_operand.vmem [shape: f32[2,128,80], index: 0, kind: input, shape index: {}]   ;;  %s10781_s1 = inlined_call_operand.vmem [shape: f32[128,256], index: 1, kind: input, shape index: {}]   ;;  %s10782_s2 = inlined_call_operand.vmem [shape: bf16[80,256], index: 2, kind: input, shape index: {}]   ;;  %s10783_s3 = inlined_call_operand.vmem [shape: bf16[256,768], index: 3, kind: input, shape index: {}]   ;;  %s10784_s4 = inlined_call_operand.vmem [shape: f32[1,768], index: 4, kind: input, shape index: {}]   ;;  %s10785_s5 = inlined_call_operand.vmem [shape: bf16[2,128,256], index: 5, kind: input, shape index: {}]   ;;  %s10786_s6 = inlined_call_operand.vmem [shape: f32[1,256], index: 6, kind: input, shape index: {}]   ;;  %s10787_s7 = inlined_call_operand.vmem [shape: f32[1,256], index: 7, kind: input, shape index: {}]   ;;  %s10788_s8 = inlined_call_operand.vmem [shape: f32[1,256], index: 8, kind: input, shape index: {}]   ;;  %s10789_s9 = inlined_call_operand.vmem [shape: bf16[256,512], index: 9, kind: input, shape index: {}]   ;;  %s10790_s10 = inlined_call_operand.vmem [shape: f32[1,512], index: 10, kind: input, shape index: {}]   ;;  %s10791_s11 = inlined_call_operand.vmem [shape: bf16[512,256], index: 11, kind: input, shape index: {}]   ;;  %s10792_s12 = inlined_call_operand.vmem [shape: f32[1,256], index: 12, kind: input, shape index: {}]   ;;  %s10793_s13 = inlined_call_operand.vmem [shape: f32[1,256], index: 13, kind: input, shape index: {}]   ;;  %s10794_s14 = inlined_call_operand.vmem [shape: f32[1,256], index: 14, kind: input, shape index: {}]   ;;  %s10795_s15 = inlined_call_operand.hbm [shape: f32[2,128,256], index: 15, kind: output, shape index: {}]  }
   0x1   :  { %22 = vsyncpa [#allocation3 + $0x1], 0  ;;  %s7170_s18 = smov 0   ;;  %s7172_s19 = smov 0  }
   0x2   :  { %s7174_s20 = smov 0   ;;  %s7176_s21 = smov 0  }
   0x3 LB: > { %10868 = sst [smem:[#allocation5_spill]] %s7072_s18  ;;  %s7191_s22 = sadd.s32 4294967295, %s7084_s21   ;;  %s7084_s21 = sphi %s7176_s21, %s11016_s21   ;;  %s7080_s20 = sphi %s7174_s20, %s11021_s20   ;;  %s7076_s19 = sphi %s7172_s19, %s11020_s19   ;;  %s7072_s18 = sphi %s7170_s18, %s11019_s18  }
   0x4   : > { %10869 = sst [smem:[#allocation6_spill]] %s7080_s20  ;;  %s5669_s23 = sadd.s32 4294967294, %s7084_s21  }
   0x5   : > { %s7195_s24 = sadd.s32 1, %s7084_s21   ;;  %s355_s25 = sadd.s32 1, %s7080_s20 }
   0x6   : > { %10870 = sst [smem:[#allocation7_spill]] %s7195_s24  ;;  %s352_s26 = ssub.s32 %s7084_s21, %s7195_s24 }
   0x7   : > { %p365_p0 = scmp.ne.s32.totalorder %s7080_s20, %s7076_s19  ;;  %p353_p1 = scmp.eq.s32.totalorder %s352_s26, 0 }
   0x8   : > { %p366_p2 = scmp.eq.s32.totalorder %s7191_s22, 1  ;;  %p371_p3 = scmp.ne.s32.totalorder %s7076_s19, %s7072_s18 }
   0x9   : > { %p372_p4 = scmp.eq.s32.totalorder %s5669_s23, 1  ;;  %p5672_p7 = scmp.ge.s32.totalorder %s7084_s21, 1 }
   0xa   : > { %s7206_s27 = scalar_select %p353_p1, %s7080_s20, %s355_s25  }
   0xb   : > { %p7208_p5 = por %p366_p2, %p365_p0  ;;  %p7212_p6 = por %p372_p4, %p371_p3 }
   0xc   : > { %10871 = sst [smem:[#allocation8_spill]] %s7206_s27  ;;  %p440_p8 = scmp.lt.s32.totalorder %s7084_s21, 3 }
   0xd   : > { %s10873_s29 = scalar_select %p7212_p6, 1, 0 }
   0xe   : > { %p441_p9 = pnand %p5672_p7, %p440_p8 }
   0xf   : > { %10874 = sst [smem:[#allocation9_spill]] %s10873_s29 }
  0x10   : > { %444 = sbr.rel (%p441_p9) target bundleno = 2821 (0xb05), region = 80 }
  0x17   : > { %v6303_v0 = vld [vmem:[%s10782_s2 + $0x4] ss:$8 sps:$4 sm:$0xff]   ;;  %p488_p10 = scmp.lt.s32.totalorder %s7191_s22, 1  ;;  %v6305_v1 = vld [vmem:[%s10782_s2] ss:$8 sps:$4 sm:$0xff]   ;;  %v10803_v2 = vmov 0  }
  0x18   : > { %667 = vmatprep.mubr.bf16.mxu0 %v10803_v2  ;;  %635 = vmatprep.subr.bf16.mxu0 %v6303_v0  ;;  %v6306_v3 = vld [vmem:[%s10782_s2 + $0x14] ss:$8 sps:$4 sm:$0xff]   ;;  %v6308_v4 = vld [vmem:[%s10782_s2 + $0x10] ss:$8 sps:$4 sm:$0xff]   ;;  %v6309_v5 = vld [vmem:[%s10782_s2 + $0x24] ss:$8 sps:$4 sm:$0xff]  }
  0x19   : > { %636 = vmatpush1.bf16.msra.mxu0 %v6305_v1  ;;  %s489_s30 = scalar_select %p488_p10, %s7191_s22, 1  ;;  %v6311_v6 = vld [vmem:[%s10782_s2 + $0x20] ss:$8 sps:$4 sm:$0xff]   ;;  %v6312_v7 = vld [vmem:[%s10782_s2 + $0x34] ss:$8 sps:$4 sm:$0xff]   ;;  %vm610_vm0 = vcmask 654336  }
  0x1a   : > { %637 = vmatprep.subr.bf16.mxu0 %v6306_v3  ;;  %v6314_v8 = vld [vmem:[%s10782_s2 + $0x30] ss:$8 sps:$4 sm:$0xff]   ;;  %v6315_v9 = vld [vmem:[%s10782_s2 + $0x44] ss:$8 sps:$4 sm:$0xff]   ;;  %v6317_v11 = vld [vmem:[%s10782_s2 + $0x40] ss:$8 sps:$4 sm:$0xff]  }
  0x1b   : > { %s5971_s29 = sshll.u32 %s489_s30, 7  ;;  %v6318_v10 = vld [vmem:[%s10783_s3 + $0x4] ss:$24 sps:$4 sm:$0xff]   ;;  %v6323_v14 = vld [vmem:[%s10783_s3] ss:$24 sps:$4 sm:$0xff]   ;;  %s485_s30 = sand.u32 1, %s7076_s19  }
  0x1c   : > { %s7245_s27 = scalar_lea.vmem %s10780_s0, %s5971_s29  ;;  %1372 = vmatprep.subr.bf16.mxu1 %v6318_v10  ;;  %v6324_v15 = vld [vmem:[%s10783_s3 + $0x34] ss:$24 sps:$4 sm:$0xff]   ;;  %v6329_v17 = vld [vmem:[%s10783_s3 + $0x30] ss:$24 sps:$4 sm:$0xff]   ;;  %v6330_v19 = vld [vmem:[%s10783_s3 + $0x64] ss:$24 sps:$4 sm:$0xff]  }
  0x1d   : > { %638 = vmatpush1.bf16.msra.mxu0 %v6308_v4  ;;  %v494_v12 = vld [vmem:[%s7245_s27] sm:$0xff]  ;;  %v495_v13 = vld [vmem:[%s7245_s27 + $0x8] sm:$0xff]  ;;  %1373 = vmatpush1.bf16.msra.mxu1 %v6323_v14  ;;  %v6328_v21 = vld [vmem:[%s10783_s3 + $0x3c] ss:$24 sps:$4 sm:$0xff]   ;;  %s5673_s25 = sshll.u32 %s485_s30, 8  ;;  %s5972_s18 = sshll.u32 %s7191_s22, 12 }
  0x1e   : > { %639 = vmatprep.subr.bf16.mxu0 %v6309_v5  ;;  %v6322_v16 = vld [vmem:[%s10783_s3 + $0xc] ss:$24 sps:$4 sm:$0xff]   ;;  %1374 = vmatprep.subr.bf16.mxu1 %v6324_v15  ;;  %v510_v18 = vpack.c.bf16 %v495_v13, %v494_v12  ;;  %v6320_v20 = vld [vmem:[%s10783_s3 + $0x8] ss:$24 sps:$4 sm:$0xff]   ;;  %v496_v24 = vld [vmem:[%s7245_s27 + $0x10] sm:$0xff]  ;;  %s10608_s26 = scalar_lea.vmem [#allocation2], %s5673_s25 }
  0x1f   : > { %v6335_v22 = vld [vmem:[%s10783_s3 + $0x60] ss:$24 sps:$4 sm:$0xff]   ;;  %v6336_v23 = vld [vmem:[%s10783_s3 + $0x94] ss:$24 sps:$4 sm:$0xff]   ;;  %v6341_v28 = vld [vmem:[%s10783_s3 + $0x90] ss:$24 sps:$4 sm:$0xff]  }
  0x20   : > { %v497_v25 = vld [vmem:[%s7245_s27 + $0x18] sm:$0xff]  ;;  %v6334_v27 = vld [vmem:[%s10783_s3 + $0x6c] ss:$24 sps:$4 sm:$0xff]   ;;  %v6332_v31 = vld [vmem:[%s10783_s3 + $0x68] ss:$24 sps:$4 sm:$0xff]   ;;  %s5607_s29 = sshll.u32 %s10608_s26, 4  ;;  %s10729_s29 = int_to_ptr.vmem [resolvable:$true] %s5607_s29 }
  0x21   : > { %640 = vmatpush1.bf16.msra.mxu0 %v6311_v6  ;;  %1375 = vmatpush1.bf16.msra.mxu1 %v6329_v17  ;;  %v6326_v26 = vld [vmem:[%s10783_s3 + $0x38] ss:$24 sps:$4 sm:$0xff]   ;;  %v6342_v29 = vld [vmem:[%s10783_s3 + $0xc4] ss:$24 sps:$4 sm:$0xff]   ;;  %v511_v30 = vpack.c.bf16 %v497_v25, %v496_v24  ;;  %v6348_v34 = vld [vmem:[%s10783_s3 + $0xf4] ss:$24 sps:$4 sm:$0xff]  }
  0x22   : > { %641 = vmatprep.subr.bf16.mxu0 %v6312_v7  ;;  %1376 = vmatprep.subr.bf16.mxu1 %v6330_v19  ;;  %v6340_v32 = vld [vmem:[%s10783_s3 + $0x9c] ss:$24 sps:$4 sm:$0xff]   ;;  %v6347_v33 = vld [vmem:[%s10783_s3 + $0xc0] ss:$24 sps:$4 sm:$0xff]   ;;  %v499_v36 = vld [vmem:[%s7245_s27 + $0x28] sm:$0xff]  ;;  %s10739_s22 = scalar_lea.sflag [#allocation3], %s485_s30 }
  0x23   : > { %v498_v35 = vld [vmem:[%s7245_s27 + $0x20] sm:$0xff]  ;;  %v6338_v37 = vld [vmem:[%s10783_s3 + $0x98] ss:$24 sps:$4 sm:$0xff]   ;;  %v6352_v43 = vld [vmem:[%s10783_s3 + $0xfc] ss:$24 sps:$4 sm:$0xff]   ;;  %s7022_s16 = scalar_lea.vmem %s10729_s29, 4096 }
  0x24   : > { %v6346_v38 = vld [vmem:[%s10783_s3 + $0xcc] ss:$24 sps:$4 sm:$0xff]   ;;  %v6353_v39 = vld [vmem:[%s10783_s3 + $0xf0] ss:$24 sps:$4 sm:$0xff]   ;;  %v512_v41 = vpack.c.bf16 %v499_v36, %v498_v35  ;;  %v6359_v44 = vld [vmem:[%s10783_s3 + $0x120] ss:$24 sps:$4 sm:$0xff]   ;;  %p7023_p11 = scmp.ne.s32.totalorder %s10729_s29, %s7022_s16 }
  0x25   : > { %642 = vmatpush1.bf16.msra.mxu0 %v6314_v8  ;;  %1377 = vmatpush1.bf16.msra.mxu1 %v6335_v22  ;;  %v6354_v40 = vld [vmem:[%s10783_s3 + $0x124] ss:$24 sps:$4 sm:$0xff]   ;;  %v6344_v42 = vld [vmem:[%s10783_s3 + $0xc8] ss:$24 sps:$4 sm:$0xff]   ;;  %v6360_v45 = vld [vmem:[%s10783_s3 + $0x154] ss:$24 sps:$4 sm:$0xff]  }
  0x26   : > { %643 = vmatprep.subr.bf16.mxu0 %v6315_v9  ;;  %1378 = vmatprep.subr.bf16.mxu1 %v6336_v23  ;;  %v500_v46 = vld [vmem:[%s7245_s27 + $0x30] sm:$0xff]  ;;  %v501_v47 = vld [vmem:[%s7245_s27 + $0x38] sm:$0xff]  ;;  %v6358_v49 = vld [vmem:[%s10783_s3 + $0x12c] ss:$24 sps:$4 sm:$0xff]   ;;  %p7024_p12 = pnand %p7023_p11, %p7208_p5  ;;  %s7087_s17 = smov [#allocation2]  }
  0x27   : > { %v6350_v48 = vld [vmem:[%s10783_s3 + $0xf8] ss:$24 sps:$4 sm:$0xff]   ;;  %v6366_v51 = vld [vmem:[%s10783_s3 + $0x184] ss:$24 sps:$4 sm:$0xff]   ;;  %v513_v52 = vpack.c.bf16 %v501_v47, %v500_v46  ;;  %v6356_v53 = vld [vmem:[%s10783_s3 + $0x128] ss:$24 sps:$4 sm:$0xff]  }
  0x28   : > { %v6365_v50 = vld [vmem:[%s10783_s3 + $0x150] ss:$24 sps:$4 sm:$0xff]   ;;  %v6364_v54 = vld [vmem:[%s10783_s3 + $0x15c] ss:$24 sps:$4 sm:$0xff]   ;;  %v6371_v55 = vld [vmem:[%s10783_s3 + $0x180] ss:$24 sps:$4 sm:$0xff]   ;;  %p7025_p13 = pneg %p7024_p12 }
  0x29   : > { %644 = vmatpush1.bf16.msra.mxu0 %v6317_v11  ;;  %1379 = vmatpush1.bf16.msra.mxu1 %v6341_v28  ;;  %v6372_v56 = vld [vmem:[%s10783_s3 + $0x1b4] ss:$24 sps:$4 sm:$0xff]   ;;  %v502_v57 = vld [vmem:[%s7245_s27 + $0x40] sm:$0xff]  ;;  %v6362_v59 = vld [vmem:[%s10783_s3 + $0x158] ss:$24 sps:$4 sm:$0xff]   ;;  %s7026_s23 = sshll.u32 %s7087_s17, 4  ;;  %s7027_s23 = int_to_ptr.vmem [resolvable:$false] %s7026_s23 }
  0x2a   : > { %1485 = vmatprep.subr.bf16.mxu0 %v6322_v16  ;;  %1380 = vmatprep.subr.bf16.mxu1 %v6342_v29  ;;  %v503_v58 = vld [vmem:[%s7245_s27 + $0x48] sm:$0xff]  ;;  %v6378_v63 = vld [vmem:[%s10783_s3 + $0x1e4] ss:$24 sps:$4 sm:$0xff]   ;;  %v6383_v3 = vld [vmem:[%s10783_s3 + $0x1e0] ss:$24 sps:$4 sm:$0xff]   ;;  %s7028_s25 = scalar_lea.vmem %s7027_s23, 8192  ;;  %p7029_p0 = scmp.lt.s32.totalorder %s10729_s29, %s7027_s23 }
  0x2b   : > { %v6370_v60 = vld [vmem:[%s10783_s3 + $0x18c] ss:$24 sps:$4 sm:$0xff]   ;;  %v6377_v61 = vld [vmem:[%s10783_s3 + $0x1b0] ss:$24 sps:$4 sm:$0xff]   ;;  %v514_v0 = vpack.c.bf16 %v503_v58, %v502_v57  ;;  %v6376_v1 = vld [vmem:[%s10783_s3 + $0x1bc] ss:$24 sps:$4 sm:$0xff]   ;;  %p7030_p1 = scmp.lt.s32.totalorder %s7028_s25, %s7022_s16 }
  0x2c   : > { %5686 = vmatmul.mubr.msk.bf16.vlgmr.msra.gmra.mrb[0].mxu0 %vm610_vm0, %v510_v18  ;;  %v6368_v62 = vld [vmem:[%s10783_s3 + $0x188] ss:$24 sps:$4 sm:$0xff]   ;;  %v6384_v4 = vld [vmem:[%s10783_s3 + $0x214] ss:$24 sps:$4 sm:$0xff]   ;;  %v505_v6 = vld [vmem:[%s7245_s27 + $0x58] sm:$0xff] }
  0x2d   : > { %677 = vmatprep.mubr.bf16.mxu0 %v10803_v2  ;;  %1486 = vmatpush1.bf16.msra.mxu0 %v6320_v20  ;;  %v504_v5 = vld [vmem:[%s7245_s27 + $0x50] sm:$0xff]  ;;  %v6382_v8 = vld [vmem:[%s10783_s3 + $0x1ec] ss:$24 sps:$4 sm:$0xff]   ;;  %v6380_v11 = vld [vmem:[%s10783_s3 + $0x1e8] ss:$24 sps:$4 sm:$0xff]   ;;  %p7031_p2 = por %p7030_p1, %p7029_p0 }
  0x2e   : > { %1487 = vmatprep.subr.bf16.mxu0 %v6328_v21  ;;  %1381 = vmatpush1.bf16.msra.mxu1 %v6347_v33  ;;  %v6374_v7 = vld [vmem:[%s10783_s3 + $0x1b8] ss:$24 sps:$4 sm:$0xff]   ;;  %v6390_v10 = vld [vmem:[%s10783_s3 + $0x244] ss:$24 sps:$4 sm:$0xff]   ;;  %v515_v12 = vpack.c.bf16 %v505_v6, %v504_v5  ;;  %v6396_v15 = vld [vmem:[%s10783_s3 + $0x274] ss:$24 sps:$4 sm:$0xff]  }
  0x2f   : > { %1382 = vmatprep.subr.bf16.mxu1 %v6348_v34  ;;  %v6389_v9 = vld [vmem:[%s10783_s3 + $0x210] ss:$24 sps:$4 sm:$0xff]   ;;  %v6388_v13 = vld [vmem:[%s10783_s3 + $0x21c] ss:$24 sps:$4 sm:$0xff]   ;;  %v6395_v14 = vld [vmem:[%s10783_s3 + $0x240] ss:$24 sps:$4 sm:$0xff]   ;;  %p7032_p3 = pnand %p7031_p2, %p7025_p13 }
  0x30   : > { %v506_v16 = vld [vmem:[%s7245_s27 + $0x60] sm:$0xff]  ;;  %v507_v17 = vld [vmem:[%s7245_s27 + $0x68] sm:$0xff]  ;;  %v6386_v18 = vld [vmem:[%s10783_s3 + $0x218] ss:$24 sps:$4 sm:$0xff]  }
  0x31   : > { %1488 = vmatpush1.bf16.msra.mxu0 %v6326_v26  ;;  %v6394_v19 = vld [vmem:[%s10783_s3 + $0x24c] ss:$24 sps:$4 sm:$0xff]   ;;  %v6401_v20 = vld [vmem:[%s10783_s3 + $0x270] ss:$24 sps:$4 sm:$0xff]   ;;  %v516_v22 = vpack.c.bf16 %v507_v17, %v506_v16  ;;  %v6400_v23 = vld [vmem:[%s10783_s3 + $0x27c] ss:$24 sps:$4 sm:$0xff]  }
  0x32   : > { %1489 = vmatprep.subr.bf16.mxu0 %v6334_v27  ;;  %1383 = vmatpush1.bf16.msra.mxu1 %v6353_v39  ;;  %v6392_v21 = vld [vmem:[%s10783_s3 + $0x248] ss:$24 sps:$4 sm:$0xff]   ;;  %v508_v24 = vld [vmem:[%s7245_s27 + $0x70] sm:$0xff]  ;;  %v509_v25 = vld [vmem:[%s7245_s27 + $0x78] sm:$0xff]  ;;  %s10727_s27 = scalar_lea.hbm %s10795_s15, %s5972_s18 }
  0x33   : > { %1384 = vmatprep.subr.bf16.mxu1 %v6354_v40  ;;  %v6398_v26 = vld [vmem:[%s10783_s3 + $0x278] ss:$24 sps:$4 sm:$0xff]   ;;  %v517_v27 = vpack.c.bf16 %v509_v25, %v508_v24  ;;  %v6402_v28 = vld [vmem:[%s10783_s3 + $0x2a4] ss:$24 sps:$4 sm:$0xff]   ;;  %v6416_v36 = vld [vmem:[%s10783_s3 + $0x14] ss:$24 sps:$4 sm:$0xff]  }
  0x34   : > { %5687 = vmatmul.mubr.msk.bf16.gmra.mrb[4].mxu0 %vm610_vm0, %v511_v30  ;;  %v6406_v29 = vld [vmem:[%s10783_s3 + $0x2ac] ss:$24 sps:$4 sm:$0xff]   ;;  %v6404_v30 = vld [vmem:[%s10783_s3 + $0x2a8] ss:$24 sps:$4 sm:$0xff]   ;;  %v6412_v33 = vld [vmem:[%s10783_s3 + $0x2dc] ss:$24 sps:$4 sm:$0xff]  }
  0x35   : > { %687 = vmatprep.mubr.bf16.mxu0 %v10803_v2  ;;  %1490 = vmatpush1.bf16.msra.mxu0 %v6332_v31  ;;  %v6407_v31 = vld [vmem:[%s10783_s3 + $0x2a0] ss:$24 sps:$4 sm:$0xff]   ;;  %v6413_v35 = vld [vmem:[%s10783_s3 + $0x2d0] ss:$24 sps:$4 sm:$0xff]   ;;  %v6431_v25 = vld [vmem:[%s10783_s3 + $0x104] ss:$24 sps:$4 sm:$0xff]  }
  0x36   : > { %1491 = vmatprep.subr.bf16.mxu0 %v6340_v32  ;;  %1385 = vmatpush1.bf16.msra.mxu1 %v6359_v44  ;;  %v6408_v32 = vld [vmem:[%s10783_s3 + $0x2d4] ss:$24 sps:$4 sm:$0xff]   ;;  %v6410_v34 = vld [vmem:[%s10783_s3 + $0x2d8] ss:$24 sps:$4 sm:$0xff]   ;;  %v532_v58 = vld [vmem:[%s10781_s1 + $0x20] sm:$0xff] }
  0x37   : > { %1386 = vmatprep.subr.bf16.mxu1 %v6360_v45  ;;  %v529_v39 = vld [vmem:[%s10781_s1 + $0x8] sm:$0xff]  ;;  %v535_v57 = vld [vmem:[%s10781_s1 + $0x38] sm:$0xff] }
  0x38   : > { %v6420_v5 = vld [vmem:[%s10783_s3 + $0x70] ss:$24 sps:$4 sm:$0xff]  }
  0x39   : > { %1492 = vmatpush1.bf16.msra.mxu0 %v6338_v37 }
  0x3a   : > { %1493 = vmatprep.subr.bf16.mxu0 %v6346_v38  ;;  %1387 = vmatpush1.bf16.msra.mxu1 %v6365_v50  ;;  %v530_v38 = vld [vmem:[%s10781_s1 + $0x10] sm:$0xff] }
  0x3b   : > { %1388 = vmatprep.subr.bf16.mxu1 %v6366_v51  ;;  %v6414_v50 = vld [vmem:[%s10783_s3 + $0x10] ss:$24 sps:$4 sm:$0xff]  }
  0x3c   : > { %5688 = vmatmul.mubr.msk.bf16.gmra.mrb[8].mxu0 %vm610_vm0, %v512_v41  ;;  %v531_v41 = vld [vmem:[%s10781_s1 + $0x18] sm:$0xff] }
  0x3d   : > { %697 = vmatprep.mubr.bf16.mxu0 %v10803_v2  ;;  %1494 = vmatpush1.bf16.msra.mxu0 %v6344_v42  ;;  %v528_v42 = vld [vmem:[%s10781_s1] sm:$0xff] }
  0x3e   : > { %1495 = vmatprep.subr.bf16.mxu0 %v6352_v43  ;;  %1389 = vmatpush1.bf16.msra.mxu1 %v6371_v55  ;;  %v533_v55 = vld [vmem:[%s10781_s1 + $0x28] sm:$0xff] }
  0x3f   : > { %1390 = vmatprep.subr.bf16.mxu1 %v6372_v56 }
  0x41   : > { %1496 = vmatpush1.bf16.msra.mxu0 %v6350_v48 }
  0x42   : > { %1497 = vmatprep.subr.bf16.mxu0 %v6358_v49  ;;  %1391 = vmatpush1.bf16.msra.mxu1 %v6377_v61 }
  0x43   : > { %1392 = vmatprep.subr.bf16.mxu1 %v6378_v63  ;;  %v6422_v63 = vld [vmem:[%s10783_s3 + $0x74] ss:$24 sps:$4 sm:$0xff]  }
  0x44   : > { %5689 = vmatmul.mubr.msk.bf16.gmra.mrb[12].mxu0 %vm610_vm0, %v513_v52  ;;  %v6419_v52 = vld [vmem:[%s10783_s3 + $0x44] ss:$24 sps:$4 sm:$0xff]  }
  0x45   : > { %707 = vmatprep.mubr.bf16.mxu0 %v10803_v2  ;;  %1498 = vmatpush1.bf16.msra.mxu0 %v6356_v53 }
  0x46   : > { %1499 = vmatprep.subr.bf16.mxu0 %v6364_v54  ;;  %1393 = vmatpush1.bf16.msra.mxu1 %v6383_v3  ;;  %v534_v54 = vld [vmem:[%s10781_s1 + $0x30] sm:$0xff] }
  0x47   : > { %1394 = vmatprep.subr.bf16.mxu1 %v6384_v4 }
  0x49   : > { %1500 = vmatpush1.bf16.msra.mxu0 %v6362_v59 }
  0x4a   : > { %1501 = vmatprep.subr.bf16.mxu0 %v6370_v60  ;;  %1395 = vmatpush1.bf16.msra.mxu1 %v6389_v9  ;;  %v6417_v60 = vld [vmem:[%s10783_s3 + $0x40] ss:$24 sps:$4 sm:$0xff]   ;;  %v538_v9 = vld [vmem:[%s10781_s1 + $0x50] sm:$0xff] }
  0x4b   : > { %1396 = vmatprep.subr.bf16.mxu1 %v6390_v10  ;;  %v537_v10 = vld [vmem:[%s10781_s1 + $0x48] sm:$0xff] }
  0x4c   : > { %5690 = vmatmul.mubr.msk.bf16.gmra.mrb[16].mxu0 %vm610_vm0, %v514_v0 }
  0x4d   : > { %717 = vmatprep.mubr.bf16.mxu0 %v10803_v2  ;;  %1502 = vmatpush1.bf16.msra.mxu0 %v6368_v62 }
  0x4e   : > { %1503 = vmatprep.subr.bf16.mxu0 %v6376_v1  ;;  %1397 = vmatpush1.bf16.msra.mxu1 %v6395_v14 }
  0x4f   : > { %1398 = vmatprep.subr.bf16.mxu1 %v6396_v15  ;;  %v6423_v15 = vld [vmem:[%s10783_s3 + $0xa0] ss:$24 sps:$4 sm:$0xff]  }
  0x51   : > { %1504 = vmatpush1.bf16.msra.mxu0 %v6374_v7  ;;  %v6425_v7 = vld [vmem:[%s10783_s3 + $0xa4] ss:$24 sps:$4 sm:$0xff]  }
  0x52   : > { %1505 = vmatprep.subr.bf16.mxu0 %v6382_v8  ;;  %1399 = vmatpush1.bf16.msra.mxu1 %v6401_v20 }
  0x53   : > { %1400 = vmatprep.subr.bf16.mxu1 %v6402_v28  ;;  %v541_v28 = vld [vmem:[%s10781_s1 + $0x68] sm:$0xff] }
  0x54   : > { %5691 = vmatmul.mubr.msk.bf16.gmra.mrb[20].mxu0 %vm610_vm0, %v515_v12  ;;  %v539_v12 = vld [vmem:[%s10781_s1 + $0x58] sm:$0xff] }
  0x55   : > { %727 = vmatprep.mubr.bf16.mxu0 %v10803_v2  ;;  %1506 = vmatpush1.bf16.msra.mxu0 %v6380_v11 }
  0x56   : > { %1507 = vmatprep.subr.bf16.mxu0 %v6388_v13  ;;  %1401 = vmatpush1.bf16.msra.mxu1 %v6407_v31  ;;  %v536_v13 = vld [vmem:[%s10781_s1 + $0x40] sm:$0xff] }
  0x57   : > { %1402 = vmatprep.subr.bf16.mxu1 %v6408_v32  ;;  %v540_v31 = vld [vmem:[%s10781_s1 + $0x60] sm:$0xff] }
  0x59   : > { %1508 = vmatpush1.bf16.msra.mxu0 %v6386_v18  ;;  %v6428_v18 = vld [vmem:[%s10783_s3 + $0xd4] ss:$24 sps:$4 sm:$0xff]  }
  0x5a   : > { %1509 = vmatprep.subr.bf16.mxu0 %v6394_v19  ;;  %1403 = vmatpush1.bf16.msra.mxu1 %v6413_v35 }
  0x5b   : > { %1598 = vmatprep.subr.bf16.mxu1 %v6416_v36  ;;  %v6434_v36 = vld [vmem:[%s10783_s3 + $0x134] ss:$24 sps:$4 sm:$0xff]  }
  0x5c   : > { %5692 = vmatmul.mubr.msk.bf16.gmra.mrb[24].mxu0 %vm610_vm0, %v516_v22 }
  0x5d   : > { %737 = vmatprep.mubr.bf16.mxu0 %v10803_v2  ;;  %1510 = vmatpush1.bf16.msra.mxu0 %v6392_v21 }
  0x5e   : > { %1511 = vmatprep.subr.bf16.mxu0 %v6400_v23  ;;  %v6426_v23 = vld [vmem:[%s10783_s3 + $0xd0] ss:$24 sps:$4 sm:$0xff]  }
  0x61   : > { %1512 = vmatpush1.bf16.msra.mxu0 %v6398_v26 }
  0x62   : > { %1513 = vmatprep.subr.bf16.mxu0 %v6406_v29 }
  0x64   : > { %5693 = vmatmul.mubr.msk.bf16.gmra.mrb[28].mxu0 %vm610_vm0, %v517_v27  ;;  %v542_v27 = vld [vmem:[%s10781_s1 + $0x70] sm:$0xff] }
  0x65   : > { %1514 = vmatpush1.bf16.msra.mxu0 %v6404_v30  ;;  %v543_v30 = vld [vmem:[%s10781_s1 + $0x78] sm:$0xff] }
  0x66   : > { %1515 = vmatprep.subr.bf16.mxu0 %v6412_v33  ;;  %v6429_v33 = vld [vmem:[%s10783_s3 + $0x100] ss:$24 sps:$4 sm:$0xff]  }
  0x69   : > { %1516 = vmatpush1.bf16.msra.mxu0 %v6410_v34 }
  0xff   : > { %v669_v37 = vpop.f32.mrb[0].mxu0 }
 0x100   : > { %v671_v40 = vpop.f32.mrb[1].mxu0  ;;  %v7500_v48 = vadd.f32 %v669_v37, %v528_v42 }
 0x101   : > { %v673_v43 = vpop.f32.mrb[2].mxu0  ;;  %v7496_v46 = vadd.f32 %v671_v40, %v529_v39 }
 0x102   : > { %v7494_v44 = vadd.f32 %v673_v43, %v530_v38  ;;  %v675_v45 = vpop.f32.mrb[3].mxu0  ;;  %v6437_v43 = vld [vmem:[%s10783_s3 + $0x164] ss:$24 sps:$4 sm:$0xff]  }
 0x103   : > { %v7498_v47 = vadd.f32 %v675_v45, %v531_v41  ;;  %v6432_v41 = vld [vmem:[%s10783_s3 + $0x130] ss:$24 sps:$4 sm:$0xff]  }
 0x104   : > { %v7511_v51 = vpack.c.bf16 %v7494_v44, %v7500_v48 }
 0x105   : > { %v7504_v49 = vpack.c.bf16 %v7498_v47, %v7496_v46 }
 0x107   : > { %v679_v53 = vpop.f32.mrb[4].mxu0  ;;  %1404 = vmatprep.mubr.bf16.mxu1 %v7504_v49  ;;  %1517 = vmatprep.mubr.bf16.mxu0 %v7504_v49 }
 0x108   : > { %v681_v56 = vpop.f32.mrb[5].mxu0  ;;  %1405 = vmatmul.mubr.bf16.vlgmr.msra.gmra.mrb[0].mxu1 %v7511_v51  ;;  %1518 = vmatmul.mubr.bf16.vlgmr.msra.gmra.mrb[32].mxu0 %v7511_v51  ;;  %v7544_v3 = vadd.f32 %v679_v53, %v532_v58 }
 0x109   : > { %v683_v59 = vpop.f32.mrb[6].mxu0  ;;  %1599 = vmatpush1.bf16.msra.mxu1 %v6414_v50  ;;  %v7540_v0 = vadd.f32 %v681_v56, %v533_v55  ;;  %v546_v50 = vld [vmem:[%s10781_s1 + $0x90] sm:$0xff]  ;;  %v544_v55 = vld [vmem:[%s10781_s1 + $0x80] sm:$0xff] }
 0x10a   : > { %v7535_v61 = vadd.f32 %v683_v59, %v534_v54  ;;  %v685_v62 = vpop.f32.mrb[7].mxu0  ;;  %1600 = vmatprep.subr.bf16.mxu1 %v6419_v52  ;;  %v545_v52 = vld [vmem:[%s10781_s1 + $0x88] sm:$0xff]  ;;  %v547_v54 = vld [vmem:[%s10781_s1 + $0x98] sm:$0xff] }
 0x10b   : > { %10876 = vst [vmem:[#allocation11_spill] sm:$0xff] %v7540_v0  ;;  %v7542_v1 = vadd.f32 %v685_v62, %v535_v57  ;;  %v6435_v57 = vld [vmem:[%s10783_s3 + $0x160] ss:$24 sps:$4 sm:$0xff]  }
 0x10c   : > { %10875 = vst [vmem:[#allocation10_spill] sm:$0xff] %v7535_v61  ;;  %v7555_v6 = vpack.c.bf16 %v7535_v61, %v7544_v3 }
 0x10d   : > { %10877 = vst [vmem:[#allocation12_spill] sm:$0xff] %v7542_v1  ;;  %v7548_v4 = vpack.c.bf16 %v7542_v1, %v7540_v0  ;;  %1601 = vmatpush1.bf16.msra.mxu1 %v6417_v60  ;;  %v6440_v60 = vld [vmem:[%s10783_s3 + $0x194] ss:$24 sps:$4 sm:$0xff]  }
 0x10e   : > { %1602 = vmatprep.subr.bf16.mxu1 %v6422_v63 }
 0x10f   : > { %v689_v8 = vpop.f32.mrb[8].mxu0  ;;  %1414 = vmatprep.mubr.bf16.mxu1 %v7548_v4  ;;  %1527 = vmatprep.mubr.bf16.mxu0 %v7548_v4 }
 0x110   : > { %v691_v11 = vpop.f32.mrb[9].mxu0  ;;  %1415 = vmatmul.mubr.bf16.gmra.mrb[4].mxu1 %v7555_v6  ;;  %1528 = vmatmul.mubr.bf16.gmra.mrb[36].mxu0 %v7555_v6  ;;  %v7588_v21 = vadd.f32 %v689_v8, %v536_v13  ;;  %v6438_v8 = vld [vmem:[%s10783_s3 + $0x190] ss:$24 sps:$4 sm:$0xff]  }
 0x111   : > { %v693_v14 = vpop.f32.mrb[10].mxu0  ;;  %1603 = vmatpush1.bf16.msra.mxu1 %v6420_v5  ;;  %v7584_v19 = vadd.f32 %v691_v11, %v537_v10  ;;  %v6443_v10 = vld [vmem:[%s10783_s3 + $0x1c4] ss:$24 sps:$4 sm:$0xff]   ;;  %v549_v13 = vld [vmem:[%s10781_s1 + $0xa8] sm:$0xff] }
 0x112   : > { %v7579_v16 = vadd.f32 %v693_v14, %v538_v9  ;;  %v695_v17 = vpop.f32.mrb[11].mxu0  ;;  %1604 = vmatprep.subr.bf16.mxu1 %v6425_v7  ;;  %10881 = vst [vmem:[#allocation16_spill] sm:$0xff] %v7588_v21 }
 0x113   : > { %10879 = vst [vmem:[#allocation14_spill] sm:$0xff] %v7584_v19  ;;  %v7586_v20 = vadd.f32 %v695_v17, %v539_v12  ;;  %v550_v12 = vld [vmem:[%s10781_s1 + $0xb0] sm:$0xff]  ;;  %v548_v17 = vld [vmem:[%s10781_s1 + $0xa0] sm:$0xff] }
 0x114   : > { %10878 = vst [vmem:[#allocation13_spill] sm:$0xff] %v7579_v16  ;;  %v7599_v24 = vpack.c.bf16 %v7579_v16, %v7588_v21 }
 0x115   : > { %10880 = vst [vmem:[#allocation15_spill] sm:$0xff] %v7586_v20  ;;  %v7592_v22 = vpack.c.bf16 %v7586_v20, %v7584_v19  ;;  %1605 = vmatpush1.bf16.msra.mxu1 %v6423_v15  ;;  %v551_v15 = vld [vmem:[%s10781_s1 + $0xb8] sm:$0xff] }
 0x116   : > { %1606 = vmatprep.subr.bf16.mxu1 %v6428_v18 }
 0x117   : > { %v699_v26 = vpop.f32.mrb[12].mxu0  ;;  %1424 = vmatprep.mubr.bf16.mxu1 %v7592_v22  ;;  %1537 = vmatprep.mubr.bf16.mxu0 %v7592_v22 }
 0x118   : > { %v701_v29 = vpop.f32.mrb[13].mxu0  ;;  %1425 = vmatmul.mubr.bf16.gmra.mrb[8].mxu1 %v7599_v24  ;;  %1538 = vmatmul.mubr.bf16.gmra.mrb[40].mxu0 %v7599_v24  ;;  %v7632_v39 = vadd.f32 %v699_v26, %v540_v31 }
 0x119   : > { %v703_v32 = vpop.f32.mrb[14].mxu0  ;;  %1607 = vmatpush1.bf16.msra.mxu1 %v6426_v23  ;;  %v7628_v37 = vadd.f32 %v701_v29, %v541_v28  ;;  %v6441_v23 = vld [vmem:[%s10783_s3 + $0x1c0] ss:$24 sps:$4 sm:$0xff]  }
 0x11a   : > { %v7623_v34 = vadd.f32 %v703_v32, %v542_v27  ;;  %v705_v35 = vpop.f32.mrb[15].mxu0  ;;  %1608 = vmatprep.subr.bf16.mxu1 %v6431_v25  ;;  %10885 = vst [vmem:[#allocation20_spill] sm:$0xff] %v7632_v39  ;;  %v6446_v27 = vld [vmem:[%s10783_s3 + $0x1f4] ss:$24 sps:$4 sm:$0xff]   ;;  %v6444_v32 = vld [vmem:[%s10783_s3 + $0x1f0] ss:$24 sps:$4 sm:$0xff]  }
 0x11b   : > { %10883 = vst [vmem:[#allocation18_spill] sm:$0xff] %v7628_v37  ;;  %v7630_v38 = vadd.f32 %v705_v35, %v543_v30  ;;  %v6449_v35 = vld [vmem:[%s10783_s3 + $0x224] ss:$24 sps:$4 sm:$0xff]  }
 0x11c   : > { %10882 = vst [vmem:[#allocation17_spill] sm:$0xff] %v7623_v34  ;;  %v7643_v42 = vpack.c.bf16 %v7623_v34, %v7632_v39 }
 0x11d   : > { %10884 = vst [vmem:[#allocation19_spill] sm:$0xff] %v7630_v38  ;;  %v7636_v40 = vpack.c.bf16 %v7630_v38, %v7628_v37  ;;  %1609 = vmatpush1.bf16.msra.mxu1 %v6429_v33 }
 0x11e   : > { %1610 = vmatprep.subr.bf16.mxu1 %v6434_v36 }
 0x11f   : > { %v709_v45 = vpop.f32.mrb[16].mxu0  ;;  %1434 = vmatprep.mubr.bf16.mxu1 %v7636_v40  ;;  %1547 = vmatprep.mubr.bf16.mxu0 %v7636_v40 }
 0x120   : > { %v711_v53 = vpop.f32.mrb[17].mxu0  ;;  %1435 = vmatmul.mubr.bf16.gmra.mrb[12].mxu1 %v7643_v42  ;;  %1548 = vmatmul.mubr.bf16.gmra.mrb[44].mxu0 %v7643_v42  ;;  %v7676_v5 = vadd.f32 %v709_v45, %v544_v55 }
 0x121   : > { %v713_v56 = vpop.f32.mrb[18].mxu0  ;;  %1611 = vmatpush1.bf16.msra.mxu1 %v6432_v41  ;;  %v7672_v62 = vadd.f32 %v711_v53, %v545_v52  ;;  %v554_v41 = vld [vmem:[%s10781_s1 + $0xd0] sm:$0xff]  ;;  %v552_v52 = vld [vmem:[%s10781_s1 + $0xc0] sm:$0xff] }
 0x122   : > { %v7667_v58 = vadd.f32 %v713_v56, %v546_v50  ;;  %v715_v59 = vpop.f32.mrb[19].mxu0  ;;  %1612 = vmatprep.subr.bf16.mxu1 %v6437_v43  ;;  %10889 = vst [vmem:[#allocation24_spill] sm:$0xff] %v7676_v5  ;;  %v553_v43 = vld [vmem:[%s10781_s1 + $0xc8] sm:$0xff]  ;;  %v555_v50 = vld [vmem:[%s10781_s1 + $0xd8] sm:$0xff] }
 0x123   : > { %10887 = vst [vmem:[#allocation22_spill] sm:$0xff] %v7672_v62  ;;  %v7674_v63 = vadd.f32 %v715_v59, %v547_v54  ;;  %v6447_v54 = vld [vmem:[%s10783_s3 + $0x220] ss:$24 sps:$4 sm:$0xff]  }
 0x124   : > { %10886 = vst [vmem:[#allocation21_spill] sm:$0xff] %v7667_v58  ;;  %v7687_v9 = vpack.c.bf16 %v7667_v58, %v7676_v5 }
 0x125   : > { %10888 = vst [vmem:[#allocation23_spill] sm:$0xff] %v7674_v63  ;;  %v7680_v7 = vpack.c.bf16 %v7674_v63, %v7672_v62  ;;  %1613 = vmatpush1.bf16.msra.mxu1 %v6435_v57  ;;  %v6452_v57 = vld [vmem:[%s10783_s3 + $0x254] ss:$24 sps:$4 sm:$0xff]  }
 0x126   : > { %1614 = vmatprep.subr.bf16.mxu1 %v6440_v60 }
 0x127   : > { %v719_v11 = vpop.f32.mrb[20].mxu0  ;;  %1444 = vmatprep.mubr.bf16.mxu1 %v7680_v7  ;;  %1557 = vmatprep.mubr.bf16.mxu0 %v7680_v7 }
 0x128   : > { %v721_v14 = vpop.f32.mrb[21].mxu0  ;;  %1445 = vmatmul.mubr.bf16.gmra.mrb[16].mxu1 %v7687_v9  ;;  %1558 = vmatmul.mubr.bf16.gmra.mrb[48].mxu0 %v7687_v9  ;;  %v7720_v30 = vadd.f32 %v719_v11, %v548_v17  ;;  %v6450_v11 = vld [vmem:[%s10783_s3 + $0x250] ss:$24 sps:$4 sm:$0xff]  }
 0x129   : > { %v723_v18 = vpop.f32.mrb[22].mxu0  ;;  %1615 = vmatpush1.bf16.msra.mxu1 %v6438_v8  ;;  %v7716_v28 = vadd.f32 %v721_v14, %v549_v13  ;;  %v6455_v13 = vld [vmem:[%s10783_s3 + $0x284] ss:$24 sps:$4 sm:$0xff]   ;;  %v557_v17 = vld [vmem:[%s10781_s1 + $0xe8] sm:$0xff] }
 0x12a   : > { %v7711_v25 = vadd.f32 %v723_v18, %v550_v12  ;;  %v725_v26 = vpop.f32.mrb[23].mxu0  ;;  %1616 = vmatprep.subr.bf16.mxu1 %v6443_v10  ;;  %10893 = vst [vmem:[#allocation28_spill] sm:$0xff] %v7720_v30 }
 0x12b   : > { %10891 = vst [vmem:[#allocation26_spill] sm:$0xff] %v7716_v28  ;;  %v7718_v29 = vadd.f32 %v725_v26, %v551_v15  ;;  %v558_v15 = vld [vmem:[%s10781_s1 + $0xf0] sm:$0xff]  ;;  %v556_v26 = vld [vmem:[%s10781_s1 + $0xe0] sm:$0xff] }
 0x12c   : > { %10890 = vst [vmem:[#allocation25_spill] sm:$0xff] %v7711_v25  ;;  %v7731_v33 = vpack.c.bf16 %v7711_v25, %v7720_v30 }
 0x12d   : > { %10892 = vst [vmem:[#allocation27_spill] sm:$0xff] %v7718_v29  ;;  %v7724_v31 = vpack.c.bf16 %v7718_v29, %v7716_v28  ;;  %1617 = vmatpush1.bf16.msra.mxu1 %v6441_v23  ;;  %v559_v23 = vld [vmem:[%s10781_s1 + $0xf8] sm:$0xff] }
 0x12e   : > { %1618 = vmatprep.subr.bf16.mxu1 %v6446_v27 }
 0x12f   : > { %v729_v36 = vpop.f32.mrb[24].mxu0  ;;  %1454 = vmatprep.mubr.bf16.mxu1 %v7724_v31  ;;  %1567 = vmatprep.mubr.bf16.mxu0 %v7724_v31 }
 0x130   : > { %v731_v45 = vpop.f32.mrb[25].mxu0  ;;  %1455 = vmatmul.mubr.bf16.gmra.mrb[20].mxu1 %v7731_v33  ;;  %1568 = vmatmul.mubr.bf16.gmra.mrb[52].mxu0 %v7731_v33  ;;  %v7764_v8 = vadd.f32 %v729_v36, %v552_v52 }
 0x131   : > { %v733_v53 = vpop.f32.mrb[26].mxu0  ;;  %1619 = vmatpush1.bf16.msra.mxu1 %v6444_v32  ;;  %v7760_v59 = vadd.f32 %v731_v45, %v553_v43  ;;  %v6453_v32 = vld [vmem:[%s10783_s3 + $0x280] ss:$24 sps:$4 sm:$0xff]  }
 0x132   : > { %v7755_v55 = vadd.f32 %v733_v53, %v554_v41  ;;  %v735_v56 = vpop.f32.mrb[27].mxu0  ;;  %1620 = vmatprep.subr.bf16.mxu1 %v6449_v35  ;;  %10897 = vst [vmem:[#allocation32_spill] sm:$0xff] %v7764_v8  ;;  %v6458_v41 = vld [vmem:[%s10783_s3 + $0x2b4] ss:$24 sps:$4 sm:$0xff]   ;;  %v6456_v53 = vld [vmem:[%s10783_s3 + $0x2b0] ss:$24 sps:$4 sm:$0xff]  }
 0x133   : > { %10895 = vst [vmem:[#allocation30_spill] sm:$0xff] %v7760_v59  ;;  %v7762_v60 = vadd.f32 %v735_v56, %v555_v50  ;;  %v6461_v56 = vld [vmem:[%s10783_s3 + $0x2e4] ss:$24 sps:$4 sm:$0xff]  }
 0x134   : > { %10894 = vst [vmem:[#allocation29_spill] sm:$0xff] %v7755_v55  ;;  %v760_v12 = vpack.c.bf16 %v7755_v55, %v7764_v8 }
 0x135   : > { %10896 = vst [vmem:[#allocation31_spill] sm:$0xff] %v7762_v60  ;;  %v761_v10 = vpack.c.bf16 %v7762_v60, %v7760_v59  ;;  %1621 = vmatpush1.bf16.msra.mxu1 %v6447_v54 }
 0x136   : > { %1622 = vmatprep.subr.bf16.mxu1 %v6452_v57  ;;  %v6459_v57 = vld [vmem:[%s10783_s3 + $0x2e0] ss:$24 sps:$4 sm:$0xff]  }
 0x137   : > { %v739_v14 = vpop.f32.mrb[28].mxu0  ;;  %1464 = vmatprep.mubr.bf16.mxu1 %v761_v10  ;;  %1577 = vmatprep.mubr.bf16.mxu0 %v761_v10 }
 0x138   : > { %v741_v18 = vpop.f32.mrb[29].mxu0  ;;  %1465 = vmatmul.mubr.bf16.gmra.mrb[24].mxu1 %v760_v12  ;;  %1578 = vmatmul.mubr.bf16.gmra.mrb[56].mxu0 %v760_v12  ;;  %v7800_v50 = vadd.f32 %v739_v14, %v556_v26 }
 0x139   : > { %v743_v27 = vpop.f32.mrb[30].mxu0  ;;  %1623 = vmatpush1.bf16.msra.mxu1 %v6450_v11  ;;  %v7796_v43 = vadd.f32 %v741_v18, %v557_v17 }
 0x13a   : > { %v7791_v35 = vadd.f32 %v743_v27, %v558_v15  ;;  %v745_v36 = vpop.f32.mrb[31].mxu0  ;;  %1624 = vmatprep.subr.bf16.mxu1 %v6455_v13  ;;  %10901 = vst [vmem:[#allocation36_spill] sm:$0xff] %v7800_v50 }
 0x13b   : > { %10899 = vst [vmem:[#allocation34_spill] sm:$0xff] %v7796_v43  ;;  %v7798_v45 = vadd.f32 %v745_v36, %v559_v23 }
 0x13c   : > { %10898 = vst [vmem:[#allocation33_spill] sm:$0xff] %v7791_v35  ;;  %v762_v54 = vpack.c.bf16 %v7791_v35, %v7800_v50 }
 0x13d   : > { %10900 = vst [vmem:[#allocation35_spill] sm:$0xff] %v7798_v45  ;;  %v763_v52 = vpack.c.bf16 %v7798_v45, %v7796_v43  ;;  %1625 = vmatpush1.bf16.msra.mxu1 %v6453_v32 }
 0x13e   : > { %1626 = vmatprep.subr.bf16.mxu1 %v6458_v41 }
 0x13f   : > { %1474 = vmatprep.mubr.bf16.mxu1 %v763_v52  ;;  %1587 = vmatprep.mubr.bf16.mxu0 %v763_v52 }
 0x140   : > { %1475 = vmatmul.mubr.bf16.gmra.mrb[28].mxu1 %v762_v54  ;;  %1588 = vmatmul.mubr.bf16.gmra.mrb[60].mxu0 %v762_v54 }
 0x141   : > { %1627 = vmatpush1.bf16.msra.mxu1 %v6456_v53  ;;  %1630 = vmatprep.mubr.bf16.mxu1 %v7504_v49  ;;  %v862_v49 = vlaneseq }
 0x142   : > { %1628 = vmatprep.subr.bf16.mxu1 %v6461_v56 }
 0x145   : > { %1629 = vmatpush1.bf16.msra.mxu1 %v6459_v57 }
 0x148   : > { %1631 = vmatmul.mubr.bf16.vlgmr.msra.gmra.mrb[32].mxu1 %v7511_v51  ;;  %v7827_v51 = vshrl.u32 %v862_v49, 7 }
 0x149   : > { %1640 = vmatprep.mubr.bf16.mxu1 %v7548_v4 }
 0x14a   : > { %10902 = vst [vmem:[#allocation37_spill] sm:$0xff] %v7827_v51  ;;  %v7830_v4 = vsub.s32 0, %v7827_v51  ;;  %v884_v5 = vsub.s32 5, %v7827_v51 }
 0x150   : > { %1641 = vmatmul.mubr.bf16.gmra.mrb[36].mxu1 %v7555_v6  ;;  %v10802_v6 = vsub.s32 2, %v7827_v51 }
 0x151   : > { %1650 = vmatprep.mubr.bf16.mxu1 %v7592_v22  ;;  %v7836_v22 = vld [vmem:[%s10784_s4] sm:$0x3f] }
 0x158   : > { %1651 = vmatmul.mubr.bf16.gmra.mrb[40].mxu1 %v7599_v24  ;;  %v7839_v24 = vsub.s32 1, %v7827_v51 }
 0x159   : > { %1660 = vmatprep.mubr.bf16.mxu1 %v7636_v40  ;;  %v10801_v40 = vsub.s32 3, %v7827_v51 }
 0x15a   : > { %10903 = vst [vmem:[#allocation38_spill] sm:$0xff] %v7839_v24 }
 0x160   : > { %1661 = vmatmul.mubr.bf16.gmra.mrb[44].mxu1 %v7643_v42  ;;  %v7844_v42 = vrot.slane %v7836_v22, %v7830_v4 }
 0x161   : > { %1670 = vmatprep.mubr.bf16.mxu1 %v7680_v7  ;;  %v7849_v7 = vrot.slane %v7836_v22, %v10802_v6 }
 0x168   : > { %1671 = vmatmul.mubr.bf16.gmra.mrb[48].mxu1 %v7687_v9 }
 0x169   : > { %1680 = vmatprep.mubr.bf16.mxu1 %v7724_v31 }
 0x170   : > { %1681 = vmatmul.mubr.bf16.gmra.mrb[52].mxu1 %v7731_v33  ;;  %v7853_v33 = vrot.slane %v7836_v22, %v7839_v24 }
 0x171   : > { %1690 = vmatprep.mubr.bf16.mxu1 %v761_v10  ;;  %v7858_v10 = vrot.slane %v7836_v22, %v10801_v40 }
 0x178   : > { %1691 = vmatmul.mubr.bf16.gmra.mrb[56].mxu1 %v760_v12 }
 0x179   : > { %1700 = vmatprep.mubr.bf16.mxu1 %v763_v52 }
 0x180   : > { %1701 = vmatmul.mubr.bf16.gmra.mrb[60].mxu1 %v762_v54 }
 0x1db   : > { %v1406_v9 = vpop.f32.mrb[0].mxu1  ;;  %v1519_v31 = vpop.f32.mrb[32].mxu0 }
 0x1dc   : > { %v1408_v11 = vpop.f32.mrb[1].mxu1  ;;  %v1521_v12 = vpop.f32.mrb[33].mxu0  ;;  %v1407_v15 = vadd.f32 %v1406_v9, %v7844_v42  ;;  %v1520_v17 = vadd.f32 %v1519_v31, %v7849_v7 }
 0x1dd   : > { %v1410_v13 = vpop.f32.mrb[2].mxu1  ;;  %v1523_v14 = vpop.f32.mrb[34].mxu0  ;;  %v1409_v32 = vadd.f32 %v1408_v11, %v7853_v33  ;;  %v1522_v36 = vadd.f32 %v1521_v12, %v7858_v10 }
 0x1de   : > { %v1411_v18 = vadd.f32 %v1410_v13, %v7844_v42  ;;  %v1524_v23 = vadd.f32 %v1523_v14, %v7849_v7  ;;  %v1412_v26 = vpop.f32.mrb[3].mxu1  ;;  %v1525_v27 = vpop.f32.mrb[35].mxu0 }
 0x1df   : > { %v1413_v41 = vadd.f32 %v1412_v26, %v7853_v33  ;;  %v1526_v52 = vadd.f32 %v1525_v27, %v7858_v10 }
 0x1e0   : > { %v1711_v53 = vpack.c.bf16 %v1411_v18, %v1407_v15  ;;  %v1719_v54 = vpack.c.bf16 %v1524_v23, %v1520_v17 }
 0x1e1   : > { %v2105_v56 = vpack.c.bf16 %v1413_v41, %v1409_v32  ;;  %v2113_v57 = vpack.c.bf16 %v1526_v52, %v1522_v36 }
 0x1e2   : > { %6037 = vmatprep.subr.bf16.mxu0 %v1719_v54  ;;  %6053 = vmatprep.mubr.bf16.mxu0 %v1711_v53 }
 0x1e3   : > { %v1416_v49 = vpop.f32.mrb[4].mxu1  ;;  %v1529_v9 = vpop.f32.mrb[36].mxu0  ;;  %6038 = vmatpush3.bf16.xpose.msra.mxu0 %v1719_v54  ;;  %6101 = vmatprep.subr.bf16.mxu1 %v2113_v57 }
 0x1e4   : > { %v7869_v31 = vadd.f32 %v1416_v49, %v7844_v42  ;;  %6117 = vmatprep.mubr.bf16.mxu1 %v2105_v56  ;;  %v1418_v11 = vpop.f32.mrb[5].mxu1  ;;  %v1531_v12 = vpop.f32.mrb[37].mxu0  ;;  %6102 = vmatpush3.bf16.xpose.msra.mxu1 %v2113_v57  ;;  %v1530_v17 = vadd.f32 %v1529_v9, %v7849_v7 }
 0x1e5   : > { %v7872_v13 = vadd.f32 %v1418_v11, %v7853_v33  ;;  %v1420_v14 = vpop.f32.mrb[6].mxu1  ;;  %v1533_v15 = vpop.f32.mrb[38].mxu0  ;;  %v1532_v32 = vadd.f32 %v1531_v12, %v7858_v10 }
 0x1e6   : > { %v7876_v18 = vadd.f32 %v1420_v14, %v7844_v42  ;;  %v1534_v23 = vadd.f32 %v1533_v15, %v7849_v7  ;;  %v1422_v26 = vpop.f32.mrb[7].mxu1  ;;  %v1535_v27 = vpop.f32.mrb[39].mxu0 }
 0x1e7   : > { %v7881_v36 = vadd.f32 %v1422_v26, %v7853_v33  ;;  %v1536_v41 = vadd.f32 %v1535_v27, %v7858_v10 }
 0x1e8   : > { %v1720_v53 = vpack.c.bf16 %v1534_v23, %v1530_v17 }
 0x1e9   : > { %v2114_v56 = vpack.c.bf16 %v1536_v41, %v1532_v32 }
 0x1ea   : > { %6039 = vmatprep.subr.bf16.mxu0 %v1720_v53 }
 0x1eb   : > { %v1426_v57 = vpop.f32.mrb[8].mxu1  ;;  %v1539_v49 = vpop.f32.mrb[40].mxu0  ;;  %6040 = vmatpush3.bf16.xpose.msra.mxu0 %v1720_v53  ;;  %6103 = vmatprep.subr.bf16.mxu1 %v2114_v56 }
 0x1ec   : > { %v7889_v9 = vadd.f32 %v1426_v57, %v7844_v42  ;;  %v1428_v11 = vpop.f32.mrb[9].mxu1  ;;  %v1541_v12 = vpop.f32.mrb[41].mxu0  ;;  %6104 = vmatpush3.bf16.xpose.msra.mxu1 %v2114_v56  ;;  %v1540_v23 = vadd.f32 %v1539_v49, %v7849_v7 }
 0x1ed   : > { %v7892_v14 = vadd.f32 %v1428_v11, %v7853_v33  ;;  %v1430_v15 = vpop.f32.mrb[10].mxu1  ;;  %v1543_v17 = vpop.f32.mrb[42].mxu0  ;;  %v1542_v53 = vadd.f32 %v1541_v12, %v7858_v10 }
 0x1ee   : > { %v7896_v26 = vadd.f32 %v1430_v15, %v7844_v42  ;;  %v1544_v27 = vadd.f32 %v1543_v17, %v7849_v7  ;;  %v1432_v32 = vpop.f32.mrb[11].mxu1  ;;  %v1545_v41 = vpop.f32.mrb[43].mxu0 }
 0x1ef   : > { %v7901_v57 = vadd.f32 %v1432_v32, %v7853_v33  ;;  %v1546_v56 = vadd.f32 %v1545_v41, %v7858_v10 }
 0x1f0   : > { %v1721_v40 = vpack.c.bf16 %v1544_v27, %v1540_v23 }
 0x1f1   : > { %v2115_v15 = vpack.c.bf16 %v1546_v56, %v1542_v53 }
 0x1f2   : > { %6041 = vmatprep.subr.bf16.mxu0 %v1721_v40 }
 0x1f3   : > { %v1436_v6 = vpop.f32.mrb[12].mxu1  ;;  %v1549_v17 = vpop.f32.mrb[44].mxu0  ;;  %6042 = vmatpush3.bf16.xpose.msra.mxu0 %v1721_v40  ;;  %6105 = vmatprep.subr.bf16.mxu1 %v2115_v15 }
 0x1f4   : > { %v7909_v12 = vadd.f32 %v1436_v6, %v7844_v42  ;;  %v1438_v32 = vpop.f32.mrb[13].mxu1  ;;  %v1551_v2 = vpop.f32.mrb[45].mxu0  ;;  %6106 = vmatpush3.bf16.xpose.msra.mxu1 %v2115_v15  ;;  %v1550_v27 = vadd.f32 %v1549_v17, %v7849_v7 }
 0x1f5   : > { %v7912_v41 = vadd.f32 %v1438_v32, %v7853_v33  ;;  %v1440_v54 = vpop.f32.mrb[14].mxu1  ;;  %v1553_v23 = vpop.f32.mrb[46].mxu0  ;;  %v1552_v6 = vadd.f32 %v1551_v2, %v7858_v10 }
 0x1f6   : > { %v7916_v53 = vadd.f32 %v1440_v54, %v7844_v42  ;;  %v1554_v56 = vadd.f32 %v1553_v23, %v7849_v7  ;;  %v1442_v40 = vpop.f32.mrb[15].mxu1  ;;  %v1555_v49 = vpop.f32.mrb[47].mxu0 }
 0x1f7   : > { %v7921_v11 = vadd.f32 %v1442_v40, %v7853_v33  ;;  %v1556_v15 = vadd.f32 %v1555_v49, %v7858_v10 }
 0x1f8   : > { %v1722_v52 = vpack.c.bf16 %v1554_v56, %v1550_v27 }
 0x1f9   : > { %v2116_v54 = vpack.c.bf16 %v1556_v15, %v1552_v6 }
 0x1fa   : > { %6043 = vmatprep.subr.bf16.mxu0 %v1722_v52 }
 0x1fb   : > { %v1446_v45 = vpop.f32.mrb[16].mxu1  ;;  %v1559_v23 = vpop.f32.mrb[48].mxu0  ;;  %6044 = vmatpush3.bf16.xpose.msra.mxu0 %v1722_v52  ;;  %6107 = vmatprep.subr.bf16.mxu1 %v2116_v54 }
 0x1fc   : > { %v7929_v2 = vadd.f32 %v1446_v45, %v7844_v42  ;;  %v1448_v40 = vpop.f32.mrb[17].mxu1  ;;  %v1561_v35 = vpop.f32.mrb[49].mxu0  ;;  %6108 = vmatpush3.bf16.xpose.msra.mxu1 %v2116_v54  ;;  %v1560_v56 = vadd.f32 %v1559_v23, %v7849_v7 }
 0x1fd   : > { %v7932_v49 = vadd.f32 %v1448_v40, %v7853_v33  ;;  %v1450_v32 = vpop.f32.mrb[18].mxu1  ;;  %v1563_v27 = vpop.f32.mrb[50].mxu0  ;;  %v1562_v45 = vadd.f32 %v1561_v35, %v7858_v10 }
 0x1fe   : > { %v7936_v6 = vadd.f32 %v1450_v32, %v7844_v42  ;;  %v1564_v15 = vadd.f32 %v1563_v27, %v7849_v7  ;;  %v1452_v52 = vpop.f32.mrb[19].mxu1  ;;  %v1565_v17 = vpop.f32.mrb[51].mxu0 }
 0x1ff   : > { %v7941_v43 = vadd.f32 %v1452_v52, %v7853_v33  ;;  %v1566_v54 = vadd.f32 %v1565_v17, %v7858_v10 }
 0x200   : > { %v1723_v50 = vpack.c.bf16 %v1564_v15, %v1560_v56 }
 0x201   : > { %v2117_v32 = vpack.c.bf16 %v1566_v54, %v1562_v45 }
 0x202   : > { %6045 = vmatprep.subr.bf16.mxu0 %v1723_v50 }
 0x203   : > { %v1456_v60 = vpop.f32.mrb[20].mxu1  ;;  %v1569_v27 = vpop.f32.mrb[52].mxu0  ;;  %6046 = vmatpush3.bf16.xpose.msra.mxu0 %v1723_v50  ;;  %6109 = vmatprep.subr.bf16.mxu1 %v2117_v32 }
 0x204   : > { %v7949_v35 = vadd.f32 %v1456_v60, %v7844_v42  ;;  %v1458_v52 = vpop.f32.mrb[21].mxu1  ;;  %v1571_v55 = vpop.f32.mrb[53].mxu0  ;;  %6110 = vmatpush3.bf16.xpose.msra.mxu1 %v2117_v32  ;;  %v1570_v15 = vadd.f32 %v1569_v27, %v7849_v7 }
 0x205   : > { %v7952_v17 = vadd.f32 %v1458_v52, %v7853_v33  ;;  %v1460_v40 = vpop.f32.mrb[22].mxu1  ;;  %v1573_v56 = vpop.f32.mrb[54].mxu0  ;;  %v1572_v60 = vadd.f32 %v1571_v55, %v7858_v10 }
 0x206   : > { %v7956_v45 = vadd.f32 %v1460_v40, %v7844_v42  ;;  %v1574_v54 = vadd.f32 %v1573_v56, %v7849_v7  ;;  %v1462_v50 = vpop.f32.mrb[23].mxu1  ;;  %v1575_v23 = vpop.f32.mrb[55].mxu0 }
 0x207   : > { %v7961_v59 = vadd.f32 %v1462_v50, %v7853_v33  ;;  %v1576_v32 = vadd.f32 %v1575_v23, %v7858_v10 }
 0x208   : > { %v1724_v8 = vpack.c.bf16 %v1574_v54, %v1570_v15 }
 0x209   : > { %v2118_v40 = vpack.c.bf16 %v1576_v32, %v1572_v60 }
 0x20a   : > { %6047 = vmatprep.subr.bf16.mxu0 %v1724_v8 }
 0x20b   : > { %v1466_v29 = vpop.f32.mrb[24].mxu1  ;;  %v1579_v56 = vpop.f32.mrb[56].mxu0  ;;  %6048 = vmatpush3.bf16.xpose.msra.mxu0 %v1724_v8  ;;  %6111 = vmatprep.subr.bf16.mxu1 %v2118_v40 }
 0x20c   : > { %v7969_v55 = vadd.f32 %v1466_v29, %v7844_v42  ;;  %v1468_v50 = vpop.f32.mrb[25].mxu1  ;;  %v1581_v25 = vpop.f32.mrb[57].mxu0  ;;  %6112 = vmatpush3.bf16.xpose.msra.mxu1 %v2118_v40  ;;  %v1580_v54 = vadd.f32 %v1579_v56, %v7849_v7 }
 0x20d   : > { %v7972_v23 = vadd.f32 %v1468_v50, %v7853_v33  ;;  %v1470_v52 = vpop.f32.mrb[26].mxu1  ;;  %v1583_v15 = vpop.f32.mrb[58].mxu0  ;;  %v1582_v29 = vadd.f32 %v1581_v25, %v7858_v10 }
 0x20e   : > { %v7976_v60 = vadd.f32 %v1470_v52, %v7844_v42  ;;  %v1584_v32 = vadd.f32 %v1583_v15, %v7849_v7  ;;  %v1472_v8 = vpop.f32.mrb[27].mxu1  ;;  %v1585_v27 = vpop.f32.mrb[59].mxu0 }
 0x20f   : > { %v7981_v28 = vadd.f32 %v1472_v8, %v7853_v33  ;;  %v1586_v40 = vadd.f32 %v1585_v27, %v7858_v10 }
 0x210   : > { %v1725_v30 = vpack.c.bf16 %v1584_v32, %v1580_v54 }
 0x211   : > { %v2119_v52 = vpack.c.bf16 %v1586_v40, %v1582_v29 }
 0x212   : > { %6049 = vmatprep.subr.bf16.mxu0 %v1725_v30 }
 0x213   : > { %v1476_v63 = vpop.f32.mrb[28].mxu1  ;;  %v1589_v15 = vpop.f32.mrb[60].mxu0  ;;  %6050 = vmatpush3.bf16.xpose.msra.mxu0 %v1725_v30  ;;  %6113 = vmatprep.subr.bf16.mxu1 %v2119_v52 }
 0x214   : > { %v7989_v25 = vadd.f32 %v1476_v63, %v7844_v42  ;;  %v1478_v8 = vpop.f32.mrb[29].mxu1  ;;  %v1591_v58 = vpop.f32.mrb[61].mxu0  ;;  %6114 = vmatpush3.bf16.xpose.msra.mxu1 %v2119_v52  ;;  %v1590_v32 = vadd.f32 %v1589_v15, %v7849_v7  ;;  %v880_v63 = vsub.s32 4, %v7827_v51 }
 0x215   : > { %v7992_v27 = vadd.f32 %v1478_v8, %v7853_v33  ;;  %v1480_v50 = vpop.f32.mrb[30].mxu1  ;;  %v1593_v54 = vpop.f32.mrb[62].mxu0  ;;  %v1592_v62 = vadd.f32 %v1591_v58, %v7858_v10 }
 0x216   : > { %v7996_v29 = vadd.f32 %v1480_v50, %v7844_v42  ;;  %v1594_v40 = vadd.f32 %v1593_v54, %v7849_v7  ;;  %v1482_v30 = vpop.f32.mrb[31].mxu1  ;;  %v1595_v56 = vpop.f32.mrb[63].mxu0  ;;  %v8011_v54 = vrot.slane %v7836_v22, %v880_v63 }
 0x217   : > { %v8002_v52 = vadd.f32 %v1482_v30, %v7853_v33  ;;  %v1596_v8 = vadd.f32 %v1595_v56, %v7858_v10  ;;  %v8014_v33 = vrot.slane %v7836_v22, %v884_v5  ;;  %v10905_v22 = vpack.c.bf16 %v7896_v26, %v7889_v9 }
 0x218   : > { %v1718_v15 = vpack.c.bf16 %v7996_v29, %v7989_v25  ;;  %v1726_v42 = vpack.c.bf16 %v1594_v40, %v1590_v32 }
 0x219   : > { %v2120_v50 = vpack.c.bf16 %v1596_v8, %v1592_v62 }
 0x21a   : > { %6051 = vmatprep.subr.bf16.mxu0 %v1726_v42 }
 0x21b   : > { %v1632_v58 = vpop.f32.mrb[32].mxu1  ;;  %6052 = vmatpush3.bf16.xpose.msra.mxu0 %v1726_v42  ;;  %6115 = vmatprep.subr.bf16.mxu1 %v2120_v50  ;;  %v10904_v42 = vpack.c.bf16 %v7876_v18, %v7869_v31 }
 0x21c   : > { %v1634_v10 = vpop.f32.mrb[33].mxu1  ;;  %6116 = vmatpush3.bf16.xpose.msra.mxu1 %v2120_v50  ;;  %v1633_v30 = vadd.f32 %v1632_v58, %v8011_v54  ;;  %v10906_v50 = vpack.c.bf16 %v7881_v36, %v7872_v13  ;;  %v10908_v13 = vpack.c.bf16 %v7916_v53, %v7909_v12 }
 0x21d   : > { %v1636_v56 = vpop.f32.mrb[34].mxu1  ;;  %v1635_v62 = vadd.f32 %v1634_v10, %v8014_v33 }
 0x21e   : > { %v1637_v32 = vadd.f32 %v1636_v56, %v8011_v54  ;;  %v1638_v40 = vpop.f32.mrb[35].mxu1  ;;  %v10907_v56 = vpack.c.bf16 %v7901_v57, %v7892_v14  ;;  %v10909_v14 = vpack.c.bf16 %v7936_v6, %v7929_v2  ;;  %v10910_v57 = vpack.c.bf16 %v7921_v11, %v7912_v41 }
 0x21f   : > { %v1639_v8 = vadd.f32 %v1638_v40, %v8014_v33  ;;  %v10912_v11 = vpack.c.bf16 %v7956_v45, %v7949_v35 }
 0x220   : > { %v1727_v63 = vpack.c.bf16 %v1637_v32, %v1633_v30 }
 0x221   : > { %v8020_v7 = vpack.c.bf16 %v1639_v8, %v1635_v62 }
 0x222   : > { %6054 = vmatmul.mubr.bf16.vlgmr.msra.gmra.mrb[64].mxu0 %v10904_v42  ;;  %6069 = vmatprep.subr.bf16.mxu0 %v1727_v63 }
 0x223   : > { %v1642_v5 = vpop.f32.mrb[36].mxu1  ;;  %6057 = vmatprep.mubr.bf16.mxu0 %v10905_v22  ;;  %6070 = vmatpush3.bf16.msra.mxu0 %v1727_v63  ;;  %v10911_v63 = vpack.c.bf16 %v7941_v43, %v7932_v49  ;;  %v10913_v43 = vpack.c.bf16 %v7976_v60, %v7969_v55  ;;  %v10914_v49 = vpack.c.bf16 %v7961_v59, %v7952_v17 }
 0x224   : > { %6118 = vmatmul.mubr.bf16.vlgmr.msra.gmra.mrb[64].mxu1 %v10906_v50  ;;  %v1644_v58 = vpop.f32.mrb[37].mxu1  ;;  %v1643_v18 = vadd.f32 %v1642_v5, %v8011_v54 }
 0x225   : > { %v1645_v10 = vadd.f32 %v1644_v58, %v8014_v33  ;;  %6121 = vmatprep.mubr.bf16.mxu1 %v10907_v56  ;;  %v1646_v31 = vpop.f32.mrb[38].mxu1 }
 0x226   : > { %v1647_v30 = vadd.f32 %v1646_v31, %v8011_v54  ;;  %v1648_v32 = vpop.f32.mrb[39].mxu1 }
 0x227   : > { %v1649_v9 = vadd.f32 %v1648_v32, %v8014_v33  ;;  %v10917_v32 = vmov 0  }
 0x228   : > { %v1728_v26 = vpack.c.bf16 %v1647_v30, %v1643_v18 }
 0x229   : > { %v8038_v40 = vpack.c.bf16 %v1649_v9, %v1645_v10  ;;  %v10915_v10 = vpack.c.bf16 %v7981_v28, %v7972_v23  ;;  %v10916_v28 = vpack.c.bf16 %v8002_v52, %v7992_v27 }
 0x22a   : > { %6058 = vmatmul.mubr.bf16.gmra.mrb[68].mxu0 %v10908_v13  ;;  %6071 = vmatprep.subr.bf16.mxu0 %v1728_v26 }
 0x22b   : > { %v1652_v36 = vpop.f32.mrb[40].mxu1  ;;  %6061 = vmatprep.mubr.bf16.mxu0 %v10909_v14  ;;  %6072 = vmatpush3.bf16.msra.mxu0 %v1728_v26 }
 0x22c   : > { %6122 = vmatmul.mubr.bf16.gmra.mrb[68].mxu1 %v10910_v57  ;;  %v1654_v62 = vpop.f32.mrb[41].mxu1  ;;  %v1653_v53 = vadd.f32 %v1652_v36, %v8011_v54 }
 0x22d   : > { %v1655_v8 = vadd.f32 %v1654_v62, %v8014_v33  ;;  %6125 = vmatprep.mubr.bf16.mxu1 %v10911_v63  ;;  %v1656_v12 = vpop.f32.mrb[42].mxu1 }
 0x22e   : > { %v1657_v42 = vadd.f32 %v1656_v12, %v8011_v54  ;;  %v1658_v5 = vpop.f32.mrb[43].mxu1 }
 0x22f   : > { %v1659_v2 = vadd.f32 %v1658_v5, %v8014_v33 }
 0x230   : > { %v1729_v6 = vpack.c.bf16 %v1657_v42, %v1653_v53 }
 0x231   : > { %v8056_v22 = vpack.c.bf16 %v1659_v2, %v1655_v8 }
 0x232   : > { %6062 = vmatmul.mubr.bf16.gmra.mrb[72].mxu0 %v10912_v11  ;;  %6073 = vmatprep.subr.bf16.mxu0 %v1729_v6 }
 0x233   : > { %v1662_v41 = vpop.f32.mrb[44].mxu1  ;;  %6065 = vmatprep.mubr.bf16.mxu0 %v10913_v43  ;;  %6074 = vmatpush3.bf16.msra.mxu0 %v1729_v6 }
 0x234   : > { %6126 = vmatmul.mubr.bf16.gmra.mrb[72].mxu1 %v10914_v49  ;;  %v1664_v50 = vpop.f32.mrb[45].mxu1  ;;  %v1663_v45 = vadd.f32 %v1662_v41, %v8011_v54 }
 0x235   : > { %v1665_v58 = vadd.f32 %v1664_v50, %v8014_v33  ;;  %6129 = vmatprep.mubr.bf16.mxu1 %v10915_v10  ;;  %v1666_v35 = vpop.f32.mrb[46].mxu1 }
 0x236   : > { %v1667_v56 = vadd.f32 %v1666_v35, %v8011_v54  ;;  %v1668_v31 = vpop.f32.mrb[47].mxu1 }
 0x237   : > { %v1669_v55 = vadd.f32 %v1668_v31, %v8014_v33 }
 0x238   : > { %v1730_v60 = vpack.c.bf16 %v1667_v56, %v1663_v45 }
 0x239   : > { %v8074_v18 = vpack.c.bf16 %v1669_v55, %v1665_v58 }
 0x23a   : > { %6066 = vmatmul.mubr.bf16.gmra.mrb[76].mxu0 %v1718_v15  ;;  %6075 = vmatprep.subr.bf16.mxu0 %v1730_v60 }
 0x23b   : > { %v1672_v59 = vpop.f32.mrb[48].mxu1  ;;  %6076 = vmatpush3.bf16.msra.mxu0 %v1730_v60 }
 0x23c   : > { %6130 = vmatmul.mubr.bf16.gmra.mrb[76].mxu1 %v10916_v28  ;;  %v1674_v17 = vpop.f32.mrb[49].mxu1  ;;  %v1673_v9 = vadd.f32 %v1672_v59, %v8011_v54 }
 0x23d   : > { %v1675_v23 = vadd.f32 %v1674_v17, %v8014_v33  ;;  %v1676_v30 = vpop.f32.mrb[50].mxu1  ;;  %2805 = vmatprep.mubr.bf16.mxu1 %v10917_v32 }
 0x23e   : > { %v1677_v26 = vadd.f32 %v1676_v30, %v8011_v54  ;;  %v1678_v13 = vpop.f32.mrb[51].mxu1 }
 0x23f   : > { %v1679_v25 = vadd.f32 %v1678_v13, %v8014_v33 }
 0x240   : > { %v1731_v29 = vpack.c.bf16 %v1677_v26, %v1673_v9 }
 0x241   : > { %v8087_v15 = vpack.c.bf16 %v1679_v25, %v1675_v23 }
 0x242   : > { %6077 = vmatprep.subr.bf16.mxu0 %v1731_v29 }
 0x243   : > { %v1682_v36 = vpop.f32.mrb[52].mxu1  ;;  %6078 = vmatpush3.bf16.msra.mxu0 %v1731_v29 }
 0x244   : > { %v1684_v27 = vpop.f32.mrb[53].mxu1  ;;  %v1683_v57 = vadd.f32 %v1682_v36, %v8011_v54 }
 0x245   : > { %v1685_v52 = vadd.f32 %v1684_v27, %v8014_v33  ;;  %v1686_v14 = vpop.f32.mrb[54].mxu1 }
 0x246   : > { %v1687_v62 = vadd.f32 %v1686_v14, %v8011_v54  ;;  %v1688_v8 = vpop.f32.mrb[55].mxu1 }
 0x247   : > { %v1689_v63 = vadd.f32 %v1688_v8, %v8014_v33 }
 0x248   : > { %v1732_v12 = vpack.c.bf16 %v1687_v62, %v1683_v57 }
 0x249   : > { %v8093_v53 = vpack.c.bf16 %v1689_v63, %v1685_v52 }
 0x24a   : > { %6079 = vmatprep.subr.bf16.mxu0 %v1732_v12 }
 0x24b   : > { %v1692_v42 = vpop.f32.mrb[56].mxu1  ;;  %6080 = vmatpush3.bf16.msra.mxu0 %v1732_v12 }
 0x24c   : > { %v1694_v5 = vpop.f32.mrb[57].mxu1  ;;  %v1693_v11 = vadd.f32 %v1692_v42, %v8011_v54 }
 0x24d   : > { %v1695_v2 = vadd.f32 %v1694_v5, %v8014_v33  ;;  %v1696_v6 = vpop.f32.mrb[58].mxu1 }
 0x24e   : > { %v1697_v41 = vadd.f32 %v1696_v6, %v8011_v54  ;;  %v1698_v43 = vpop.f32.mrb[59].mxu1 }
 0x24f   : > { %v1699_v49 = vadd.f32 %v1698_v43, %v8014_v33 }
 0x250   : > { %v1733_v50 = vpack.c.bf16 %v1697_v41, %v1693_v11 }
 0x251   : > { %v8099_v58 = vpack.c.bf16 %v1699_v49, %v1695_v2 }
 0x252   : > { %6081 = vmatprep.subr.bf16.mxu0 %v1733_v50 }
 0x253   : > { %v1702_v10 = vpop.f32.mrb[60].mxu1  ;;  %6082 = vmatpush3.bf16.msra.mxu0 %v1733_v50 }
 0x254   : > { %v1704_v35 = vpop.f32.mrb[61].mxu1  ;;  %v1703_v31 = vadd.f32 %v1702_v10, %v8011_v54 }
 0x255   : > { %v1705_v45 = vadd.f32 %v1704_v35, %v8014_v33  ;;  %v1706_v56 = vpop.f32.mrb[62].mxu1 }
 0x256   : > { %v1707_v55 = vadd.f32 %v1706_v56, %v8011_v54  ;;  %v1708_v60 = vpop.f32.mrb[63].mxu1 }
 0x257   : > { %v1709_v59 = vadd.f32 %v1708_v60, %v8014_v33 }
 0x258   : > { %v1734_v28 = vpack.c.bf16 %v1707_v55, %v1703_v31 }
 0x259   : > { %v8105_v17 = vpack.c.bf16 %v1709_v59, %v1705_v45 }
 0x25a   : > { %6083 = vmatprep.subr.bf16.mxu0 %v1734_v28 }
 0x25b   : > { %6084 = vmatpush3.bf16.msra.mxu0 %v1734_v28 }
 0x25c   : > { %6133 = vmatprep.subr.bf16.mxu0 %v8020_v7 }
 0x2f5   : > { %v8108_v23 = vpop.f32.mrb[64].mxu0 }
 0x2f6   : > { %1836 = vmax.xlane.f32.xlu1 %v8108_v23  ;;  %v8111_v30 = vpop.f32.mrb[65].mxu0 }
 0x2f7   : > { %v8113_v9 = vpop.f32.mrb[64].mxu1  ;;  %1832 = vmax.xlane.f32.xlu0 %v8111_v30  ;;  %v8116_v54 = vpop.f32.mrb[66].mxu0 }
 0x2f8   : > { %v8118_v33 = vpop.f32.mrb[65].mxu1  ;;  %v8120_v26 = vpop.f32.mrb[67].mxu0 }
 0x2f9   : > { %v8122_v13 = vpop.f32.mrb[66].mxu1 }
 0x2fa   : > { %v8124_v25 = vpop.f32.mrb[67].mxu1  ;;  %1838 = vmax.xlane.f32.xlu1 %v8116_v54 }
 0x2fb   : > { %1834 = vmax.xlane.f32.xlu0 %v8120_v26 }
 0x2fd   : > { %v8128_v29 = vpop.f32.mrb[68].mxu0 }
 0x2fe   : > { %v8130_v36 = vpop.f32.mrb[69].mxu0 }
 0x2ff   : > { %v8132_v27 = vpop.f32.mrb[68].mxu1  ;;  %1840 = vmax.xlane.f32.xlu0 %v8130_v36  ;;  %v8135_v52 = vpop.f32.mrb[70].mxu0 }
 0x300   : > { %v8137_v14 = vpop.f32.mrb[69].mxu1  ;;  %v8139_v57 = vpop.f32.mrb[71].mxu0 }
 0x301   : > { %v8141_v62 = vpop.f32.mrb[70].mxu1  ;;  %1842 = vmax.xlane.f32.xlu1 %v8139_v57 }
 0x302   : > { %v8144_v8 = vpop.f32.mrb[71].mxu1 }
 0x303   : > { %1844 = vmax.xlane.f32.xlu0 %v8128_v29 }
 0x305   : > { %1846 = vmax.xlane.f32.xlu1 %v8135_v52  ;;  %v8148_v63 = vpop.f32.mrb[72].mxu0 }
 0x306   : > { %v8150_v12 = vpop.f32.mrb[73].mxu0 }
 0x307   : > { %v8152_v42 = vpop.f32.mrb[72].mxu1  ;;  %1848 = vmax.xlane.f32.xlu0 %v8150_v12  ;;  %v8155_v5 = vpop.f32.mrb[74].mxu0 }
 0x308   : > { %v8157_v2 = vpop.f32.mrb[73].mxu1  ;;  %v8159_v6 = vpop.f32.mrb[75].mxu0 }
 0x309   : > { %v8161_v11 = vpop.f32.mrb[74].mxu1  ;;  %1850 = vmax.xlane.f32.xlu1 %v8159_v6 }
 0x30a   : > { %v8164_v41 = vpop.f32.mrb[75].mxu1 }
 0x30b   : > { %1852 = vmax.xlane.f32.xlu0 %v8148_v63 }
 0x30d   : > { %1854 = vmax.xlane.f32.xlu1 %v8155_v5  ;;  %v8168_v43 = vpop.f32.mrb[76].mxu0 }
 0x30e   : > { %v8170_v49 = vpop.f32.mrb[77].mxu0 }
 0x30f   : > { %v8172_v50 = vpop.f32.mrb[76].mxu1  ;;  %1856 = vmax.xlane.f32.xlu0 %v8170_v49  ;;  %v8175_v10 = vpop.f32.mrb[78].mxu0 }
 0x310   : > { %v8177_v35 = vpop.f32.mrb[77].mxu1  ;;  %v8179_v45 = vpop.f32.mrb[79].mxu0 }
 0x311   : > { %v8181_v56 = vpop.f32.mrb[78].mxu1  ;;  %1858 = vmax.xlane.f32.xlu1 %v8179_v45 }
 0x312   : > { %v8184_v31 = vpop.f32.mrb[79].mxu1 }
 0x313   : > { %1860 = vmax.xlane.f32.xlu0 %v8168_v43 }
 0x315   : > { %1862 = vmax.xlane.f32.xlu1 %v8175_v10 }
 0x317   : > { %2226 = vmax.xlane.f32.xlu0 %v8118_v33 }
 0x319   : > { %2228 = vmax.xlane.f32.xlu1 %v8124_v25 }
 0x31b   : > { %2230 = vmax.xlane.f32.xlu0 %v8113_v9 }
 0x31d   : > { %2232 = vmax.xlane.f32.xlu1 %v8122_v13 }
 0x31f   : > { %2234 = vmax.xlane.f32.xlu0 %v8137_v14 }
 0x321   : > { %2236 = vmax.xlane.f32.xlu1 %v8144_v8 }
 0x323   : > { %2238 = vmax.xlane.f32.xlu0 %v8132_v27 }
 0x325   : > { %2240 = vmax.xlane.f32.xlu1 %v8141_v62 }
 0x327   : > { %2242 = vmax.xlane.f32.xlu0 %v8157_v2 }
 0x329   : > { %2244 = vmax.xlane.f32.xlu1 %v8164_v41 }
 0x32b   : > { %2246 = vmax.xlane.f32.xlu0 %v8152_v42 }
 0x32d   : > { %2248 = vmax.xlane.f32.xlu1 %v8161_v11 }
 0x32f   : > { %2250 = vmax.xlane.f32.xlu0 %v8177_v35 }
 0x331   : > { %2256 = vmax.xlane.f32.xlu1 %v8181_v56 }
 0x333   : > { %2254 = vmax.xlane.f32.xlu0 %v8172_v50 }
 0x335   : > { %2252 = vmax.xlane.f32.xlu1 %v8184_v31 }
 0x383   : > { %v1837_v55 = vpop.xlane.xlu1 %1836 }
 0x384   : > { %v1866_v60 = vsub.f32 %v8108_v23, %v1837_v55  ;;  %v1833_v59 = vpop.xlane.xlu0 %1832 }
 0x385   : > { %v1864_v28 = vsub.f32 %v8111_v30, %v1833_v59 }
 0x386   : > { %v1884_v34 = vmul.f32 1.442695, %v1866_v60 }
 0x387   : > { %v1880_v51 = vmul.f32 1.442695, %v1864_v28  ;;  %v1839_v38 = vpop.xlane.xlu1 %1838 }
 0x388   : > { %v1867_v37 = vsub.f32 %v8116_v54, %v1839_v38  ;;  %v1835_v39 = vpop.xlane.xlu0 %1834 }
 0x389   : > { %6702 = vpow2.f32 %v1880_v51  ;;  %v1865_v20 = vsub.f32 %v8120_v26, %v1835_v39 }
 0x38a   : > { %6704 = vpow2.f32 %v1884_v34  ;;  %v1886_v19 = vmul.f32 1.442695, %v1867_v37 }
 0x38b   : > { %v1882_v16 = vmul.f32 1.442695, %v1865_v20 }
 0x38c   : > { %v1841_v21 = vpop.xlane.xlu0 %1840 }
 0x38d   : > { %6706 = vpow2.f32 %v1882_v16  ;;  %v1868_v1 = vsub.f32 %v8130_v36, %v1841_v21 }
 0x38e   : > { %v1843_v23 = vpop.xlane.xlu1 %1842  ;;  %6708 = vpow2.f32 %v1886_v19 }
 0x38f   : > { %v1888_v55 = vmul.f32 1.442695, %v1868_v1  ;;  %v1869_v30 = vsub.f32 %v8139_v57, %v1843_v23 }
 0x390   : > { %v1845_v59 = vpop.xlane.xlu0 %1844 }
 0x391   : > { %6710 = vpow2.f32 %v1888_v55  ;;  %v1890_v60 = vmul.f32 1.442695, %v1869_v30  ;;  %v1870_v38 = vsub.f32 %v8128_v29, %v1845_v59 }
 0x392   : > { %v1847_v51 = vpop.xlane.xlu1 %1846 }
 0x393   : > { %v8211_v54 = vpop.eup %6702  ;;  %v1892_v20 = vmul.f32 1.442695, %v1870_v38  ;;  %v1871_v34 = vsub.f32 %v8135_v52, %v1847_v51  ;;  %6712 = vpow2.f32 %v1890_v60 }
 0x394   : > { %v1849_v16 = vpop.xlane.xlu0 %1848  ;;  %1912 = vadd.xlane.f32.xlu0 %v8211_v54  ;;  %v8216_v19 = vpop.eup %6704 }
 0x395   : > { %6714 = vpow2.f32 %v1892_v20  ;;  %v1894_v1 = vmul.f32 1.442695, %v1871_v34  ;;  %v1872_v21 = vsub.f32 %v8150_v12, %v1849_v16 }
 0x396   : > { %v1851_v37 = vpop.xlane.xlu1 %1850 }
 0x397   : > { %v8218_v39 = vpop.eup %6706  ;;  %v1896_v26 = vmul.f32 1.442695, %v1872_v21  ;;  %v1873_v29 = vsub.f32 %v8159_v6, %v1851_v37  ;;  %6716 = vpow2.f32 %v1894_v1 }
 0x398   : > { %v1853_v36 = vpop.xlane.xlu0 %1852  ;;  %1916 = vadd.xlane.f32.xlu0 %v8216_v19  ;;  %1914 = vadd.xlane.f32.xlu1 %v8218_v39  ;;  %v8224_v28 = vpop.eup %6708 }
 0x399   : > { %6718 = vpow2.f32 %v1896_v26  ;;  %v1898_v52 = vmul.f32 1.442695, %v1873_v29  ;;  %v1874_v57 = vsub.f32 %v8148_v63, %v1853_v36 }
 0x39a   : > { %v1855_v12 = vpop.xlane.xlu1 %1854 }
 0x39b   : > { %v8226_v23 = vpop.eup %6710  ;;  %v1900_v55 = vmul.f32 1.442695, %v1874_v57  ;;  %v1875_v30 = vsub.f32 %v8155_v5, %v1855_v12  ;;  %6720 = vpow2.f32 %v1898_v52 }
 0x39c   : > { %1920 = vadd.xlane.f32.xlu0 %v8226_v23  ;;  %v1857_v6 = vpop.xlane.xlu0 %1856  ;;  %1918 = vadd.xlane.f32.xlu1 %v8224_v28 }
 0x39d   : > { %6722 = vpow2.f32 %v1900_v55  ;;  %v1902_v59 = vmul.f32 1.442695, %v1875_v30  ;;  %v1876_v60 = vsub.f32 %v8170_v49, %v1857_v6  ;;  %v8232_v38 = vpop.eup %6712 }
 0x39e   : > { %v1859_v63 = vpop.xlane.xlu1 %1858 }
 0x39f   : > { %v8234_v51 = vpop.eup %6714  ;;  %v1904_v20 = vmul.f32 1.442695, %v1876_v60  ;;  %v1877_v34 = vsub.f32 %v8179_v45, %v1859_v63  ;;  %6724 = vpow2.f32 %v1902_v59 }
 0x3a0   : > { %1924 = vadd.xlane.f32.xlu0 %v8234_v51  ;;  %v1861_v5 = vpop.xlane.xlu0 %1860  ;;  %1922 = vadd.xlane.f32.xlu1 %v8232_v38 }
 0x3a1   : > { %6726 = vpow2.f32 %v1904_v20  ;;  %v1906_v16 = vmul.f32 1.442695, %v1877_v34  ;;  %v1878_v1 = vsub.f32 %v8168_v43, %v1861_v5  ;;  %v8240_v21 = vpop.eup %6716 }
 0x3a2   : > { %v1863_v49 = vpop.xlane.xlu1 %1862 }
 0x3a3   : > { %v8242_v37 = vpop.eup %6718  ;;  %v1908_v26 = vmul.f32 1.442695, %v1878_v1  ;;  %v1879_v29 = vsub.f32 %v8175_v10, %v1863_v49  ;;  %6728 = vpow2.f32 %v1906_v16 }
 0x3a4   : > { %1928 = vadd.xlane.f32.xlu0 %v8242_v37  ;;  %v2227_v45 = vpop.xlane.xlu0 %2226  ;;  %1926 = vadd.xlane.f32.xlu1 %v8240_v21 }
 0x3a5   : > { %6730 = vpow2.f32 %v1908_v26  ;;  %v1910_v36 = vmul.f32 1.442695, %v1879_v29  ;;  %v2258_v52 = vsub.f32 %v8118_v33, %v2227_v45  ;;  %v8248_v57 = vpop.eup %6720 }
 0x3a6   : > { %v2229_v43 = vpop.xlane.xlu1 %2228 }
 0x3a7   : > { %v8250_v12 = vpop.eup %6722  ;;  %v2274_v55 = vmul.f32 1.442695, %v2258_v52  ;;  %v2259_v30 = vsub.f32 %v8124_v25, %v2229_v43  ;;  %6732 = vpow2.f32 %v1910_v36 }
 0x3a8   : > { %1932 = vadd.xlane.f32.xlu0 %v8250_v12  ;;  %v2231_v10 = vpop.xlane.xlu0 %2230  ;;  %1930 = vadd.xlane.f32.xlu1 %v8248_v57 }
 0x3a9   : > { %6734 = vpow2.f32 %v2274_v55  ;;  %v2276_v6 = vmul.f32 1.442695, %v2259_v30  ;;  %v2260_v59 = vsub.f32 %v8113_v9, %v2231_v10  ;;  %v8256_v60 = vpop.eup %6724 }
 0x3aa   : > { %v2233_v33 = vpop.xlane.xlu1 %2232 }
 0x3ab   : > { %v8258_v63 = vpop.eup %6726  ;;  %v2278_v20 = vmul.f32 1.442695, %v2260_v59  ;;  %v2261_v34 = vsub.f32 %v8122_v13, %v2233_v33  ;;  %6736 = vpow2.f32 %v2276_v6 }
 0x3ac   : > { %1936 = vadd.xlane.f32.xlu0 %v8258_v63  ;;  %v2235_v25 = vpop.xlane.xlu0 %2234  ;;  %1934 = vadd.xlane.f32.xlu1 %v8256_v60 }
 0x3ad   : > { %6738 = vpow2.f32 %v2278_v20  ;;  %v2280_v5 = vmul.f32 1.442695, %v2261_v34  ;;  %v2262_v16 = vsub.f32 %v8137_v14, %v2235_v25  ;;  %v8264_v1 = vpop.eup %6728 }
 0x3ae   : > { %v2237_v9 = vpop.xlane.xlu1 %2236 }
 0x3af   : > { %v8266_v49 = vpop.eup %6730  ;;  %v2282_v26 = vmul.f32 1.442695, %v2262_v16  ;;  %v2263_v29 = vsub.f32 %v8144_v8, %v2237_v9  ;;  %6740 = vpow2.f32 %v2280_v5 }
 0x3b0   : > { %1940 = vadd.xlane.f32.xlu0 %v8266_v49  ;;  %v2239_v13 = vpop.xlane.xlu0 %2238  ;;  %1938 = vadd.xlane.f32.xlu1 %v8264_v1 }
 0x3b1   : > { %6742 = vpow2.f32 %v2282_v26  ;;  %v2284_v45 = vmul.f32 1.442695, %v2263_v29  ;;  %v2264_v36 = vsub.f32 %v8132_v27, %v2239_v13  ;;  %v8272_v52 = vpop.eup %6732 }
 0x3b2   : > { %v2241_v14 = vpop.xlane.xlu1 %2240 }
 0x3b3   : > { %v8274_v43 = vpop.eup %6734  ;;  %v2286_v55 = vmul.f32 1.442695, %v2264_v36  ;;  %v2265_v30 = vsub.f32 %v8141_v62, %v2241_v14  ;;  %6744 = vpow2.f32 %v2284_v45 }
 0x3b4   : > { %2306 = vadd.xlane.f32.xlu0 %v8274_v43  ;;  %v2243_v8 = vpop.xlane.xlu0 %2242  ;;  %1942 = vadd.xlane.f32.xlu1 %v8272_v52 }
 0x3b5   : > { %6746 = vpow2.f32 %v2286_v55  ;;  %v2288_v10 = vmul.f32 1.442695, %v2265_v30  ;;  %v2266_v6 = vsub.f32 %v8157_v2, %v2243_v8  ;;  %v8280_v59 = vpop.eup %6736 }
 0x3b6   : > { %v2245_v27 = vpop.xlane.xlu1 %2244 }
 0x3b7   : > { %v8282_v33 = vpop.eup %6738  ;;  %v2290_v20 = vmul.f32 1.442695, %v2266_v6  ;;  %v2267_v34 = vsub.f32 %v8164_v41, %v2245_v27  ;;  %6748 = vpow2.f32 %v2288_v10 }
 0x3b8   : > { %2310 = vadd.xlane.f32.xlu0 %v8282_v33  ;;  %v2247_v62 = vpop.xlane.xlu0 %2246  ;;  %2308 = vadd.xlane.f32.xlu1 %v8280_v59 }
 0x3b9   : > { %6750 = vpow2.f32 %v2290_v20  ;;  %v2292_v25 = vmul.f32 1.442695, %v2267_v34  ;;  %v2268_v5 = vsub.f32 %v8152_v42, %v2247_v62  ;;  %v8288_v16 = vpop.eup %6740 }
 0x3ba   : > { %v2249_v2 = vpop.xlane.xlu1 %2248 }
 0x3bb   : > { %v8290_v9 = vpop.eup %6742  ;;  %v2294_v26 = vmul.f32 1.442695, %v2268_v5  ;;  %v2269_v29 = vsub.f32 %v8161_v11, %v2249_v2  ;;  %6752 = vpow2.f32 %v2292_v25 }
 0x3bc   : > { %2314 = vadd.xlane.f32.xlu0 %v8290_v9  ;;  %v2251_v41 = vpop.xlane.xlu0 %2250  ;;  %2312 = vadd.xlane.f32.xlu1 %v8288_v16 }
 0x3bd   : > { %6754 = vpow2.f32 %v2294_v26  ;;  %v2296_v13 = vmul.f32 1.442695, %v2269_v29  ;;  %v2270_v45 = vsub.f32 %v8177_v35, %v2251_v41  ;;  %v8296_v36 = vpop.eup %6744  ;;  %v6462_v29 = vld [vmem:[%s10785_s5] ss:$8 sps:$4 sm:$0xff]   ;;  %v6464_v41 = vld [vmem:[%s10785_s5 + $0x4] ss:$8 sps:$4 sm:$0xff]  }
 0x3be   : > { %v2257_v42 = vpop.xlane.xlu1 %2256  ;;  %2773 = vmatprep.subr.bf16.mxu1 %v6464_v41 }
 0x3bf   : > { %v8298_v14 = vpop.eup %6746  ;;  %v2298_v55 = vmul.f32 1.442695, %v2270_v45  ;;  %6756 = vpow2.f32 %v2296_v13  ;;  %v2273_v35 = vsub.f32 %v8181_v56, %v2257_v42  ;;  %v6467_v13 = vld [vmem:[%s10785_s5 + $0x14] ss:$8 sps:$4 sm:$0xff]   ;;  %2774 = vmatpush1.bf16.msra.mxu1 %v6462_v29  ;;  %v6465_v45 = vld [vmem:[%s10785_s5 + $0x10] ss:$8 sps:$4 sm:$0xff]  }
 0x3c0   : > { %2318 = vadd.xlane.f32.xlu0 %v8298_v14  ;;  %v2255_v11 = vpop.xlane.xlu0 %2254  ;;  %2316 = vadd.xlane.f32.xlu1 %v8296_v36  ;;  %v6470_v42 = vld [vmem:[%s10785_s5 + $0x24] ss:$8 sps:$4 sm:$0xff]  }
 0x3c1   : > { %6758 = vpow2.f32 %v2298_v55  ;;  %v2272_v30 = vsub.f32 %v8172_v50, %v2255_v11  ;;  %v8303_v8 = vpop.eup %6748  ;;  %v2304_v50 = vmul.f32 1.442695, %v2273_v35  ;;  %2775 = vmatprep.subr.bf16.mxu1 %v6467_v13  ;;  %v6468_v55 = vld [vmem:[%s10785_s5 + $0x20] ss:$8 sps:$4 sm:$0xff]   ;;  %v6473_v11 = vld [vmem:[%s10785_s5 + $0x34] ss:$8 sps:$4 sm:$0xff]  }
 0x3c2   : > { %v2253_v10 = vpop.xlane.xlu1 %2252  ;;  %v6474_v35 = vld [vmem:[%s10785_s5 + $0x40] ss:$8 sps:$4 sm:$0xff]  }
 0x3c3   : > { %v8305_v6 = vpop.eup %6750  ;;  %v2302_v27 = vmul.f32 1.442695, %v2272_v30  ;;  %v2271_v20 = vsub.f32 %v8184_v31, %v2253_v10  ;;  %2776 = vmatpush1.bf16.msra.mxu1 %v6465_v45  ;;  %v6471_v30 = vld [vmem:[%s10785_s5 + $0x30] ss:$8 sps:$4 sm:$0xff]   ;;  %v6476_v10 = vld [vmem:[%s10785_s5 + $0x44] ss:$8 sps:$4 sm:$0xff]  }
 0x3c4   : > { %2322 = vadd.xlane.f32.xlu0 %v8305_v6  ;;  %2320 = vadd.xlane.f32.xlu1 %v8303_v8 }
 0x3c5   : > { %6760 = vpow2.f32 %v2302_v27  ;;  %v2300_v34 = vmul.f32 1.442695, %v2271_v20  ;;  %v8311_v62 = vpop.eup %6752  ;;  %2777 = vmatprep.subr.bf16.mxu1 %v6470_v42  ;;  %v6479_v27 = vld [vmem:[%s10785_s5 + $0x54] ss:$8 sps:$4 sm:$0xff]   ;;  %v6477_v20 = vld [vmem:[%s10785_s5 + $0x50] ss:$8 sps:$4 sm:$0xff]  }
 0x3c7   : > { %v8313_v25 = vpop.eup %6754  ;;  %6762 = vpow2.f32 %v2300_v34  ;;  %2778 = vmatpush1.bf16.msra.mxu1 %v6468_v55  ;;  %v6482_v34 = vld [vmem:[%s10785_s5 + $0x64] ss:$8 sps:$4 sm:$0xff]  }
 0x3c8   : > { %2326 = vadd.xlane.f32.xlu0 %v8313_v25  ;;  %2324 = vadd.xlane.f32.xlu1 %v8311_v62  ;;  %6764 = vpow2.f32 %v2304_v50  ;;  %v6480_v50 = vld [vmem:[%s10785_s5 + $0x60] ss:$8 sps:$4 sm:$0xff]  }
 0x3c9   : > { %v8317_v56 = vpop.eup %6756  ;;  %2779 = vmatprep.subr.bf16.mxu1 %v6473_v11 }
 0x3cb   : > { %v8319_v5 = vpop.eup %6758  ;;  %2780 = vmatpush1.bf16.msra.mxu1 %v6471_v30 }
 0x3cc   : > { %2330 = vadd.xlane.f32.xlu0 %v8319_v5  ;;  %2328 = vadd.xlane.f32.xlu1 %v8317_v56 }
 0x3cd   : > { %2781 = vmatprep.subr.bf16.mxu1 %v6476_v10 }
 0x3cf   : > { %v8323_v31 = vpop.eup %6760  ;;  %2782 = vmatpush1.bf16.msra.mxu1 %v6474_v35 }
 0x3d0   : > { %2334 = vadd.xlane.f32.xlu0 %v8323_v31  ;;  %2783 = vmatprep.subr.bf16.mxu1 %v6479_v27 }
 0x3d1   : > { %v8326_v2 = vpop.eup %6762 }
 0x3d2   : > { %2332 = vadd.xlane.f32.xlu1 %v8326_v2  ;;  %v8329_v26 = vpop.eup %6764 }
 0x3d3   : > { %2784 = vmatpush1.bf16.msra.mxu1 %v6477_v20 }
 0x3d4   : > { %2785 = vmatprep.subr.bf16.mxu1 %v6482_v34 }
 0x3d6   : > { %2336 = vadd.xlane.f32.xlu1 %v8329_v26 }
 0x3d7   : > { %2786 = vmatpush1.bf16.msra.mxu1 %v6480_v50 }
 0x421   : > { %v1913_v29 = vpop.xlane.xlu0 %1912 }
 0x422   : > { %6766 = vrcp.f32 %v1913_v29 }
 0x425   : > { %v1917_v41 = vpop.xlane.xlu0 %1916  ;;  %v1915_v13 = vpop.xlane.xlu1 %1914 }
 0x426   : > { %6768 = vrcp.f32 %v1915_v13 }
 0x427   : > { %6770 = vrcp.f32 %v1917_v41 }
 0x429   : > { %v1921_v45 = vpop.xlane.xlu0 %1920  ;;  %v1919_v42 = vpop.xlane.xlu1 %1918 }
 0x42a   : > { %6772 = vrcp.f32 %v1919_v42 }
 0x42b   : > { %6774 = vrcp.f32 %v1921_v45 }
 0x42c   : > { %v6767_v30 = vpop.eup %6766 }
 0x42d   : > { %v1925_v55 = vpop.xlane.xlu0 %1924  ;;  %v1923_v11 = vpop.xlane.xlu1 %1922  ;;  %v1960_v20 = vmul.f32 %v6767_v30, %v8211_v54 }
 0x42e   : > { %6776 = vrcp.f32 %v1923_v11 }
 0x42f   : > { %6778 = vrcp.f32 %v1925_v55 }
 0x430   : > { %v6769_v10 = vpop.eup %6768 }
 0x431   : > { %v1929_v35 = vpop.xlane.xlu0 %1928  ;;  %v1927_v27 = vpop.xlane.xlu1 %1926  ;;  %v1961_v34 = vmul.f32 %v6769_v10, %v8218_v39 }
 0x432   : > { %v6771_v50 = vpop.eup %6770  ;;  %6780 = vrcp.f32 %v1927_v27 }
 0x433   : > { %v1976_v29 = vpack.c.bf16 %v1961_v34, %v1960_v20  ;;  %6782 = vrcp.f32 %v1929_v35  ;;  %v1962_v45 = vmul.f32 %v6771_v50, %v8216_v19 }
 0x434   : > { %v6773_v41 = vpop.eup %6772 }
 0x435   : > { %v1933_v13 = vpop.xlane.xlu0 %1932  ;;  %v1931_v42 = vpop.xlane.xlu1 %1930  ;;  %v1963_v61 = vmul.f32 %v6773_v41, %v8224_v28  ;;  %6085 = vmatprep.mubr.bf16.mxu0 %v1976_v29 }
 0x436   : > { %v6775_v11 = vpop.eup %6774  ;;  %6784 = vrcp.f32 %v1931_v42 }
 0x437   : > { %v1977_v55 = vpack.c.bf16 %v1963_v61, %v1962_v45  ;;  %6786 = vrcp.f32 %v1933_v13  ;;  %v1964_v39 = vmul.f32 %v6775_v11, %v8226_v23 }
 0x438   : > { %v6777_v0 = vpop.eup %6776 }
 0x439   : > { %v1937_v54 = vpop.xlane.xlu0 %1936  ;;  %v1935_v30 = vpop.xlane.xlu1 %1934  ;;  %6086 = vmatmul.mubr.bf16.vlgmr.msra.gmra.mrb[80].mxu0 %v1977_v55  ;;  %v1965_v10 = vmul.f32 %v6777_v0, %v8232_v38 }
 0x43a   : > { %v6779_v35 = vpop.eup %6778  ;;  %6134 = vmatpush3.bf16.msra.mxu0 %v8020_v7  ;;  %6788 = vrcp.f32 %v1935_v30 }
 0x43b   : > { %6135 = vmatprep.subr.bf16.mxu0 %v8038_v40  ;;  %v1978_v19 = vpack.c.bf16 %v1965_v10, %v1964_v39  ;;  %6790 = vrcp.f32 %v1937_v54  ;;  %v1966_v20 = vmul.f32 %v6779_v35, %v8234_v51 }
 0x43c   : > { %v6781_v28 = vpop.eup %6780 }
 0x43d   : > { %v1941_v27 = vpop.xlane.xlu0 %1940  ;;  %v1939_v61 = vpop.xlane.xlu1 %1938  ;;  %6089 = vmatprep.mubr.bf16.mxu0 %v1978_v19  ;;  %v1967_v34 = vmul.f32 %v6781_v28, %v8240_v21 }
 0x43e   : > { %v6783_v50 = vpop.eup %6782  ;;  %6136 = vmatpush3.bf16.msra.mxu0 %v8038_v40  ;;  %6792 = vrcp.f32 %v1939_v61 }
 0x43f   : > { %6137 = vmatprep.subr.bf16.mxu0 %v8056_v22  ;;  %v1979_v0 = vpack.c.bf16 %v1967_v34, %v1966_v20  ;;  %6794 = vrcp.f32 %v1941_v27  ;;  %v1968_v29 = vmul.f32 %v6783_v50, %v8242_v37 }
 0x440   : > { %v6785_v7 = vpop.eup %6784 }
 0x441   : > { %v2307_v23 = vpop.xlane.xlu0 %2306  ;;  %v1943_v38 = vpop.xlane.xlu1 %1942  ;;  %6090 = vmatmul.mubr.bf16.gmra.mrb[84].mxu0 %v1979_v0  ;;  %v1969_v41 = vmul.f32 %v6785_v7, %v8248_v57 }
 0x442   : > { %v6787_v13 = vpop.eup %6786  ;;  %6138 = vmatpush3.bf16.msra.mxu0 %v8056_v22  ;;  %6796 = vrcp.f32 %v1943_v38 }
 0x443   : > { %6139 = vmatprep.subr.bf16.mxu0 %v8074_v18  ;;  %v1980_v40 = vpack.c.bf16 %v1969_v41, %v1968_v29  ;;  %6798 = vrcp.f32 %v2307_v23  ;;  %v1970_v45 = vmul.f32 %v6787_v13, %v8250_v12 }
 0x444   : > { %v6789_v51 = vpop.eup %6788 }
 0x445   : > { %v2311_v21 = vpop.xlane.xlu0 %2310  ;;  %v2309_v42 = vpop.xlane.xlu1 %2308  ;;  %6093 = vmatprep.mubr.bf16.mxu0 %v1980_v40  ;;  %v1971_v11 = vmul.f32 %v6789_v51, %v8256_v60 }
 0x446   : > { %v6791_v55 = vpop.eup %6790  ;;  %6140 = vmatpush3.bf16.msra.mxu0 %v8074_v18  ;;  %6800 = vrcp.f32 %v2309_v42 }
 0x447   : > { %6141 = vmatprep.subr.bf16.mxu0 %v8087_v15  ;;  %v1981_v22 = vpack.c.bf16 %v1971_v11, %v1970_v45  ;;  %6802 = vrcp.f32 %v2311_v21  ;;  %v1972_v30 = vmul.f32 %v6791_v55, %v8258_v63 }
 0x448   : > { %v6793_v37 = vpop.eup %6792 }
 0x449   : > { %v2315_v57 = vpop.xlane.xlu0 %2314  ;;  %v2313_v54 = vpop.xlane.xlu1 %2312  ;;  %6094 = vmatmul.mubr.bf16.gmra.mrb[88].mxu0 %v1981_v22  ;;  %v1973_v39 = vmul.f32 %v6793_v37, %v8264_v1 }
 0x44a   : > { %v6795_v10 = vpop.eup %6794  ;;  %6142 = vmatpush3.bf16.msra.mxu0 %v8087_v15  ;;  %6804 = vrcp.f32 %v2313_v54 }
 0x44b   : > { %6143 = vmatprep.subr.bf16.mxu0 %v8093_v53  ;;  %v1982_v18 = vpack.c.bf16 %v1973_v39, %v1972_v30  ;;  %6806 = vrcp.f32 %v2315_v57  ;;  %v1974_v19 = vmul.f32 %v6795_v10, %v8266_v49 }
 0x44c   : > { %v6797_v12 = vpop.eup %6796 }
 0x44d   : > { %v2319_v60 = vpop.xlane.xlu0 %2318  ;;  %v2317_v35 = vpop.xlane.xlu1 %2316  ;;  %6097 = vmatprep.mubr.bf16.mxu0 %v1982_v18  ;;  %v1975_v28 = vmul.f32 %v6797_v12, %v8272_v52 }
 0x44e   : > { %v6799_v27 = vpop.eup %6798  ;;  %6144 = vmatpush3.bf16.msra.mxu0 %v8093_v53  ;;  %6808 = vrcp.f32 %v2317_v35 }
 0x44f   : > { %6145 = vmatprep.subr.bf16.mxu0 %v8099_v58  ;;  %v1983_v15 = vpack.c.bf16 %v1975_v28, %v1974_v19  ;;  %6810 = vrcp.f32 %v2319_v60  ;;  %v2354_v20 = vmul.f32 %v6799_v27, %v8274_v43  ;;  %v6492_v27 = vld [vmem:[%s10785_s5 + $0xa0] ss:$8 sps:$4 sm:$0xff]  }
 0x450   : > { %v6801_v63 = vpop.eup %6800 }
 0x451   : > { %v2323_v1 = vpop.xlane.xlu0 %2322  ;;  %v2321_v61 = vpop.xlane.xlu1 %2320  ;;  %6098 = vmatmul.mubr.bf16.gmra.mrb[92].mxu0 %v1983_v15  ;;  %v2355_v34 = vmul.f32 %v6801_v63, %v8280_v59  ;;  %v6494_v15 = vld [vmem:[%s10785_s5 + $0xa4] ss:$8 sps:$4 sm:$0xff]   ;;  %v6497_v63 = vld [vmem:[%s10785_s5 + $0xb4] ss:$8 sps:$4 sm:$0xff]  }
 0x452   : > { %v6803_v50 = vpop.eup %6802  ;;  %6146 = vmatpush3.bf16.msra.mxu0 %v8099_v58  ;;  %6812 = vrcp.f32 %v2321_v61  ;;  %v6498_v61 = vld [vmem:[%s10785_s5 + $0xc0] ss:$8 sps:$4 sm:$0xff]  }
 0x453   : > { %6147 = vmatprep.subr.bf16.mxu0 %v8105_v17  ;;  %v2370_v53 = vpack.c.bf16 %v2355_v34, %v2354_v20  ;;  %6814 = vrcp.f32 %v2323_v1  ;;  %v2356_v7 = vmul.f32 %v6803_v50, %v8282_v33  ;;  %v6495_v1 = vld [vmem:[%s10785_s5 + $0xb0] ss:$8 sps:$4 sm:$0xff]   ;;  %v6500_v20 = vld [vmem:[%s10785_s5 + $0xc4] ss:$8 sps:$4 sm:$0xff]   ;;  %v6503_v34 = vld [vmem:[%s10785_s5 + $0xd4] ss:$8 sps:$4 sm:$0xff]  }
 0x454   : > { %v6805_v49 = vpop.eup %6804  ;;  %v6501_v50 = vld [vmem:[%s10785_s5 + $0xd0] ss:$8 sps:$4 sm:$0xff]  }
 0x455   : > { %v2327_v52 = vpop.xlane.xlu0 %2326  ;;  %v2325_v0 = vpop.xlane.xlu1 %2324  ;;  %v2357_v23 = vmul.f32 %v6805_v49, %v8288_v16  ;;  %6149 = vmatprep.mubr.bf16.mxu0 %v2370_v53  ;;  %v6504_v53 = vld [vmem:[%s10785_s5 + $0xe0] ss:$8 sps:$4 sm:$0xff]   ;;  %v6506_v49 = vld [vmem:[%s10785_s5 + $0xe4] ss:$8 sps:$4 sm:$0xff]  }
 0x456   : > { %v6807_v38 = vpop.eup %6806  ;;  %6148 = vmatpush3.bf16.msra.mxu0 %v8105_v17  ;;  %6816 = vrcp.f32 %v2325_v0  ;;  %v6507_v0 = vld [vmem:[%s10785_s5 + $0xf0] ss:$8 sps:$4 sm:$0xff]  }
 0x457   : > { %v2371_v43 = vpack.c.bf16 %v2357_v23, %v2356_v7  ;;  %6818 = vrcp.f32 %v2327_v52  ;;  %v2358_v41 = vmul.f32 %v6807_v38, %v8290_v9  ;;  %v6509_v52 = vld [vmem:[%s10785_s5 + $0xf4] ss:$8 sps:$4 sm:$0xff]  }
 0x458   : > { %v6809_v59 = vpop.eup %6808 }
 0x459   : > { %v2331_v58 = vpop.xlane.xlu0 %2330  ;;  %v2329_v29 = vpop.xlane.xlu1 %2328  ;;  %6150 = vmatmul.mubr.bf16.vlgmr.msra.gmra.mrb[96].mxu0 %v2371_v43  ;;  %v2359_v13 = vmul.f32 %v6809_v59, %v8296_v36 }
 0x45a   : > { %v6811_v40 = vpop.eup %6810  ;;  %6820 = vrcp.f32 %v2329_v29 }
 0x45b   : > { %v2372_v33 = vpack.c.bf16 %v2359_v13, %v2358_v41  ;;  %6822 = vrcp.f32 %v2331_v58  ;;  %v2360_v16 = vmul.f32 %v6811_v40, %v8298_v14 }
 0x45c   : > { %v6813_v51 = vpop.eup %6812 }
 0x45d   : > { %6153 = vmatprep.mubr.bf16.mxu0 %v2372_v33  ;;  %v2361_v17 = vmul.f32 %v6813_v51, %v8303_v8  ;;  %v6815_v21 = vpop.eup %6814  ;;  %v2335_v42 = vpop.xlane.xlu0 %2334 }
 0x45e   : > { %v2362_v9 = vmul.f32 %v6815_v21, %v8305_v6 }
 0x45f   : > { %v2333_v45 = vpop.xlane.xlu1 %2332  ;;  %v2373_v11 = vpack.c.bf16 %v2361_v17, %v2360_v16 }
 0x460   : > { %6824 = vrcp.f32 %v2333_v45  ;;  %v6817_v55 = vpop.eup %6816 }
 0x461   : > { %6826 = vrcp.f32 %v2335_v42  ;;  %6154 = vmatmul.mubr.bf16.gmra.mrb[100].mxu0 %v2373_v11  ;;  %v2363_v36 = vmul.f32 %v6817_v55, %v8311_v62  ;;  %v6819_v22 = vpop.eup %6818 }
 0x462   : > { %v2364_v14 = vmul.f32 %v6819_v22, %v8313_v25  ;;  %v6485_v25 = vld [vmem:[%s10785_s5 + $0x74] ss:$8 sps:$4 sm:$0xff]  }
 0x463   : > { %v2337_v37 = vpop.xlane.xlu1 %2336  ;;  %v2374_v57 = vpack.c.bf16 %v2363_v36, %v2362_v9  ;;  %2787 = vmatprep.subr.bf16.mxu1 %v6485_v25 }
 0x464   : > { %6828 = vrcp.f32 %v2337_v37  ;;  %v6821_v54 = vpop.eup %6820 }
 0x465   : > { %6157 = vmatprep.mubr.bf16.mxu0 %v2374_v57  ;;  %v2365_v8 = vmul.f32 %v6821_v54, %v8317_v56  ;;  %v6823_v30 = vpop.eup %6822  ;;  %v6483_v56 = vld [vmem:[%s10785_s5 + $0x70] ss:$8 sps:$4 sm:$0xff]  }
 0x466   : > { %v2366_v18 = vmul.f32 %v6823_v30, %v8319_v5  ;;  %2788 = vmatpush1.bf16.msra.mxu1 %v6483_v56  ;;  %v6486_v5 = vld [vmem:[%s10785_s5 + $0x80] ss:$8 sps:$4 sm:$0xff]  }
 0x467   : > { %v2375_v39 = vpack.c.bf16 %v2365_v8, %v2364_v14 }
 0x469   : > { %6158 = vmatmul.mubr.bf16.gmra.mrb[104].mxu0 %v2375_v39 }
 0x46a   : > { %v6825_v10 = vpop.eup %6824 }
 0x46b   : > { %v2367_v6 = vmul.f32 %v6825_v10, %v8326_v2  ;;  %v6827_v12 = vpop.eup %6826  ;;  %v6491_v2 = vld [vmem:[%s10785_s5 + $0x94] ss:$8 sps:$4 sm:$0xff]  }
 0x46c   : > { %v2368_v35 = vmul.f32 %v6827_v12, %v8323_v31  ;;  %v6488_v31 = vld [vmem:[%s10785_s5 + $0x84] ss:$8 sps:$4 sm:$0xff]  }
 0x46d   : > { %v2376_v62 = vpack.c.bf16 %v2367_v6, %v2366_v18  ;;  %2580 = vmatprep.subr.bf16.mxu0 %v6488_v31 }
 0x46e   : > { %v6829_v60 = vpop.eup %6828  ;;  %2581 = vmatpush1.bf16.msra.mxu0 %v6486_v5 }
 0x46f   : > { %6161 = vmatprep.mubr.bf16.mxu0 %v2376_v62  ;;  %v2369_v19 = vmul.f32 %v6829_v60, %v8329_v26  ;;  %v6489_v26 = vld [vmem:[%s10785_s5 + $0x90] ss:$8 sps:$4 sm:$0xff]   ;;  %2582 = vmatprep.subr.bf16.mxu0 %v6491_v2 }
 0x471   : > { %v2377_v28 = vpack.c.bf16 %v2369_v19, %v2368_v35 }
 0x472   : > { %2583 = vmatpush1.bf16.msra.mxu0 %v6489_v26 }
 0x473   : > { %6162 = vmatmul.mubr.bf16.gmra.mrb[108].mxu0 %v2377_v28  ;;  %2584 = vmatprep.subr.bf16.mxu0 %v6494_v15 }
 0x474   : > { %2612 = vmatprep.mubr.bf16.mxu0 %v10917_v32 }
 0x476   : > { %2585 = vmatpush1.bf16.msra.mxu0 %v6492_v27 }
 0x477   : > { %2586 = vmatprep.subr.bf16.mxu0 %v6497_v63 }
 0x47a   : > { %2587 = vmatpush1.bf16.msra.mxu0 %v6495_v1 }
 0x47b   : > { %2588 = vmatprep.subr.bf16.mxu0 %v6500_v20 }
 0x47e   : > { %2589 = vmatpush1.bf16.msra.mxu0 %v6498_v61 }
 0x47f   : > { %2590 = vmatprep.subr.bf16.mxu0 %v6503_v34 }
 0x482   : > { %2591 = vmatpush1.bf16.msra.mxu0 %v6501_v50 }
 0x483   : > { %2592 = vmatprep.subr.bf16.mxu0 %v6506_v49 }
 0x486   : > { %2593 = vmatpush1.bf16.msra.mxu0 %v6504_v53 }
 0x487   : > { %2594 = vmatprep.subr.bf16.mxu0 %v6509_v52 }
 0x48a   : > { %2595 = vmatpush1.bf16.msra.mxu0 %v6507_v0 }
 0x50c   : > { %v6087_v7 = vpop.f32.mrb[80].mxu0 }
 0x50d   : > { %v2018_v23 = vpop.f32.mrb[81].mxu0 }
 0x50e   : > { %v6088_v38 = vpop.f32.mrb[82].mxu0 }
 0x50f   : > { %v2082_v43 = vpack.c.bf16 %v6088_v38, %v6087_v7  ;;  %v2021_v59 = vpop.f32.mrb[83].mxu0 }
 0x510   : > { %v2081_v58 = vpack.c.bf16 %v2021_v59, %v2018_v23 }
 0x512   : > { %2806 = vmatmul.mubr.bf16.vlgmr.msra.gmra.mrb[80].mxu1 %v2081_v58 }
 0x513   : > { %2815 = vmatprep.mubr.bf16.mxu1 %v10917_v32 }
 0x514   : > { %v6091_v29 = vpop.f32.mrb[84].mxu0 }
 0x515   : > { %v2034_v41 = vpop.f32.mrb[85].mxu0 }
 0x516   : > { %v6092_v13 = vpop.f32.mrb[86].mxu0 }
 0x517   : > { %v2084_v40 = vpack.c.bf16 %v6092_v13, %v6091_v29  ;;  %v2037_v33 = vpop.f32.mrb[87].mxu0 }
 0x518   : > { %v2083_v51 = vpack.c.bf16 %v2037_v33, %v2034_v41  ;;  %v2886_v41 = vld [vmem:[%s10786_s6] sm:$0x3] }
 0x519   : > { %v8506_v13 = vrot.slane %v2886_v41, %v7830_v4 }
 0x51a   : > { %2816 = vmatmul.mubr.bf16.gmra.mrb[84].mxu1 %v2082_v43 }
 0x51b   : > { %2825 = vmatprep.mubr.bf16.mxu1 %v10917_v32 }
 0x51c   : > { %v6095_v16 = vpop.f32.mrb[88].mxu0 }
 0x51d   : > { %v2050_v17 = vpop.f32.mrb[89].mxu0 }
 0x51e   : > { %v6096_v21 = vpop.f32.mrb[90].mxu0 }
 0x51f   : > { %v2086_v42 = vpack.c.bf16 %v6096_v21, %v6095_v16  ;;  %v2053_v45 = vpop.f32.mrb[91].mxu0 }
 0x520   : > { %v2085_v11 = vpack.c.bf16 %v2053_v45, %v2050_v17 }
 0x522   : > { %2826 = vmatmul.mubr.bf16.gmra.mrb[88].mxu1 %v2083_v51  ;;  %v8511_v51 = vrot.slane %v2886_v41, %v7839_v24 }
 0x523   : > { %2835 = vmatprep.mubr.bf16.mxu1 %v10917_v32 }
 0x524   : > { %v6099_v55 = vpop.f32.mrb[92].mxu0 }
 0x525   : > { %v2066_v9 = vpop.f32.mrb[93].mxu0 }
 0x526   : > { %v6100_v36 = vpop.f32.mrb[94].mxu0 }
 0x527   : > { %v2088_v22 = vpack.c.bf16 %v6100_v36, %v6099_v55  ;;  %v2069_v37 = vpop.f32.mrb[95].mxu0 }
 0x528   : > { %v2087_v57 = vpack.c.bf16 %v2069_v37, %v2066_v9 }
 0x52a   : > { %2836 = vmatmul.mubr.bf16.gmra.mrb[92].mxu1 %v2084_v40 }
 0x52b   : > { %2845 = vmatprep.mubr.bf16.mxu1 %v10917_v32 }
 0x52c   : > { %v6151_v54 = vpop.f32.mrb[96].mxu0 }
 0x52d   : > { %v2412_v14 = vpop.f32.mrb[97].mxu0 }
 0x52e   : > { %v6152_v8 = vpop.f32.mrb[98].mxu0 }
 0x52f   : > { %v2476_v30 = vpack.c.bf16 %v6152_v8, %v6151_v54  ;;  %v2415_v39 = vpop.f32.mrb[99].mxu0 }
 0x530   : > { %v2475_v10 = vpack.c.bf16 %v2415_v39, %v2412_v14 }
 0x532   : > { %2613 = vmatmul.mubr.bf16.vlgmr.msra.gmra.mrb[112].mxu0 %v2475_v10  ;;  %2846 = vmatmul.mubr.bf16.gmra.mrb[96].mxu1 %v2085_v11 }
 0x533   : > { %2622 = vmatprep.mubr.bf16.mxu0 %v10917_v32  ;;  %2855 = vmatprep.mubr.bf16.mxu1 %v10917_v32 }
 0x534   : > { %v6155_v18 = vpop.f32.mrb[100].mxu0 }
 0x535   : > { %v2428_v6 = vpop.f32.mrb[101].mxu0 }
 0x536   : > { %v6156_v12 = vpop.f32.mrb[102].mxu0 }
 0x537   : > { %v2478_v62 = vpack.c.bf16 %v6156_v12, %v6155_v18  ;;  %v2431_v60 = vpop.f32.mrb[103].mxu0 }
 0x538   : > { %v2477_v35 = vpack.c.bf16 %v2431_v60, %v2428_v6 }
 0x53a   : > { %2623 = vmatmul.mubr.bf16.gmra.mrb[116].mxu0 %v2476_v30  ;;  %2856 = vmatmul.mubr.bf16.gmra.mrb[100].mxu1 %v2086_v42 }
 0x53b   : > { %2632 = vmatprep.mubr.bf16.mxu0 %v10917_v32  ;;  %2865 = vmatprep.mubr.bf16.mxu1 %v10917_v32 }
 0x53c   : > { %v6159_v19 = vpop.f32.mrb[104].mxu0 }
 0x53d   : > { %v2444_v28 = vpop.f32.mrb[105].mxu0 }
 0x53e   : > { %v6160_v25 = vpop.f32.mrb[106].mxu0 }
 0x53f   : > { %v2480_v56 = vpack.c.bf16 %v6160_v25, %v6159_v19  ;;  %v2447_v5 = vpop.f32.mrb[107].mxu0 }
 0x540   : > { %v2479_v31 = vpack.c.bf16 %v2447_v5, %v2444_v28 }
 0x542   : > { %2633 = vmatmul.mubr.bf16.gmra.mrb[120].mxu0 %v2477_v35  ;;  %2866 = vmatmul.mubr.bf16.gmra.mrb[104].mxu1 %v2087_v57 }
 0x543   : > { %2642 = vmatprep.mubr.bf16.mxu0 %v10917_v32  ;;  %2875 = vmatprep.mubr.bf16.mxu1 %v10917_v32 }
 0x546   : > { %v6163_v2 = vpop.f32.mrb[108].mxu0 }
 0x547   : > { %v2460_v26 = vpop.f32.mrb[109].mxu0 }
 0x548   : > { %v6164_v27 = vpop.f32.mrb[110].mxu0 }
 0x549   : > { %v2482_v15 = vpack.c.bf16 %v6164_v27, %v6163_v2  ;;  %v2463_v63 = vpop.f32.mrb[111].mxu0 }
 0x54a   : > { %v2481_v1 = vpack.c.bf16 %v2463_v63, %v2460_v26  ;;  %2643 = vmatmul.mubr.bf16.gmra.mrb[124].mxu0 %v2478_v62  ;;  %2876 = vmatmul.mubr.bf16.gmra.mrb[108].mxu1 %v2088_v22 }
 0x54b   : > { %2652 = vmatprep.mubr.bf16.mxu0 %v10917_v32 }
 0x552   : > { %2653 = vmatmul.mubr.bf16.gmra.mrb[128].mxu0 %v2479_v31 }
 0x553   : > { %2662 = vmatprep.mubr.bf16.mxu0 %v10917_v32 }
 0x55a   : > { %2663 = vmatmul.mubr.bf16.gmra.mrb[132].mxu0 %v2480_v56 }
 0x55b   : > { %2672 = vmatprep.mubr.bf16.mxu0 %v10917_v32 }
 0x562   : > { %2673 = vmatmul.mubr.bf16.gmra.mrb[136].mxu0 %v2481_v1  ;;  %v10919_v1 = vld [vmem:[#allocation10_spill] sm:$0xff] }
 0x563   : > { %2682 = vmatprep.mubr.bf16.mxu0 %v10917_v32 }
 0x56a   : > { %2683 = vmatmul.mubr.bf16.gmra.mrb[140].mxu0 %v2482_v15  ;;  %v10918_v15 = vld [vmem:[#allocation11_spill] sm:$0xff] }
 0x5e5   : > { %v2807_v61 = vpop.f32.mrb[80].mxu1 }
 0x5e6   : > { %v2809_v20 = vpop.f32.mrb[81].mxu1 }
 0x5e7   : > { %v2811_v34 = vpop.f32.mrb[82].mxu1 }
 0x5e8   : > { %v2813_v50 = vpop.f32.mrb[83].mxu1 }
 0x5ed   : > { %v2817_v53 = vpop.f32.mrb[84].mxu1 }
 0x5ee   : > { %v2819_v49 = vpop.f32.mrb[85].mxu1 }
 0x5ef   : > { %v2821_v52 = vpop.f32.mrb[86].mxu1 }
 0x5f0   : > { %v2823_v0 = vpop.f32.mrb[87].mxu1 }
 0x5f5   : > { %v2827_v7 = vpop.f32.mrb[88].mxu1 }
 0x5f6   : > { %v2829_v23 = vpop.f32.mrb[89].mxu1 }
 0x5f7   : > { %v8490_v38 = vpop.f32.mrb[90].mxu1 }
 0x5f8   : > { %v8492_v43 = vpop.f32.mrb[91].mxu1 }
 0x5fd   : > { %v8494_v59 = vpop.f32.mrb[92].mxu1 }
 0x5fe   : > { %v8496_v58 = vpop.f32.mrb[93].mxu1 }
 0x5ff   : > { %v8498_v32 = vpop.f32.mrb[94].mxu1 }
 0x600   : > { %v8500_v29 = vpop.f32.mrb[95].mxu1 }
 0x605   : > { %v2614_v40 = vpop.f32.mrb[112].mxu0  ;;  %v8508_v33 = vpop.f32.mrb[96].mxu1 }
 0x606   : > { %v2808_v16 = vadd.f32 %v2807_v61, %v2614_v40  ;;  %v2616_v17 = vpop.f32.mrb[113].mxu0  ;;  %v8513_v21 = vpop.f32.mrb[97].mxu1 }
 0x607   : > { %v2810_v42 = vadd.f32 %v2809_v20, %v2616_v17  ;;  %v2618_v45 = vpop.f32.mrb[114].mxu0  ;;  %v8515_v11 = vpop.f32.mrb[98].mxu1 }
 0x608   : > { %v2898_v55 = vadd.f32 %v8506_v13, %v2808_v16  ;;  %v2812_v9 = vadd.f32 %v2811_v34, %v2618_v45  ;;  %v2620_v36 = vpop.f32.mrb[115].mxu0  ;;  %v8518_v22 = vpop.f32.mrb[99].mxu1 }
 0x609   : > { %v2899_v37 = vadd.f32 %v8511_v51, %v2810_v42  ;;  %v2814_v57 = vadd.f32 %v2813_v50, %v2620_v36 }
 0x60a   : > { %v2900_v54 = vadd.f32 %v8506_v13, %v2812_v9  ;;  %v8523_v14 = vadd.f32 %v2898_v55, %v7500_v48 }
 0x60b   : > { %v2901_v8 = vadd.f32 %v8511_v51, %v2814_v57  ;;  %v8527_v30 = vadd.f32 %v2899_v37, %v7496_v46  ;;  %v10921_v37 = vld [vmem:[#allocation16_spill] sm:$0xff] }
 0x60c   : > { %v8530_v39 = vadd.f32 %v2900_v54, %v7494_v44 }
 0x60d   : > { %v2624_v10 = vpop.f32.mrb[116].mxu0  ;;  %v8532_v18 = vpop.f32.mrb[100].mxu1  ;;  %v2964_v6 = vadd.f32 %v8527_v30, %v8523_v14  ;;  %v8537_v12 = vadd.f32 %v2901_v8, %v7498_v47  ;;  %v10922_v8 = vld [vmem:[#allocation14_spill] sm:$0xff] }
 0x60e   : > { %v2818_v62 = vadd.f32 %v2817_v53, %v2624_v10  ;;  %v2626_v48 = vpop.f32.mrb[117].mxu0  ;;  %v8539_v60 = vpop.f32.mrb[101].mxu1  ;;  %v10920_v53 = vld [vmem:[#allocation12_spill] sm:$0xff] }
 0x60f   : > { %v2820_v35 = vadd.f32 %v2819_v49, %v2626_v48  ;;  %v8541_v19 = vpop.f32.mrb[102].mxu1  ;;  %2965 = vadd.xlane.f32.xlu0 %v2964_v6  ;;  %v2628_v46 = vpop.f32.mrb[118].mxu0  ;;  %v2967_v44 = vadd.f32 %v8537_v12, %v8530_v39  ;;  %v10923_v6 = vld [vmem:[#allocation13_spill] sm:$0xff] }
 0x610   : > { %v2902_v28 = vadd.f32 %v8506_v13, %v2818_v62  ;;  %v2822_v25 = vadd.f32 %v2821_v52, %v2628_v46  ;;  %v2630_v56 = vpop.f32.mrb[119].mxu0  ;;  %v8546_v5 = vpop.f32.mrb[103].mxu1 }
 0x611   : > { %v2903_v47 = vadd.f32 %v8511_v51, %v2820_v35  ;;  %v2824_v31 = vadd.f32 %v2823_v0, %v2630_v56  ;;  %2968 = vadd.xlane.f32.xlu1 %v2967_v44  ;;  %v10924_v35 = vld [vmem:[#allocation15_spill] sm:$0xff] }
 0x612   : > { %v2904_v2 = vadd.f32 %v8506_v13, %v2822_v25  ;;  %v8551_v26 = vadd.f32 %v2902_v28, %v7544_v3 }
 0x613   : > { %v2905_v27 = vadd.f32 %v8511_v51, %v2824_v31  ;;  %v8555_v63 = vadd.f32 %v2903_v47, %v10918_v15 }
 0x614   : > { %v8558_v61 = vadd.f32 %v2904_v2, %v10919_v1 }
 0x615   : > { %v2634_v20 = vpop.f32.mrb[120].mxu0  ;;  %v8560_v34 = vpop.f32.mrb[104].mxu1  ;;  %v2970_v50 = vadd.f32 %v8555_v63, %v8551_v26  ;;  %v8565_v49 = vadd.f32 %v2905_v27, %v10920_v53  ;;  %v10925_v53 = vld [vmem:[#allocation20_spill] sm:$0xff] }
 0x616   : > { %v2828_v52 = vadd.f32 %v2827_v7, %v2634_v20  ;;  %v2636_v3 = vpop.f32.mrb[121].mxu0  ;;  %v8567_v0 = vpop.f32.mrb[105].mxu1 }
 0x617   : > { %v2830_v41 = vadd.f32 %v2829_v23, %v2636_v3  ;;  %v8569_v40 = vpop.f32.mrb[106].mxu1  ;;  %2971 = vadd.xlane.f32.xlu0 %v2970_v50  ;;  %v2638_v16 = vpop.f32.mrb[122].mxu0  ;;  %v2973_v17 = vadd.f32 %v8565_v49, %v8558_v61 }
 0x618   : > { %v2906_v42 = vadd.f32 %v8506_v13, %v2828_v52  ;;  %v2832_v45 = vadd.f32 %v8490_v38, %v2638_v16  ;;  %v2640_v55 = vpop.f32.mrb[123].mxu0  ;;  %v8575_v9 = vpop.f32.mrb[107].mxu1 }
 0x619   : > { %v2907_v7 = vadd.f32 %v8511_v51, %v2830_v41  ;;  %v2834_v36 = vadd.f32 %v8492_v43, %v2640_v55  ;;  %2974 = vadd.xlane.f32.xlu1 %v2973_v17  ;;  %v10926_v41 = vld [vmem:[#allocation18_spill] sm:$0xff]  ;;  %v10927_v17 = vld [vmem:[#allocation17_spill] sm:$0xff]  ;;  %v10928_v55 = vld [vmem:[#allocation19_spill] sm:$0xff] }
 0x61a   : > { %v2908_v23 = vadd.f32 %v8506_v13, %v2832_v45  ;;  %v8581_v57 = vadd.f32 %v2906_v42, %v10921_v37 }
 0x61b   : > { %v2909_v54 = vadd.f32 %v8511_v51, %v2834_v36  ;;  %v8585_v10 = vadd.f32 %v2907_v7, %v10922_v8 }
 0x61c   : > { %v8588_v38 = vadd.f32 %v2908_v23, %v10923_v6 }
 0x61d   : > { %v2644_v62 = vpop.f32.mrb[124].mxu0  ;;  %v8590_v48 = vpop.f32.mrb[108].mxu1  ;;  %v2976_v43 = vadd.f32 %v8585_v10, %v8581_v57  ;;  %v8595_v46 = vadd.f32 %v2909_v54, %v10924_v35 }
 0x61e   : > { %v2838_v44 = vadd.f32 %v8494_v59, %v2644_v62  ;;  %v2646_v28 = vpop.f32.mrb[125].mxu0  ;;  %v8598_v25 = vpop.f32.mrb[109].mxu1 }
 0x61f   : > { %v2840_v56 = vadd.f32 %v8496_v58, %v2646_v28  ;;  %v8601_v47 = vpop.f32.mrb[110].mxu1  ;;  %2977 = vadd.xlane.f32.xlu0 %v2976_v43  ;;  %v2648_v31 = vpop.f32.mrb[126].mxu0  ;;  %v2979_v2 = vadd.f32 %v8595_v46, %v8588_v38 }
 0x620   : > { %v2910_v27 = vadd.f32 %v8506_v13, %v2838_v44  ;;  %v2842_v15 = vadd.f32 %v8498_v32, %v2648_v31  ;;  %v2650_v1 = vpop.f32.mrb[127].mxu0  ;;  %v8607_v20 = vpop.f32.mrb[111].mxu1  ;;  %v10929_v44 = vld [vmem:[#allocation24_spill] sm:$0xff] }
 0x621   : > { %v2911_v59 = vadd.f32 %v8511_v51, %v2840_v56  ;;  %v2844_v50 = vadd.f32 %v8500_v29, %v2650_v1  ;;  %2980 = vadd.xlane.f32.xlu1 %v2979_v2  ;;  %v10930_v56 = vld [vmem:[#allocation22_spill] sm:$0xff]  ;;  %v10931_v2 = vld [vmem:[#allocation21_spill] sm:$0xff]  ;;  %v10932_v1 = vld [vmem:[#allocation23_spill] sm:$0xff] }
 0x622   : > { %v2912_v58 = vadd.f32 %v8506_v13, %v2842_v15  ;;  %v8613_v52 = vadd.f32 %v2910_v27, %v10925_v53 }
 0x623   : > { %v2913_v3 = vadd.f32 %v8511_v51, %v2844_v50  ;;  %v8617_v16 = vadd.f32 %v2911_v59, %v10926_v41 }
 0x624   : > { %v8620_v32 = vadd.f32 %v2912_v58, %v10927_v17 }
 0x625   : > { %v2654_v42 = vpop.f32.mrb[128].mxu0  ;;  %v2982_v45 = vadd.f32 %v8617_v16, %v8613_v52  ;;  %v8625_v29 = vadd.f32 %v2913_v3, %v10928_v55 }
 0x626   : > { %v2848_v7 = vadd.f32 %v8508_v33, %v2654_v42  ;;  %v2656_v36 = vpop.f32.mrb[129].mxu0 }
 0x627   : > { %v2850_v23 = vadd.f32 %v8513_v21, %v2656_v36  ;;  %2983 = vadd.xlane.f32.xlu0 %v2982_v45  ;;  %v2658_v37 = vpop.f32.mrb[130].mxu0  ;;  %v2985_v54 = vadd.f32 %v8625_v29, %v8620_v32 }
 0x628   : > { %v2914_v8 = vadd.f32 %v8506_v13, %v2848_v7  ;;  %v2852_v6 = vadd.f32 %v8515_v11, %v2658_v37  ;;  %v2660_v62 = vpop.f32.mrb[131].mxu0  ;;  %v10933_v7 = vld [vmem:[#allocation28_spill] sm:$0xff] }
 0x629   : > { %v2915_v43 = vadd.f32 %v8511_v51, %v2850_v23  ;;  %v2854_v35 = vadd.f32 %v8518_v22, %v2660_v62  ;;  %2986 = vadd.xlane.f32.xlu1 %v2985_v54  ;;  %v10934_v23 = vld [vmem:[#allocation26_spill] sm:$0xff]  ;;  %v10935_v54 = vld [vmem:[#allocation25_spill] sm:$0xff]  ;;  %v10936_v62 = vld [vmem:[#allocation27_spill] sm:$0xff] }
 0x62a   : > { %v2916_v33 = vadd.f32 %v8506_v13, %v2852_v6  ;;  %v8637_v28 = vadd.f32 %v2914_v8, %v10929_v44 }
 0x62b   : > { %v2917_v21 = vadd.f32 %v8511_v51, %v2854_v35  ;;  %v8641_v31 = vadd.f32 %v2915_v43, %v10930_v56 }
 0x62c   : > { %v8644_v27 = vadd.f32 %v2916_v33, %v10931_v2 }
 0x62d   : > { %v2664_v11 = vpop.f32.mrb[132].mxu0  ;;  %v2988_v15 = vadd.f32 %v8641_v31, %v8637_v28  ;;  %v8649_v22 = vadd.f32 %v2917_v21, %v10932_v1 }
 0x62e   : > { %v2858_v59 = vadd.f32 %v8532_v18, %v2664_v11  ;;  %v2666_v50 = vpop.f32.mrb[133].mxu0 }
 0x62f   : > { %v2860_v58 = vadd.f32 %v8539_v60, %v2666_v50  ;;  %2989 = vadd.xlane.f32.xlu0 %v2988_v15  ;;  %v2668_v53 = vpop.f32.mrb[134].mxu0  ;;  %v2991_v3 = vadd.f32 %v8649_v22, %v8644_v27 }
 0x630   : > { %v2918_v41 = vadd.f32 %v8506_v13, %v2858_v59  ;;  %v2862_v17 = vadd.f32 %v8541_v19, %v2668_v53  ;;  %v2670_v42 = vpop.f32.mrb[135].mxu0  ;;  %v10937_v59 = vld [vmem:[#allocation32_spill] sm:$0xff] }
 0x631   : > { %v2919_v45 = vadd.f32 %v8511_v51, %v2860_v58  ;;  %v2864_v55 = vadd.f32 %v8546_v5, %v2670_v42  ;;  %2992 = vadd.xlane.f32.xlu1 %v2991_v3  ;;  %v10938_v58 = vld [vmem:[#allocation30_spill] sm:$0xff]  ;;  %v10939_v3 = vld [vmem:[#allocation29_spill] sm:$0xff]  ;;  %v10940_v42 = vld [vmem:[#allocation31_spill] sm:$0xff] }
 0x632   : > { %v2920_v18 = vadd.f32 %v8506_v13, %v2862_v17  ;;  %v8661_v36 = vadd.f32 %v2918_v41, %v10933_v7 }
 0x633   : > { %v2921_v60 = vadd.f32 %v8511_v51, %v2864_v55  ;;  %v8665_v37 = vadd.f32 %v2919_v45, %v10934_v23 }
 0x634   : > { %v8668_v8 = vadd.f32 %v2920_v18, %v10935_v54 }
 0x635   : > { %v2674_v19 = vpop.f32.mrb[136].mxu0  ;;  %v2994_v6 = vadd.f32 %v8665_v37, %v8661_v36  ;;  %v8673_v5 = vadd.f32 %v2921_v60, %v10936_v62 }
 0x636   : > { %v2868_v43 = vadd.f32 %v8560_v34, %v2674_v19  ;;  %v2676_v35 = vpop.f32.mrb[137].mxu0 }
 0x637   : > { %v2870_v33 = vadd.f32 %v8567_v0, %v2676_v35  ;;  %2995 = vadd.xlane.f32.xlu0 %v2994_v6  ;;  %v2678_v44 = vpop.f32.mrb[138].mxu0  ;;  %v2997_v21 = vadd.f32 %v8673_v5, %v8668_v8 }
 0x638   : > { %v2922_v56 = vadd.f32 %v8506_v13, %v2868_v43  ;;  %v2872_v2 = vadd.f32 %v8569_v40, %v2678_v44  ;;  %v2680_v11 = vpop.f32.mrb[139].mxu0  ;;  %v10941_v43 = vld [vmem:[#allocation36_spill] sm:$0xff] }
 0x639   : > { %v2923_v15 = vadd.f32 %v8511_v51, %v2870_v33  ;;  %v2874_v1 = vadd.f32 %v8575_v9, %v2680_v11  ;;  %2998 = vadd.xlane.f32.xlu1 %v2997_v21  ;;  %v10942_v33 = vld [vmem:[#allocation34_spill] sm:$0xff]  ;;  %v10943_v21 = vld [vmem:[#allocation33_spill] sm:$0xff] }
 0x63a   : > { %v2924_v34 = vadd.f32 %v8506_v13, %v2872_v2  ;;  %v8685_v50 = vadd.f32 %v2922_v56, %v10937_v59  ;;  %v10944_v2 = vld [vmem:[#allocation35_spill] sm:$0xff]  ;;  %v6516_v59 = vld [vmem:[%s10789_s9 + $0x40] ss:$16 sps:$4 sm:$0xff]  }
 0x63b   : > { %v2925_v0 = vadd.f32 %v8511_v51, %v2874_v1  ;;  %v8689_v53 = vadd.f32 %v2923_v15, %v10938_v58  ;;  %v6515_v15 = vld [vmem:[%s10789_s9 + $0x24] ss:$16 sps:$4 sm:$0xff]   ;;  %v6513_v1 = vld [vmem:[%s10789_s9 + $0x20] ss:$16 sps:$4 sm:$0xff]  }
 0x63c   : > { %v8692_v41 = vadd.f32 %v2924_v34, %v10939_v3  ;;  %v6518_v34 = vld [vmem:[%s10789_s9 + $0x44] ss:$16 sps:$4 sm:$0xff]   ;;  %v6519_v58 = vld [vmem:[%s10789_s9 + $0x60] ss:$16 sps:$4 sm:$0xff]  }
 0x63d   : > { %v2684_v40 = vpop.f32.mrb[140].mxu0  ;;  %v3000_v17 = vadd.f32 %v8689_v53, %v8685_v50  ;;  %v8697_v9 = vadd.f32 %v2925_v0, %v10940_v42  ;;  %v6521_v0 = vld [vmem:[%s10789_s9 + $0x64] ss:$16 sps:$4 sm:$0xff]   ;;  %v6525_v42 = vld [vmem:[%s10789_s9 + $0xa0] ss:$16 sps:$4 sm:$0xff]  }
 0x63e   : > { %v2878_v45 = vadd.f32 %v8590_v48, %v2684_v40  ;;  %v2686_v55 = vpop.f32.mrb[141].mxu0  ;;  %v6524_v3 = vld [vmem:[%s10789_s9 + $0x84] ss:$16 sps:$4 sm:$0xff]   ;;  %v6522_v40 = vld [vmem:[%s10789_s9 + $0x80] ss:$16 sps:$4 sm:$0xff]  }
 0x63f   : > { %v2880_v18 = vadd.f32 %v8598_v25, %v2686_v55  ;;  %3001 = vadd.xlane.f32.xlu0 %v3000_v17  ;;  %v2688_v7 = vpop.f32.mrb[142].mxu0  ;;  %v3003_v60 = vadd.f32 %v8697_v9, %v8692_v41  ;;  %v6527_v17 = vld [vmem:[%s10789_s9 + $0xa4] ss:$16 sps:$4 sm:$0xff]   ;;  %v6528_v55 = vld [vmem:[%s10789_s9 + $0xc0] ss:$16 sps:$4 sm:$0xff]  }
 0x640   : > { %v2926_v23 = vadd.f32 %v8506_v13, %v2878_v45  ;;  %v2882_v54 = vadd.f32 %v8601_v47, %v2688_v7  ;;  %v2690_v19 = vpop.f32.mrb[143].mxu0  ;;  %v6530_v45 = vld [vmem:[%s10789_s9 + $0xc4] ss:$16 sps:$4 sm:$0xff]   ;;  %v6531_v7 = vld [vmem:[%s10789_s9 + $0xe0] ss:$16 sps:$4 sm:$0xff]  }
 0x641   : > { %v2927_v6 = vadd.f32 %v8511_v51, %v2880_v18  ;;  %v2884_v62 = vadd.f32 %v8607_v20, %v2690_v19  ;;  %3004 = vadd.xlane.f32.xlu1 %v3003_v60  ;;  %v6512_v20 = vld [vmem:[%s10789_s9 + $0x4] ss:$16 sps:$4 sm:$0xff]   ;;  %v6537_v19 = vld [vmem:[%s10789_s9 + $0x120] ss:$16 sps:$4 sm:$0xff]  }
 0x642   : > { %v2928_v48 = vadd.f32 %v8506_v13, %v2882_v54  ;;  %v8709_v35 = vadd.f32 %v2926_v23, %v10941_v43  ;;  %3729 = vmatprep.subr.bf16.mxu0 %v6512_v20  ;;  %v6533_v18 = vld [vmem:[%s10789_s9 + $0xe4] ss:$16 sps:$4 sm:$0xff]   ;;  %v6534_v23 = vld [vmem:[%s10789_s9 + $0x100] ss:$16 sps:$4 sm:$0xff]  }
 0x643   : > { %v2929_v25 = vadd.f32 %v8511_v51, %v2884_v62  ;;  %v8713_v44 = vadd.f32 %v2927_v6, %v10942_v33  ;;  %v6510_v51 = vld [vmem:[%s10789_s9] ss:$16 sps:$4 sm:$0xff]   ;;  %v6536_v60 = vld [vmem:[%s10789_s9 + $0x104] ss:$16 sps:$4 sm:$0xff]  }
 0x644   : > { %v8716_v56 = vadd.f32 %v2928_v48, %v10943_v21  ;;  %3730 = vmatpush1.bf16.msra.mxu0 %v6510_v51  ;;  %v6539_v54 = vld [vmem:[%s10789_s9 + $0x124] ss:$16 sps:$4 sm:$0xff]  }
 0x645   : > { %v3006_v47 = vadd.f32 %v8713_v44, %v8709_v35  ;;  %v8721_v11 = vadd.f32 %v2929_v25, %v10944_v2  ;;  %3731 = vmatprep.subr.bf16.mxu0 %v6515_v15 }
 0x647   : > { %3007 = vadd.xlane.f32.xlu0 %v3006_v47  ;;  %v3009_v13 = vadd.f32 %v8721_v11, %v8716_v56 }
 0x648   : > { %3732 = vmatpush1.bf16.msra.mxu0 %v6513_v1 }
 0x649   : > { %3010 = vadd.xlane.f32.xlu1 %v3009_v13  ;;  %3733 = vmatprep.subr.bf16.mxu0 %v6518_v34 }
 0x64c   : > { %3734 = vmatpush1.bf16.msra.mxu0 %v6516_v59 }
 0x64d   : > { %3735 = vmatprep.subr.bf16.mxu0 %v6521_v0 }
 0x650   : > { %3736 = vmatpush1.bf16.msra.mxu0 %v6519_v58 }
 0x651   : > { %3737 = vmatprep.subr.bf16.mxu0 %v6524_v3 }
 0x654   : > { %3738 = vmatpush1.bf16.msra.mxu0 %v6522_v40 }
 0x655   : > { %3739 = vmatprep.subr.bf16.mxu0 %v6527_v17 }
 0x658   : > { %3740 = vmatpush1.bf16.msra.mxu0 %v6525_v42 }
 0x659   : > { %3741 = vmatprep.subr.bf16.mxu0 %v6530_v45 }
 0x65c   : > { %3742 = vmatpush1.bf16.msra.mxu0 %v6528_v55 }
 0x65d   : > { %3743 = vmatprep.subr.bf16.mxu0 %v6533_v18 }
 0x660   : > { %3744 = vmatpush1.bf16.msra.mxu0 %v6531_v7 }
 0x661   : > { %3745 = vmatprep.subr.bf16.mxu0 %v6536_v60 }
 0x664   : > { %3746 = vmatpush1.bf16.msra.mxu0 %v6534_v23 }
 0x665   : > { %3747 = vmatprep.subr.bf16.mxu0 %v6539_v54 }
 0x668   : > { %3748 = vmatpush1.bf16.msra.mxu0 %v6537_v19 }
 0x69c   : > { %v2966_v6 = vpop.xlane.xlu0 %2965 }
 0x69d   : > { %v3013_v62 = vmul.f32 0.00390625, %v2966_v6 }
 0x69e   : > { %v2969_v48 = vpop.xlane.xlu1 %2968 }
 0x69f   : > { %v8786_v43 = vsub.f32 %v8523_v14, %v3013_v62  ;;  %v8789_v25 = vsub.f32 %v8527_v30, %v3013_v62  ;;  %v3014_v33 = vmul.f32 0.00390625, %v2969_v48 }
 0x6a1   : > { %v8792_v21 = vsub.f32 %v8530_v39, %v3014_v33  ;;  %v8795_v47 = vsub.f32 %v8537_v12, %v3014_v33  ;;  %v3061_v2 = vmul.f32 %v8786_v43, %v8786_v43  ;;  %v3062_v13 = vmul.f32 %v8789_v25, %v8789_v25  ;;  %v6540_v33 = vld [vmem:[%s10789_s9 + $0x140] ss:$16 sps:$4 sm:$0xff]  }
 0x6a3   : > { %v3093_v51 = vadd.f32 %v3062_v13, %v3061_v2  ;;  %v3063_v14 = vmul.f32 %v8792_v21, %v8792_v21  ;;  %v3064_v30 = vmul.f32 %v8795_v47, %v8795_v47 }
 0x6a4   : > { %v2972_v20 = vpop.xlane.xlu0 %2971 }
 0x6a5   : > { %v3015_v15 = vmul.f32 0.00390625, %v2972_v20  ;;  %3094 = vadd.xlane.f32.xlu0 %v3093_v51  ;;  %v3096_v39 = vadd.f32 %v3064_v30, %v3063_v14  ;;  %v6545_v30 = vld [vmem:[%s10789_s9 + $0x164] ss:$16 sps:$4 sm:$0xff]  }
 0x6a6   : > { %v2975_v1 = vpop.xlane.xlu1 %2974 }
 0x6a7   : > { %v8806_v12 = vsub.f32 %v8551_v26, %v3015_v15  ;;  %v8809_v34 = vsub.f32 %v8555_v63, %v3015_v15  ;;  %v3016_v59 = vmul.f32 0.00390625, %v2975_v1  ;;  %3097 = vadd.xlane.f32.xlu1 %v3096_v39  ;;  %v6543_v39 = vld [vmem:[%s10789_s9 + $0x160] ss:$16 sps:$4 sm:$0xff]  }
 0x6a9   : > { %v8812_v0 = vsub.f32 %v8558_v61, %v3016_v59  ;;  %v8815_v58 = vsub.f32 %v8565_v49, %v3016_v59  ;;  %v3065_v3 = vmul.f32 %v8806_v12, %v8806_v12  ;;  %v3066_v40 = vmul.f32 %v8809_v34, %v8809_v34 }
 0x6ab   : > { %v3099_v17 = vadd.f32 %v3066_v40, %v3065_v3  ;;  %v3067_v26 = vmul.f32 %v8812_v0, %v8812_v0  ;;  %v3068_v63 = vmul.f32 %v8815_v58, %v8815_v58  ;;  %v6548_v3 = vld [vmem:[%s10789_s9 + $0x184] ss:$16 sps:$4 sm:$0xff]  }
 0x6ac   : > { %v2978_v42 = vpop.xlane.xlu0 %2977 }
 0x6ad   : > { %v3017_v45 = vmul.f32 0.00390625, %v2978_v42  ;;  %3100 = vadd.xlane.f32.xlu0 %v3099_v17  ;;  %v3102_v61 = vadd.f32 %v3068_v63, %v3067_v26  ;;  %v6546_v26 = vld [vmem:[%s10789_s9 + $0x180] ss:$16 sps:$4 sm:$0xff]  }
 0x6ae   : > { %v2981_v55 = vpop.xlane.xlu1 %2980 }
 0x6af   : > { %v8826_v49 = vsub.f32 %v8581_v57, %v3017_v45  ;;  %v8829_v18 = vsub.f32 %v8585_v10, %v3017_v45  ;;  %v3018_v7 = vmul.f32 0.00390625, %v2981_v55  ;;  %3103 = vadd.xlane.f32.xlu1 %v3102_v61  ;;  %v6551_v55 = vld [vmem:[%s10789_s9 + $0x1a4] ss:$16 sps:$4 sm:$0xff]  }
 0x6b1   : > { %v8832_v60 = vsub.f32 %v8588_v38, %v3018_v7  ;;  %v8835_v23 = vsub.f32 %v8595_v46, %v3018_v7  ;;  %v3069_v54 = vmul.f32 %v8826_v49, %v8826_v49  ;;  %v3070_v19 = vmul.f32 %v8829_v18, %v8829_v18  ;;  %v6542_v38 = vld [vmem:[%s10789_s9 + $0x144] ss:$16 sps:$4 sm:$0xff]  }
 0x6b2   : > { %3749 = vmatprep.subr.bf16.mxu0 %v6542_v38 }
 0x6b3   : > { %v3105_v6 = vadd.f32 %v3070_v19, %v3069_v54  ;;  %v3071_v57 = vmul.f32 %v8832_v60, %v8832_v60  ;;  %v3072_v10 = vmul.f32 %v8835_v23, %v8835_v23  ;;  %3750 = vmatpush1.bf16.msra.mxu0 %v6540_v33  ;;  %v6549_v19 = vld [vmem:[%s10789_s9 + $0x1a0] ss:$16 sps:$4 sm:$0xff]  }
 0x6b4   : > { %v2984_v62 = vpop.xlane.xlu0 %2983  ;;  %3751 = vmatprep.subr.bf16.mxu0 %v6545_v30  ;;  %v6557_v30 = vld [vmem:[%s10789_s9 + $0x1e4] ss:$16 sps:$4 sm:$0xff]  }
 0x6b5   : > { %v3019_v46 = vmul.f32 0.00390625, %v2984_v62  ;;  %3106 = vadd.xlane.f32.xlu0 %v3105_v6  ;;  %v3108_v48 = vadd.f32 %v3072_v10, %v3071_v57  ;;  %v6554_v10 = vld [vmem:[%s10789_s9 + $0x1c4] ss:$16 sps:$4 sm:$0xff]  }
 0x6b6   : > { %v2987_v2 = vpop.xlane.xlu1 %2986 }
 0x6b7   : > { %v8852_v13 = vsub.f32 %v8613_v52, %v3019_v46  ;;  %v8855_v51 = vsub.f32 %v8617_v16, %v3019_v46  ;;  %v3020_v14 = vmul.f32 0.00390625, %v2987_v2  ;;  %3109 = vadd.xlane.f32.xlu1 %v3108_v48  ;;  %3752 = vmatpush1.bf16.msra.mxu0 %v6543_v39  ;;  %v6552_v46 = vld [vmem:[%s10789_s9 + $0x1c0] ss:$16 sps:$4 sm:$0xff]  }
 0x6b8   : > { %3753 = vmatprep.subr.bf16.mxu0 %v6548_v3  ;;  %v6555_v39 = vld [vmem:[%s10789_s9 + $0x1e0] ss:$16 sps:$4 sm:$0xff]  }
 0x6b9   : > { %v8861_v20 = vsub.f32 %v8620_v32, %v3020_v14  ;;  %v8864_v15 = vsub.f32 %v8625_v29, %v3020_v14  ;;  %v3073_v52 = vmul.f32 %v8852_v13, %v8852_v13  ;;  %v3074_v16 = vmul.f32 %v8855_v51, %v8855_v51 }
 0x6bb   : > { %v3111_v1 = vadd.f32 %v3074_v16, %v3073_v52  ;;  %v3075_v59 = vmul.f32 %v8861_v20, %v8861_v20  ;;  %v3076_v32 = vmul.f32 %v8864_v15, %v8864_v15  ;;  %3754 = vmatpush1.bf16.msra.mxu0 %v6546_v26 }
 0x6bc   : > { %v2990_v29 = vpop.xlane.xlu0 %2989  ;;  %3755 = vmatprep.subr.bf16.mxu0 %v6551_v55 }
 0x6bd   : > { %v3021_v40 = vmul.f32 0.00390625, %v2990_v29  ;;  %3112 = vadd.xlane.f32.xlu0 %v3111_v1  ;;  %v3114_v17 = vadd.f32 %v3076_v32, %v3075_v59  ;;  %v6560_v32 = vld [vmem:[%s10789_s9 + $0xc] ss:$16 sps:$4 sm:$0xff]  }
 0x6be   : > { %v2993_v63 = vpop.xlane.xlu1 %2992 }
 0x6bf   : > { %v8884_v42 = vsub.f32 %v8637_v28, %v3021_v40  ;;  %v8887_v45 = vsub.f32 %v8641_v31, %v3021_v40  ;;  %v3022_v61 = vmul.f32 0.00390625, %v2993_v63  ;;  %3115 = vadd.xlane.f32.xlu1 %v3114_v17  ;;  %3756 = vmatpush1.bf16.msra.mxu0 %v6549_v19 }
 0x6c0   : > { %3757 = vmatprep.subr.bf16.mxu0 %v6554_v10 }
 0x6c1   : > { %v8893_v7 = vsub.f32 %v8644_v27, %v3022_v61  ;;  %v8896_v54 = vsub.f32 %v8649_v22, %v3022_v61  ;;  %v3077_v28 = vmul.f32 %v8884_v42, %v8884_v42  ;;  %v3078_v31 = vmul.f32 %v8887_v45, %v8887_v45 }
 0x6c3   : > { %v3117_v6 = vadd.f32 %v3078_v31, %v3077_v28  ;;  %v3079_v57 = vmul.f32 %v8893_v7, %v8893_v7  ;;  %v3080_v27 = vmul.f32 %v8896_v54, %v8896_v54  ;;  %3758 = vmatpush1.bf16.msra.mxu0 %v6552_v46 }
 0x6c4   : > { %v2996_v22 = vpop.xlane.xlu0 %2995  ;;  %3759 = vmatprep.subr.bf16.mxu0 %v6557_v30 }
 0x6c5   : > { %v3023_v62 = vmul.f32 0.00390625, %v2996_v22  ;;  %3118 = vadd.xlane.f32.xlu0 %v3117_v6  ;;  %v3120_v38 = vadd.f32 %v3080_v27, %v3079_v57 }
 0x6c6   : > { %v2999_v48 = vpop.xlane.xlu1 %2998 }
 0x6c7   : > { %v8916_v33 = vsub.f32 %v8661_v36, %v3023_v62  ;;  %v8919_v2 = vsub.f32 %v8665_v37, %v3023_v62  ;;  %v3024_v14 = vmul.f32 0.00390625, %v2999_v48  ;;  %3121 = vadd.xlane.f32.xlu1 %v3120_v38  ;;  %3760 = vmatpush1.bf16.msra.mxu0 %v6555_v39 }
 0x6c8   : > { %3842 = vmatprep.subr.bf16.mxu0 %v6560_v32  ;;  %v2962_v32 = vld [vmem:[%s10787_s7] sm:$0x3] }
 0x6c9   : > { %v8925_v52 = vsub.f32 %v8668_v8, %v3024_v14  ;;  %v8928_v16 = vsub.f32 %v8673_v5, %v3024_v14  ;;  %v3081_v36 = vmul.f32 %v8916_v33, %v8916_v33  ;;  %v3082_v37 = vmul.f32 %v8919_v2, %v8919_v2 }
 0x6cb   : > { %v3123_v1 = vadd.f32 %v3082_v37, %v3081_v36  ;;  %v3083_v59 = vmul.f32 %v8925_v52, %v8925_v52  ;;  %v3084_v8 = vmul.f32 %v8928_v16, %v8928_v16 }
 0x6cc   : > { %v3002_v5 = vpop.xlane.xlu0 %3001 }
 0x6cd   : > { %v3025_v29 = vmul.f32 0.00390625, %v3002_v5  ;;  %3124 = vadd.xlane.f32.xlu0 %v3123_v1  ;;  %v3126_v3 = vadd.f32 %v3084_v8, %v3083_v59 }
 0x6ce   : > { %v3005_v40 = vpop.xlane.xlu1 %3004 }
 0x6cf   : > { %v8945_v17 = vsub.f32 %v8685_v50, %v3025_v29  ;;  %v8948_v26 = vsub.f32 %v8689_v53, %v3025_v29  ;;  %v3026_v63 = vmul.f32 0.00390625, %v3005_v40  ;;  %3127 = vadd.xlane.f32.xlu1 %v3126_v3 }
 0x6d1   : > { %v8951_v61 = vsub.f32 %v8692_v41, %v3026_v63  ;;  %v8954_v55 = vsub.f32 %v8697_v9, %v3026_v63  ;;  %v3085_v28 = vmul.f32 %v8945_v17, %v8945_v17  ;;  %v3086_v31 = vmul.f32 %v8948_v26, %v8948_v26 }
 0x6d2   : > { %v8988_v63 = vrot.slane %v2962_v32, %v7830_v4 }
 0x6d3   : > { %v3129_v19 = vadd.f32 %v3086_v31, %v3085_v28  ;;  %v3087_v50 = vmul.f32 %v8951_v61, %v8951_v61  ;;  %v3088_v53 = vmul.f32 %v8954_v55, %v8954_v55  ;;  %v2963_v28 = vld [vmem:[%s10788_s8] sm:$0x3]  ;;  %v8994_v31 = vrot.slane %v2962_v32, %v7839_v24 }
 0x6d4   : > { %v3008_v6 = vpop.xlane.xlu0 %3007 }
 0x6d5   : > { %v3027_v57 = vmul.f32 0.00390625, %v3008_v6  ;;  %3130 = vadd.xlane.f32.xlu0 %v3129_v19  ;;  %v3132_v41 = vadd.f32 %v3088_v53, %v3087_v50 }
 0x6d6   : > { %v3011_v27 = vpop.xlane.xlu1 %3010 }
 0x6d7   : > { %v8965_v9 = vsub.f32 %v8709_v35, %v3027_v57  ;;  %v8968_v22 = vsub.f32 %v8713_v44, %v3027_v57  ;;  %v3028_v10 = vmul.f32 0.00390625, %v3011_v27  ;;  %3133 = vadd.xlane.f32.xlu1 %v3132_v41  ;;  %v8999_v27 = vrot.slane %v2963_v28, %v7830_v4 }
 0x6d9   : > { %v8971_v62 = vsub.f32 %v8716_v56, %v3028_v10  ;;  %v8974_v38 = vsub.f32 %v8721_v11, %v3028_v10  ;;  %v3089_v46 = vmul.f32 %v8965_v9, %v8965_v9  ;;  %v3090_v48 = vmul.f32 %v8968_v22, %v8968_v22 }
 0x6da   : > { %v9002_v10 = vrot.slane %v2963_v28, %v7839_v24 }
 0x6db   : > { %v3135_v14 = vadd.f32 %v3090_v48, %v3089_v46  ;;  %v3091_v35 = vmul.f32 %v8971_v62, %v8971_v62  ;;  %v3092_v44 = vmul.f32 %v8974_v38, %v8974_v38 }
 0x6dd   : > { %3136 = vadd.xlane.f32.xlu0 %v3135_v14  ;;  %v3138_v30 = vadd.f32 %v3092_v44, %v3091_v35 }
 0x6df   : > { %3139 = vadd.xlane.f32.xlu1 %v3138_v30 }
 0x732   : > { %v3095_v56 = vpop.xlane.xlu0 %3094 }
 0x733   : > { %v3141_v36 = vmul.f32 0.00390625, %v3095_v56 }
 0x734   : > { %v3098_v11 = vpop.xlane.xlu1 %3097 }
 0x735   : > { %v3157_v37 = vadd.f32 1e-05, %v3141_v36  ;;  %v3142_v39 = vmul.f32 0.00390625, %v3098_v11  ;;  %v6608_v11 = vld [vmem:[%s10791_s11 + $0x4] ss:$8 sps:$4 sm:$0xff]  }
 0x736   : > { %4959 = vmatprep.subr.bf16.mxu1 %v6608_v11 }
 0x737   : > { %6830 = vrsqrt.f32 %v3157_v37  ;;  %v3158_v1 = vadd.f32 1e-05, %v3142_v39 }
 0x739   : > { %6832 = vrsqrt.f32 %v3158_v1 }
 0x73a   : > { %v3101_v59 = vpop.xlane.xlu0 %3100 }
 0x73b   : > { %v3143_v8 = vmul.f32 0.00390625, %v3101_v59 }
 0x73c   : > { %v3104_v5 = vpop.xlane.xlu1 %3103 }
 0x73d   : > { %v3159_v29 = vadd.f32 1e-05, %v3143_v8  ;;  %v3144_v3 = vmul.f32 0.00390625, %v3104_v5  ;;  %v6609_v5 = vld [vmem:[%s10791_s11 + $0x10] ss:$8 sps:$4 sm:$0xff]  }
 0x73f   : > { %6834 = vrsqrt.f32 %v3159_v29  ;;  %v3160_v40 = vadd.f32 1e-05, %v3144_v3 }
 0x741   : > { %v6831_v19 = vpop.eup %6830  ;;  %6836 = vrsqrt.f32 %v3160_v40  ;;  %v6558_v40 = vld [vmem:[%s10789_s9 + $0x8] ss:$16 sps:$4 sm:$0xff]  }
 0x742   : > { %v3189_v50 = vmul.f32 %v6831_v19, %v8786_v43  ;;  %v3107_v53 = vpop.xlane.xlu0 %3106  ;;  %v3190_v6 = vmul.f32 %v6831_v19, %v8789_v25  ;;  %v6606_v25 = vld [vmem:[%s10791_s11] ss:$8 sps:$4 sm:$0xff]  }
 0x743   : > { %v6833_v57 = vpop.eup %6832  ;;  %v3145_v41 = vmul.f32 0.00390625, %v3107_v53  ;;  %4960 = vmatpush1.bf16.msra.mxu1 %v6606_v25  ;;  %v6566_v25 = vld [vmem:[%s10789_s9 + $0x4c] ss:$16 sps:$4 sm:$0xff]  }
 0x744   : > { %v3232_v46 = vmul.f32 %v8988_v63, %v3189_v50  ;;  %v3191_v48 = vmul.f32 %v6833_v57, %v8792_v21  ;;  %v3110_v14 = vpop.xlane.xlu1 %3109  ;;  %v3192_v35 = vmul.f32 %v6833_v57, %v8795_v47  ;;  %v3233_v43 = vmul.f32 %v8994_v31, %v3190_v6  ;;  %v6611_v21 = vld [vmem:[%s10791_s11 + $0x14] ss:$8 sps:$4 sm:$0xff]   ;;  %v6614_v57 = vld [vmem:[%s10791_s11 + $0x24] ss:$8 sps:$4 sm:$0xff]  }
 0x745   : > { %v3161_v44 = vadd.f32 1e-05, %v3145_v41  ;;  %v3146_v30 = vmul.f32 0.00390625, %v3110_v14  ;;  %4961 = vmatprep.subr.bf16.mxu1 %v6611_v21  ;;  %v6563_v6 = vld [vmem:[%s10789_s9 + $0x2c] ss:$16 sps:$4 sm:$0xff]  }
 0x746   : > { %v3234_v56 = vmul.f32 %v8988_v63, %v3191_v48  ;;  %v3235_v36 = vmul.f32 %v8994_v31, %v3192_v35  ;;  %v9020_v37 = vadd.f32 %v9002_v10, %v3233_v43  ;;  %v9026_v1 = vadd.f32 %v8999_v27, %v3232_v46  ;;  %v6612_v43 = vld [vmem:[%s10791_s11 + $0x20] ss:$8 sps:$4 sm:$0xff]  }
 0x747   : > { %6838 = vrsqrt.f32 %v3161_v44  ;;  %v3162_v47 = vadd.f32 1e-05, %v3146_v30  ;;  %4962 = vmatpush1.bf16.msra.mxu1 %v6609_v5  ;;  %v6615_v5 = vld [vmem:[%s10791_s11 + $0x30] ss:$8 sps:$4 sm:$0xff]  }
 0x748   : > { %10945 = vst [vmem:[#allocation11_spill] sm:$0xff] %v9020_v37  ;;  %v9023_v39 = vadd.f32 %v9002_v10, %v3235_v36  ;;  %10947 = vst [vmem:[#allocation12_spill] sm:$0xff] %v9026_v1  ;;  %v9029_v59 = vadd.f32 %v8999_v27, %v3234_v56  ;;  %4963 = vmatprep.subr.bf16.mxu1 %v6614_v57  ;;  %v6617_v56 = vld [vmem:[%s10791_s11 + $0x34] ss:$8 sps:$4 sm:$0xff]  }
 0x749   : > { %v6835_v8 = vpop.eup %6834  ;;  %6840 = vrsqrt.f32 %v3162_v47 }
 0x74a   : > { %10946 = vst [vmem:[#allocation10_spill] sm:$0xff] %v9023_v39  ;;  %10948 = vst [vmem:[#allocation16_spill] sm:$0xff] %v9029_v59  ;;  %v3113_v32 = vpop.xlane.xlu0 %3112  ;;  %v9036_v29 = vpack.c.bf16 %v9023_v39, %v9020_v37  ;;  %v9040_v3 = vpack.c.bf16 %v9029_v59, %v9026_v1  ;;  %v3194_v28 = vmul.f32 %v6835_v8, %v8809_v34 }
 0x74b   : > { %v3193_v19 = vmul.f32 %v6835_v8, %v8806_v12  ;;  %v6837_v50 = vpop.eup %6836  ;;  %v3147_v53 = vmul.f32 0.00390625, %v3113_v32  ;;  %4964 = vmatpush1.bf16.msra.mxu1 %v6612_v43  ;;  %v6618_v43 = vld [vmem:[%s10791_s11 + $0x40] ss:$8 sps:$4 sm:$0xff]  }
 0x74c   : > { %3761 = vmatprep.mubr.bf16.mxu0 %v9036_v29  ;;  %v3116_v41 = vpop.xlane.xlu1 %3115  ;;  %v3196_v46 = vmul.f32 %v6837_v50, %v8815_v58  ;;  %v3237_v34 = vmul.f32 %v8994_v31, %v3194_v28  ;;  %v3195_v12 = vmul.f32 %v6837_v50, %v8812_v0  ;;  %v6561_v58 = vld [vmem:[%s10789_s9 + $0x28] ss:$16 sps:$4 sm:$0xff]   ;;  %4965 = vmatprep.subr.bf16.mxu1 %v6617_v56 }
 0x74d   : > { %v3236_v48 = vmul.f32 %v8988_v63, %v3193_v19  ;;  %v3163_v14 = vadd.f32 1e-05, %v3147_v53  ;;  %v3148_v35 = vmul.f32 0.00390625, %v3116_v41  ;;  %3762 = vmatmul.mubr.bf16.vlgmr.msra.gmra.mrb[144].mxu0 %v9040_v3  ;;  %v6564_v19 = vld [vmem:[%s10789_s9 + $0x48] ss:$16 sps:$4 sm:$0xff]  }
 0x74e   : > { %3843 = vmatpush1.bf16.msra.mxu0 %v6558_v40  ;;  %v3239_v44 = vmul.f32 %v8994_v31, %v3196_v46  ;;  %v3238_v0 = vmul.f32 %v8988_v63, %v3195_v12  ;;  %v9074_v36 = vadd.f32 %v9002_v10, %v3237_v34  ;;  %v6569_v41 = vld [vmem:[%s10789_s9 + $0x6c] ss:$16 sps:$4 sm:$0xff]  }
 0x74f   : > { %6842 = vrsqrt.f32 %v3163_v14  ;;  %v3164_v30 = vadd.f32 1e-05, %v3148_v35  ;;  %3844 = vmatprep.subr.bf16.mxu0 %v6563_v6  ;;  %v9080_v21 = vadd.f32 %v8999_v27, %v3236_v48  ;;  %v6620_v46 = vld [vmem:[%s10791_s11 + $0x44] ss:$8 sps:$4 sm:$0xff]   ;;  %4966 = vmatpush1.bf16.msra.mxu1 %v6615_v5 }
 0x750   : > { %10949 = vst [vmem:[#allocation14_spill] sm:$0xff] %v9074_v36  ;;  %v9077_v11 = vadd.f32 %v9002_v10, %v3239_v44  ;;  %v9083_v47 = vadd.f32 %v8999_v27, %v3238_v0  ;;  %v6572_v0 = vld [vmem:[%s10789_s9 + $0x8c] ss:$16 sps:$4 sm:$0xff]   ;;  %4967 = vmatprep.subr.bf16.mxu1 %v6620_v46 }
 0x751   : > { %10951 = vst [vmem:[#allocation15_spill] sm:$0xff] %v9080_v21  ;;  %v6839_v8 = vpop.eup %6838  ;;  %6844 = vrsqrt.f32 %v3164_v30  ;;  %v6623_v30 = vld [vmem:[%s10791_s11 + $0x54] ss:$8 sps:$4 sm:$0xff]  }
 0x752   : > { %10950 = vst [vmem:[#allocation13_spill] sm:$0xff] %v9077_v11  ;;  %10952 = vst [vmem:[#allocation20_spill] sm:$0xff] %v9083_v47  ;;  %v3119_v32 = vpop.xlane.xlu0 %3118  ;;  %3845 = vmatpush1.bf16.msra.mxu0 %v6561_v58  ;;  %v9090_v40 = vpack.c.bf16 %v9077_v11, %v9074_v36  ;;  %v9094_v28 = vpack.c.bf16 %v9083_v47, %v9080_v21  ;;  %v3198_v50 = vmul.f32 %v6839_v8, %v8829_v18 }
 0x753   : > { %v3197_v53 = vmul.f32 %v6839_v8, %v8826_v49  ;;  %v6841_v6 = vpop.eup %6840  ;;  %v3149_v57 = vmul.f32 0.00390625, %v3119_v32  ;;  %3846 = vmatprep.subr.bf16.mxu0 %v6566_v25  ;;  %4968 = vmatpush1.bf16.msra.mxu1 %v6618_v43 }
 0x754   : > { %3771 = vmatprep.mubr.bf16.mxu0 %v9090_v40  ;;  %v3122_v34 = vpop.xlane.xlu1 %3121  ;;  %v3200_v12 = vmul.f32 %v6841_v6, %v8835_v23  ;;  %v3241_v18 = vmul.f32 %v8994_v31, %v3198_v50  ;;  %v3199_v49 = vmul.f32 %v6841_v6, %v8832_v60  ;;  %v6567_v23 = vld [vmem:[%s10789_s9 + $0x68] ss:$16 sps:$4 sm:$0xff]   ;;  %4969 = vmatprep.subr.bf16.mxu1 %v6623_v30  ;;  %v6629_v30 = vld [vmem:[%s10791_s11 + $0x74] ss:$8 sps:$4 sm:$0xff]  }
 0x755   : > { %v3240_v48 = vmul.f32 %v8988_v63, %v3197_v53  ;;  %v3165_v14 = vadd.f32 1e-05, %v3149_v57  ;;  %v3150_v35 = vmul.f32 0.00390625, %v3122_v34  ;;  %3772 = vmatmul.mubr.bf16.gmra.mrb[148].mxu0 %v9094_v28  ;;  %v6570_v57 = vld [vmem:[%s10789_s9 + $0x88] ss:$16 sps:$4 sm:$0xff]  }
 0x756   : > { %3847 = vmatpush1.bf16.msra.mxu0 %v6564_v19  ;;  %v3243_v58 = vmul.f32 %v8994_v31, %v3200_v12  ;;  %v3242_v60 = vmul.f32 %v8988_v63, %v3199_v49  ;;  %v9128_v25 = vadd.f32 %v9002_v10, %v3241_v18  ;;  %v6621_v19 = vld [vmem:[%s10791_s11 + $0x50] ss:$8 sps:$4 sm:$0xff]   ;;  %v6575_v18 = vld [vmem:[%s10789_s9 + $0xac] ss:$16 sps:$4 sm:$0xff]  }
 0x757   : > { %6846 = vrsqrt.f32 %v3165_v14  ;;  %v3166_v44 = vadd.f32 1e-05, %v3150_v35  ;;  %3848 = vmatprep.subr.bf16.mxu0 %v6569_v41  ;;  %v9134_v8 = vadd.f32 %v8999_v27, %v3240_v48  ;;  %v6626_v49 = vld [vmem:[%s10791_s11 + $0x64] ss:$8 sps:$4 sm:$0xff]   ;;  %4970 = vmatpush1.bf16.msra.mxu1 %v6621_v19 }
 0x758   : > { %10953 = vst [vmem:[#allocation18_spill] sm:$0xff] %v9128_v25  ;;  %v9131_v56 = vadd.f32 %v9002_v10, %v3243_v58  ;;  %v9137_v5 = vadd.f32 %v8999_v27, %v3242_v60  ;;  %v6624_v58 = vld [vmem:[%s10791_s11 + $0x60] ss:$8 sps:$4 sm:$0xff]   ;;  %4971 = vmatprep.subr.bf16.mxu1 %v6626_v49 }
 0x759   : > { %10955 = vst [vmem:[#allocation19_spill] sm:$0xff] %v9134_v8  ;;  %v6843_v32 = vpop.eup %6842  ;;  %6848 = vrsqrt.f32 %v3166_v44  ;;  %v6576_v49 = vld [vmem:[%s10789_s9 + $0xc8] ss:$16 sps:$4 sm:$0xff]  }
 0x75a   : > { %10954 = vst [vmem:[#allocation17_spill] sm:$0xff] %v9131_v56  ;;  %10956 = vst [vmem:[#allocation24_spill] sm:$0xff] %v9137_v5  ;;  %v3125_v50 = vpop.xlane.xlu0 %3124  ;;  %3849 = vmatpush1.bf16.msra.mxu0 %v6567_v23  ;;  %v9144_v53 = vpack.c.bf16 %v9131_v56, %v9128_v25  ;;  %v9148_v6 = vpack.c.bf16 %v9137_v5, %v9134_v8  ;;  %v3202_v41 = vmul.f32 %v6843_v32, %v8855_v51 }
 0x75b   : > { %v3201_v46 = vmul.f32 %v6843_v32, %v8852_v13  ;;  %v6845_v34 = vpop.eup %6844  ;;  %v3151_v12 = vmul.f32 0.00390625, %v3125_v50  ;;  %3850 = vmatprep.subr.bf16.mxu0 %v6572_v0  ;;  %v6578_v0 = vld [vmem:[%s10789_s9 + $0xcc] ss:$16 sps:$4 sm:$0xff]   ;;  %4972 = vmatpush1.bf16.msra.mxu1 %v6624_v58 }
 0x75c   : > { %3781 = vmatprep.mubr.bf16.mxu0 %v9144_v53  ;;  %v3128_v48 = vpop.xlane.xlu1 %3127  ;;  %v3204_v14 = vmul.f32 %v6845_v34, %v8864_v15  ;;  %v3245_v51 = vmul.f32 %v8994_v31, %v3202_v41  ;;  %v3203_v13 = vmul.f32 %v6845_v34, %v8861_v20  ;;  %v6573_v15 = vld [vmem:[%s10789_s9 + $0xa8] ss:$16 sps:$4 sm:$0xff]   ;;  %4973 = vmatprep.subr.bf16.mxu1 %v6629_v30 }
 0x75d   : > { %v3244_v35 = vmul.f32 %v8988_v63, %v3201_v46  ;;  %v3167_v43 = vadd.f32 1e-05, %v3151_v12  ;;  %v3152_v23 = vmul.f32 0.00390625, %v3128_v48  ;;  %3782 = vmatmul.mubr.bf16.gmra.mrb[152].mxu0 %v9148_v6  ;;  %v6627_v46 = vld [vmem:[%s10791_s11 + $0x70] ss:$8 sps:$4 sm:$0xff]  }
 0x75e   : > { %3851 = vmatpush1.bf16.msra.mxu0 %v6570_v57  ;;  %v3247_v60 = vmul.f32 %v8994_v31, %v3204_v14  ;;  %v3246_v20 = vmul.f32 %v8988_v63, %v3203_v13  ;;  %v9182_v32 = vadd.f32 %v9002_v10, %v3245_v51 }
 0x75f   : > { %6850 = vrsqrt.f32 %v3167_v43  ;;  %v3168_v44 = vadd.f32 1e-05, %v3152_v23  ;;  %3852 = vmatprep.subr.bf16.mxu0 %v6575_v18  ;;  %v9188_v50 = vadd.f32 %v8999_v27, %v3244_v35  ;;  %v6581_v35 = vld [vmem:[%s10789_s9 + $0xec] ss:$16 sps:$4 sm:$0xff]   ;;  %4974 = vmatpush1.bf16.msra.mxu1 %v6627_v46 }
 0x760   : > { %10957 = vst [vmem:[#allocation22_spill] sm:$0xff] %v9182_v32  ;;  %v9185_v19 = vadd.f32 %v9002_v10, %v3247_v60  ;;  %v9191_v57 = vadd.f32 %v8999_v27, %v3246_v20  ;;  %v6579_v20 = vld [vmem:[%s10789_s9 + $0xe8] ss:$16 sps:$4 sm:$0xff]  }
 0x761   : > { %10959 = vst [vmem:[#allocation23_spill] sm:$0xff] %v9188_v50  ;;  %v6847_v41 = vpop.eup %6846  ;;  %6852 = vrsqrt.f32 %v3168_v44 }
 0x762   : > { %10958 = vst [vmem:[#allocation21_spill] sm:$0xff] %v9185_v19  ;;  %10960 = vst [vmem:[#allocation28_spill] sm:$0xff] %v9191_v57  ;;  %v3131_v34 = vpop.xlane.xlu0 %3130  ;;  %3853 = vmatpush1.bf16.msra.mxu0 %v6573_v15  ;;  %v9198_v12 = vpack.c.bf16 %v9185_v19, %v9182_v32  ;;  %v9202_v18 = vpack.c.bf16 %v9191_v57, %v9188_v50  ;;  %v3206_v48 = vmul.f32 %v6847_v41, %v8887_v45 }
 0x763   : > { %v3205_v14 = vmul.f32 %v6847_v41, %v8884_v42  ;;  %v6849_v51 = vpop.eup %6848  ;;  %v3153_v13 = vmul.f32 0.00390625, %v3131_v34  ;;  %3854 = vmatprep.subr.bf16.mxu0 %v6578_v0 }
 0x764   : > { %3791 = vmatprep.mubr.bf16.mxu0 %v9198_v12  ;;  %v3134_v43 = vpop.xlane.xlu1 %3133  ;;  %v3208_v23 = vmul.f32 %v6849_v51, %v8896_v54  ;;  %v3249_v58 = vmul.f32 %v8994_v31, %v3206_v48  ;;  %v3207_v15 = vmul.f32 %v6849_v51, %v8893_v7  ;;  %v6584_v7 = vld [vmem:[%s10789_s9 + $0x10c] ss:$16 sps:$4 sm:$0xff]  }
 0x765   : > { %v3248_v45 = vmul.f32 %v8988_v63, %v3205_v14  ;;  %v3169_v42 = vadd.f32 1e-05, %v3153_v13  ;;  %v3154_v60 = vmul.f32 0.00390625, %v3134_v43  ;;  %3792 = vmatmul.mubr.bf16.gmra.mrb[156].mxu0 %v9202_v18  ;;  %v6582_v13 = vld [vmem:[%s10789_s9 + $0x108] ss:$16 sps:$4 sm:$0xff]  }
 0x766   : > { %3855 = vmatpush1.bf16.msra.mxu0 %v6576_v49  ;;  %v3251_v44 = vmul.f32 %v8994_v31, %v3208_v23  ;;  %v3250_v54 = vmul.f32 %v8988_v63, %v3207_v15  ;;  %v9227_v30 = vadd.f32 %v9002_v10, %v3249_v58  ;;  %v6587_v15 = vld [vmem:[%s10789_s9 + $0x12c] ss:$16 sps:$4 sm:$0xff]  }
 0x767   : > { %6854 = vrsqrt.f32 %v3169_v42  ;;  %v3170_v0 = vadd.f32 1e-05, %v3154_v60  ;;  %3856 = vmatprep.subr.bf16.mxu0 %v6581_v35  ;;  %v9233_v46 = vadd.f32 %v8999_v27, %v3248_v45 }
 0x768   : > { %10961 = vst [vmem:[#allocation26_spill] sm:$0xff] %v9227_v30  ;;  %v9230_v41 = vadd.f32 %v9002_v10, %v3251_v44  ;;  %v9236_v34 = vadd.f32 %v8999_v27, %v3250_v54  ;;  %v6585_v54 = vld [vmem:[%s10789_s9 + $0x128] ss:$16 sps:$4 sm:$0xff]  }
 0x769   : > { %10963 = vst [vmem:[#allocation27_spill] sm:$0xff] %v9233_v46  ;;  %v6851_v49 = vpop.eup %6850  ;;  %6856 = vrsqrt.f32 %v3170_v0 }
 0x76a   : > { %10962 = vst [vmem:[#allocation25_spill] sm:$0xff] %v9230_v41  ;;  %10964 = vst [vmem:[#allocation32_spill] sm:$0xff] %v9236_v34  ;;  %v3137_v48 = vpop.xlane.xlu0 %3136  ;;  %3857 = vmatpush1.bf16.msra.mxu0 %v6579_v20  ;;  %v9240_v14 = vpack.c.bf16 %v9230_v41, %v9227_v30  ;;  %v9244_v51 = vpack.c.bf16 %v9236_v34, %v9233_v46  ;;  %v3210_v35 = vmul.f32 %v6851_v49, %v8919_v2 }
 0x76b   : > { %v3209_v43 = vmul.f32 %v6851_v49, %v8916_v33  ;;  %v6853_v23 = vpop.eup %6852  ;;  %v3155_v58 = vmul.f32 0.00390625, %v3137_v48  ;;  %3858 = vmatprep.subr.bf16.mxu0 %v6584_v7 }
 0x76c   : > { %3801 = vmatprep.mubr.bf16.mxu0 %v9240_v14  ;;  %v3140_v45 = vpop.xlane.xlu1 %3139  ;;  %v3212_v42 = vmul.f32 %v6853_v23, %v8928_v16  ;;  %v3253_v60 = vmul.f32 %v8994_v31, %v3210_v35  ;;  %v3211_v20 = vmul.f32 %v6853_v23, %v8925_v52  ;;  %v6590_v52 = vld [vmem:[%s10789_s9 + $0x14c] ss:$16 sps:$4 sm:$0xff]  }
 0x76d   : > { %v3252_v2 = vmul.f32 %v8988_v63, %v3209_v43  ;;  %v3171_v44 = vadd.f32 1e-05, %v3155_v58  ;;  %v3156_v33 = vmul.f32 0.00390625, %v3140_v45  ;;  %3802 = vmatmul.mubr.bf16.gmra.mrb[160].mxu0 %v9244_v51 }
 0x76e   : > { %3859 = vmatpush1.bf16.msra.mxu0 %v6582_v13  ;;  %v3255_v0 = vmul.f32 %v8994_v31, %v3212_v42  ;;  %v3254_v7 = vmul.f32 %v8988_v63, %v3211_v20  ;;  %v9269_v49 = vadd.f32 %v9002_v10, %v3253_v60  ;;  %v6593_v20 = vld [vmem:[%s10789_s9 + $0x16c] ss:$16 sps:$4 sm:$0xff]  }
 0x76f   : > { %6858 = vrsqrt.f32 %v3171_v44  ;;  %v3172_v16 = vadd.f32 1e-05, %v3156_v33  ;;  %3860 = vmatprep.subr.bf16.mxu0 %v6587_v15  ;;  %v9275_v13 = vadd.f32 %v8999_v27, %v3252_v2  ;;  %v6588_v15 = vld [vmem:[%s10789_s9 + $0x148] ss:$16 sps:$4 sm:$0xff]  }
 0x770   : > { %10965 = vst [vmem:[#allocation30_spill] sm:$0xff] %v9269_v49  ;;  %v9272_v48 = vadd.f32 %v9002_v10, %v3255_v0  ;;  %v9278_v35 = vadd.f32 %v8999_v27, %v3254_v7 }
 0x771   : > { %10967 = vst [vmem:[#allocation31_spill] sm:$0xff] %v9275_v13  ;;  %v6855_v43 = vpop.eup %6854  ;;  %6860 = vrsqrt.f32 %v3172_v16 }
 0x772   : > { %10966 = vst [vmem:[#allocation29_spill] sm:$0xff] %v9272_v48  ;;  %10968 = vst [vmem:[#allocation36_spill] sm:$0xff] %v9278_v35  ;;  %3861 = vmatpush1.bf16.msra.mxu0 %v6585_v54  ;;  %v9282_v23 = vpack.c.bf16 %v9272_v48, %v9269_v49  ;;  %v9286_v58 = vpack.c.bf16 %v9278_v35, %v9275_v13  ;;  %v3214_v45 = vmul.f32 %v6855_v43, %v8948_v26 }
 0x773   : > { %v3213_v42 = vmul.f32 %v6855_v43, %v8945_v17  ;;  %v6857_v60 = vpop.eup %6856  ;;  %3862 = vmatprep.subr.bf16.mxu0 %v6590_v52  ;;  %v6591_v17 = vld [vmem:[%s10789_s9 + $0x168] ss:$16 sps:$4 sm:$0xff]  }
 0x774   : > { %3811 = vmatprep.mubr.bf16.mxu0 %v9282_v23  ;;  %v3216_v2 = vmul.f32 %v6857_v60, %v8954_v55  ;;  %v3257_v44 = vmul.f32 %v8994_v31, %v3214_v45  ;;  %v3215_v33 = vmul.f32 %v6857_v60, %v8951_v61  ;;  %v6596_v55 = vld [vmem:[%s10789_s9 + $0x18c] ss:$16 sps:$4 sm:$0xff]  }
 0x775   : > { %v3256_v54 = vmul.f32 %v8988_v63, %v3213_v42  ;;  %3812 = vmatmul.mubr.bf16.gmra.mrb[164].mxu0 %v9286_v58  ;;  %v6594_v42 = vld [vmem:[%s10789_s9 + $0x188] ss:$16 sps:$4 sm:$0xff]  }
 0x776   : > { %3863 = vmatpush1.bf16.msra.mxu0 %v6588_v15  ;;  %v3259_v26 = vmul.f32 %v8994_v31, %v3216_v2  ;;  %v3258_v0 = vmul.f32 %v8988_v63, %v3215_v33  ;;  %v9311_v61 = vadd.f32 %v9002_v10, %v3257_v44  ;;  %v6599_v44 = vld [vmem:[%s10789_s9 + $0x1ac] ss:$16 sps:$4 sm:$0xff]  }
 0x777   : > { %3864 = vmatprep.subr.bf16.mxu0 %v6593_v20  ;;  %v9317_v16 = vadd.f32 %v8999_v27, %v3256_v54 }
 0x778   : > { %10969 = vst [vmem:[#allocation34_spill] sm:$0xff] %v9311_v61  ;;  %v9314_v7 = vadd.f32 %v9002_v10, %v3259_v26  ;;  %v9320_v52 = vadd.f32 %v8999_v27, %v3258_v0 }
 0x779   : > { %10971 = vst [vmem:[#allocation35_spill] sm:$0xff] %v9317_v16  ;;  %v6859_v43 = vpop.eup %6858 }
 0x77a   : > { %10970 = vst [vmem:[#allocation33_spill] sm:$0xff] %v9314_v7  ;;  %10972 = vst [vmem:[#allocation39_spill] sm:$0xff] %v9320_v52  ;;  %3865 = vmatpush1.bf16.msra.mxu0 %v6591_v17  ;;  %v9324_v15 = vpack.c.bf16 %v9314_v7, %v9311_v61  ;;  %v9328_v45 = vpack.c.bf16 %v9320_v52, %v9317_v16  ;;  %v3218_v60 = vmul.f32 %v6859_v43, %v8968_v22 }
 0x77b   : > { %v3217_v20 = vmul.f32 %v6859_v43, %v8965_v9  ;;  %v6861_v2 = vpop.eup %6860  ;;  %3866 = vmatprep.subr.bf16.mxu0 %v6596_v55  ;;  %v6597_v9 = vld [vmem:[%s10789_s9 + $0x1a8] ss:$16 sps:$4 sm:$0xff]  }
 0x77c   : > { %3821 = vmatprep.mubr.bf16.mxu0 %v9324_v15  ;;  %v3220_v33 = vmul.f32 %v6861_v2, %v8974_v38  ;;  %v3261_v54 = vmul.f32 %v8994_v31, %v3218_v60  ;;  %v3219_v17 = vmul.f32 %v6861_v2, %v8971_v62  ;;  %v6602_v38 = vld [vmem:[%s10789_s9 + $0x1cc] ss:$16 sps:$4 sm:$0xff]   ;;  %v6600_v60 = vld [vmem:[%s10789_s9 + $0x1c8] ss:$16 sps:$4 sm:$0xff]  }
 0x77d   : > { %v3260_v26 = vmul.f32 %v8988_v63, %v3217_v20  ;;  %3822 = vmatmul.mubr.bf16.gmra.mrb[168].mxu0 %v9328_v45  ;;  %v6630_v20 = vld [vmem:[%s10791_s11 + $0x80] ss:$8 sps:$4 sm:$0xff]   ;;  %v6650_v2 = vld [vmem:[%s10791_s11 + $0xe4] ss:$8 sps:$4 sm:$0xff]  }
 0x77e   : > { %3867 = vmatpush1.bf16.msra.mxu0 %v6594_v42  ;;  %v3263_v22 = vmul.f32 %v8994_v31, %v3220_v33  ;;  %v3262_v0 = vmul.f32 %v8988_v63, %v3219_v17  ;;  %v9353_v62 = vadd.f32 %v9002_v10, %v3261_v54  ;;  %v6656_v33 = vld [vmem:[%s10791_s11 + $0x104] ss:$8 sps:$4 sm:$0xff]  }
 0x77f   : > { %3868 = vmatprep.subr.bf16.mxu0 %v6599_v44  ;;  %v9359_v43 = vadd.f32 %v8999_v27, %v3260_v26  ;;  %v6651_v44 = vld [vmem:[%s10791_s11 + $0xf0] ss:$8 sps:$4 sm:$0xff]  }
 0x780   : > { %10973 = vst [vmem:[#allocation40_spill] sm:$0xff] %v9353_v62  ;;  %v9356_v55 = vadd.f32 %v9002_v10, %v3263_v22  ;;  %v9362_v42 = vadd.f32 %v8999_v27, %v3262_v0  ;;  %v6605_v10 = vld [vmem:[%s10789_s9 + $0x1ec] ss:$16 sps:$4 sm:$0xff]   ;;  %v6603_v27 = vld [vmem:[%s10789_s9 + $0x1e8] ss:$16 sps:$4 sm:$0xff]  }
 0x781   : > { %10975 = vst [vmem:[#allocation42_spill] sm:$0xff] %v9359_v43 }
 0x782   : > { %10974 = vst [vmem:[#allocation41_spill] sm:$0xff] %v9356_v55  ;;  %10976 = vst [vmem:[#allocation43_spill] sm:$0xff] %v9362_v42  ;;  %3869 = vmatpush1.bf16.msra.mxu0 %v6597_v9  ;;  %v3322_v63 = vpack.c.bf16 %v9356_v55, %v9353_v62  ;;  %v3321_v31 = vpack.c.bf16 %v9362_v42, %v9359_v43 }
 0x783   : > { %3870 = vmatprep.subr.bf16.mxu0 %v6602_v38 }
 0x784   : > { %3831 = vmatprep.mubr.bf16.mxu0 %v3322_v63 }
 0x785   : > { %3832 = vmatmul.mubr.bf16.gmra.mrb[172].mxu0 %v3321_v31 }
 0x786   : > { %3871 = vmatpush1.bf16.msra.mxu0 %v6600_v60  ;;  %3874 = vmatprep.mubr.bf16.mxu0 %v9036_v29  ;;  %v6632_v29 = vld [vmem:[%s10791_s11 + $0x84] ss:$8 sps:$4 sm:$0xff]  }
 0x787   : > { %3872 = vmatprep.subr.bf16.mxu0 %v6605_v10  ;;  %4975 = vmatprep.subr.bf16.mxu1 %v6632_v29 }
 0x788   : > { %4976 = vmatpush1.bf16.msra.mxu1 %v6630_v20 }
 0x78a   : > { %3873 = vmatpush1.bf16.msra.mxu0 %v6603_v27 }
 0x78d   : > { %3875 = vmatmul.mubr.bf16.vlgmr.msra.gmra.mrb[176].mxu0 %v9040_v3  ;;  %v6635_v3 = vld [vmem:[%s10791_s11 + $0x94] ss:$8 sps:$4 sm:$0xff]  }
 0x78e   : > { %3884 = vmatprep.mubr.bf16.mxu0 %v9090_v40  ;;  %v6633_v40 = vld [vmem:[%s10791_s11 + $0x90] ss:$8 sps:$4 sm:$0xff]   ;;  %4977 = vmatprep.subr.bf16.mxu1 %v6635_v3 }
 0x78f   : > { %4978 = vmatpush1.bf16.msra.mxu1 %v6633_v40 }
 0x795   : > { %3885 = vmatmul.mubr.bf16.gmra.mrb[180].mxu0 %v9094_v28  ;;  %v6638_v28 = vld [vmem:[%s10791_s11 + $0xa4] ss:$8 sps:$4 sm:$0xff]  }
 0x796   : > { %3894 = vmatprep.mubr.bf16.mxu0 %v9144_v53  ;;  %v6636_v53 = vld [vmem:[%s10791_s11 + $0xa0] ss:$8 sps:$4 sm:$0xff]   ;;  %4979 = vmatprep.subr.bf16.mxu1 %v6638_v28 }
 0x797   : > { %4980 = vmatpush1.bf16.msra.mxu1 %v6636_v53 }
 0x79d   : > { %3895 = vmatmul.mubr.bf16.gmra.mrb[184].mxu0 %v9148_v6  ;;  %v6641_v6 = vld [vmem:[%s10791_s11 + $0xb4] ss:$8 sps:$4 sm:$0xff]  }
 0x79e   : > { %3904 = vmatprep.mubr.bf16.mxu0 %v9198_v12  ;;  %v6639_v12 = vld [vmem:[%s10791_s11 + $0xb0] ss:$8 sps:$4 sm:$0xff]   ;;  %4981 = vmatprep.subr.bf16.mxu1 %v6641_v6 }
 0x79f   : > { %4982 = vmatpush1.bf16.msra.mxu1 %v6639_v12 }
 0x7a5   : > { %3905 = vmatmul.mubr.bf16.gmra.mrb[188].mxu0 %v9202_v18  ;;  %v6644_v18 = vld [vmem:[%s10791_s11 + $0xc4] ss:$8 sps:$4 sm:$0xff]  }
 0x7a6   : > { %3914 = vmatprep.mubr.bf16.mxu0 %v9240_v14  ;;  %v6642_v14 = vld [vmem:[%s10791_s11 + $0xc0] ss:$8 sps:$4 sm:$0xff]   ;;  %4983 = vmatprep.subr.bf16.mxu1 %v6644_v18 }
 0x7a7   : > { %4984 = vmatpush1.bf16.msra.mxu1 %v6642_v14 }
 0x7ad   : > { %3915 = vmatmul.mubr.bf16.gmra.mrb[192].mxu0 %v9244_v51  ;;  %v6647_v51 = vld [vmem:[%s10791_s11 + $0xd4] ss:$8 sps:$4 sm:$0xff]  }
 0x7ae   : > { %3924 = vmatprep.mubr.bf16.mxu0 %v9282_v23  ;;  %v6645_v23 = vld [vmem:[%s10791_s11 + $0xd0] ss:$8 sps:$4 sm:$0xff]   ;;  %4985 = vmatprep.subr.bf16.mxu1 %v6647_v51 }
 0x7af   : > { %4986 = vmatpush1.bf16.msra.mxu1 %v6645_v23 }
 0x7b0   : > { %4987 = vmatprep.subr.bf16.mxu1 %v6650_v2 }
 0x7b5   : > { %3925 = vmatmul.mubr.bf16.gmra.mrb[196].mxu0 %v9286_v58  ;;  %v6648_v58 = vld [vmem:[%s10791_s11 + $0xe0] ss:$8 sps:$4 sm:$0xff]  }
 0x7b6   : > { %3934 = vmatprep.mubr.bf16.mxu0 %v9324_v15  ;;  %4988 = vmatpush1.bf16.msra.mxu1 %v6648_v58  ;;  %v6653_v15 = vld [vmem:[%s10791_s11 + $0xf4] ss:$8 sps:$4 sm:$0xff]  }
 0x7b7   : > { %4989 = vmatprep.subr.bf16.mxu1 %v6653_v15 }
 0x7ba   : > { %4990 = vmatpush1.bf16.msra.mxu1 %v6651_v44 }
 0x7bb   : > { %5072 = vmatprep.subr.bf16.mxu1 %v6656_v33 }
 0x7bd   : > { %3935 = vmatmul.mubr.bf16.gmra.mrb[200].mxu0 %v9328_v45  ;;  %v9445_v45 = vld [vmem:[%s10790_s10] sm:$0xf] }
 0x7be   : > { %3944 = vmatprep.mubr.bf16.mxu0 %v3322_v63  ;;  %v9449_v54 = vrot.slane %v9445_v45, %v7830_v4  ;;  %v9453_v17 = vrot.slane %v9445_v45, %v7839_v24 }
 0x7c5   : > { %3945 = vmatmul.mubr.bf16.gmra.mrb[204].mxu0 %v3321_v31 }
 0x820   : > { %v3763_v26 = vpop.f32.mrb[144].mxu0 }
 0x821   : > { %v3764_v9 = vadd.f32 %v3763_v26, %v9449_v54  ;;  %v3765_v22 = vpop.f32.mrb[145].mxu0 }
 0x822   : > { %v3766_v0 = vadd.f32 %v3765_v22, %v9453_v17  ;;  %v3767_v38 = vpop.f32.mrb[146].mxu0 }
 0x823   : > { %v4019_v63 = vmul.f32 0.044715, %v3764_v9  ;;  %v9458_v31 = vadd.f32 %v3767_v38, %v9449_v54  ;;  %v3769_v60 = vpop.f32.mrb[147].mxu0 }
 0x824   : > { %v4020_v10 = vmul.f32 0.044715, %v3766_v0  ;;  %v9461_v27 = vadd.f32 %v3769_v60, %v9453_v17 }
 0x825   : > { %v4083_v29 = vmul.f32 %v4019_v63, %v3764_v9  ;;  %v4023_v20 = vmul.f32 0.044715, %v9458_v31 }
 0x826   : > { %v4084_v3 = vmul.f32 %v4020_v10, %v3766_v0  ;;  %v4024_v40 = vmul.f32 0.044715, %v9461_v27 }
 0x827   : > { %v4147_v28 = vmul.f32 %v4083_v29, %v3764_v9  ;;  %v4087_v53 = vmul.f32 %v4023_v20, %v9458_v31 }
 0x828   : > { %v4148_v6 = vmul.f32 %v4084_v3, %v3766_v0  ;;  %v4088_v12 = vmul.f32 %v4024_v40, %v9461_v27  ;;  %v3773_v18 = vpop.f32.mrb[148].mxu0 }
 0x829   : > { %v4211_v14 = vadd.f32 %v4147_v28, %v3764_v9  ;;  %v4151_v51 = vmul.f32 %v4087_v53, %v9458_v31  ;;  %v9469_v23 = vadd.f32 %v3773_v18, %v9449_v54  ;;  %v3775_v2 = vpop.f32.mrb[149].mxu0 }
 0x82a   : > { %v4152_v58 = vmul.f32 %v4088_v12, %v9461_v27  ;;  %v3776_v15 = vadd.f32 %v3775_v2, %v9453_v17  ;;  %v3777_v44 = vpop.f32.mrb[150].mxu0  ;;  %v4212_v33 = vadd.f32 %v4148_v6, %v3766_v0 }
 0x82b   : > { %v4275_v26 = vmul.f32 0.7978846, %v4211_v14  ;;  %v4215_v22 = vadd.f32 %v4151_v51, %v9458_v31  ;;  %v4027_v38 = vmul.f32 0.044715, %v9469_v23  ;;  %v9476_v63 = vadd.f32 %v3777_v44, %v9449_v54  ;;  %v3779_v60 = vpop.f32.mrb[151].mxu0 }
 0x82c   : > { %v4028_v10 = vmul.f32 0.044715, %v3776_v15  ;;  %v3780_v29 = vadd.f32 %v3779_v60, %v9453_v17  ;;  %v4216_v20 = vadd.f32 %v4152_v58, %v9461_v27  ;;  %v4276_v3 = vmul.f32 0.7978846, %v4212_v33 }
 0x82d   : > { %6862 = vtanh.f32 %v4275_v26  ;;  %v4279_v40 = vmul.f32 0.7978846, %v4215_v22  ;;  %v4091_v28 = vmul.f32 %v4027_v38, %v9469_v23  ;;  %v4031_v53 = vmul.f32 0.044715, %v9476_v63  ;;  %v10977_v22 = vld [vmem:[#allocation37_spill] sm:$0xff] }
 0x82e   : > { %v4092_v6 = vmul.f32 %v4028_v10, %v3776_v15  ;;  %v4032_v12 = vmul.f32 0.044715, %v3780_v29  ;;  %v4280_v18 = vmul.f32 0.7978846, %v4216_v20  ;;  %6864 = vtanh.f32 %v4276_v3 }
 0x82f   : > { %6866 = vtanh.f32 %v4279_v40  ;;  %v4155_v14 = vmul.f32 %v4091_v28, %v9469_v23  ;;  %v4095_v51 = vmul.f32 %v4031_v53, %v9476_v63  ;;  %v10978_v38 = vsub.s32 2, %v10977_v22 }
 0x830   : > { %v4156_v2 = vmul.f32 %v4092_v6, %v3776_v15  ;;  %v4096_v44 = vmul.f32 %v4032_v12, %v3780_v29  ;;  %v3783_v60 = vpop.f32.mrb[152].mxu0  ;;  %6868 = vtanh.f32 %v4280_v18  ;;  %v3955_v6 = vmul.f32 0.5, %v3764_v9 }
 0x831   : > { %v4159_v58 = vmul.f32 %v4095_v51, %v9476_v63  ;;  %v9486_v33 = vadd.f32 %v3783_v60, %v9449_v54  ;;  %v3785_v26 = vpop.f32.mrb[153].mxu0  ;;  %v9491_v10 = vrot.slane %v9445_v45, %v10978_v38  ;;  %v4219_v53 = vadd.f32 %v4155_v14, %v9469_v23 }
 0x832   : > { %v4160_v20 = vmul.f32 %v4096_v44, %v3780_v29  ;;  %v9494_v3 = vadd.f32 %v3785_v26, %v9453_v17  ;;  %v3787_v40 = vpop.f32.mrb[154].mxu0  ;;  %v4220_v28 = vadd.f32 %v4156_v2, %v3776_v15  ;;  %v3956_v51 = vmul.f32 0.5, %v3766_v0 }
 0x833   : > { %v9498_v12 = vadd.f32 %v3787_v40, %v9449_v54  ;;  %v3789_v18 = vpop.f32.mrb[155].mxu0  ;;  %v4223_v60 = vadd.f32 %v4159_v58, %v9476_v63  ;;  %v4035_v42 = vmul.f32 0.044715, %v9486_v33  ;;  %v4283_v2 = vmul.f32 0.7978846, %v4219_v53 }
 0x834   : > { %v4036_v55 = vmul.f32 0.044715, %v9494_v3  ;;  %v9503_v38 = vadd.f32 %v3789_v18, %v9453_v17  ;;  %v4224_v44 = vadd.f32 %v4160_v20, %v3780_v29  ;;  %v4284_v26 = vmul.f32 0.7978846, %v4220_v28 }
 0x835   : > { %v4287_v62 = vmul.f32 0.7978846, %v4223_v60  ;;  %v10979_v9 = vsub.s32 3, %v10977_v22  ;;  %v3959_v18 = vmul.f32 0.5, %v9458_v31  ;;  %v3960_v20 = vmul.f32 0.5, %v9461_v27 }
 0x836   : > { %v4100_v0 = vmul.f32 %v4036_v55, %v9494_v3  ;;  %v4040_v58 = vmul.f32 0.044715, %v9503_v38  ;;  %v4288_v40 = vmul.f32 0.7978846, %v4224_v44  ;;  %6870 = vtanh.f32 %v4284_v26 }
 0x837   : > { %v9509_v14 = vrot.slane %v9445_v45, %v10979_v9  ;;  %v6863_v43 = vpop.eup %6862  ;;  %v9515_v28 = vmul.f32 0.5, %v3776_v15  ;;  %6872 = vtanh.f32 %v4283_v2  ;;  %v4039_v22 = vmul.f32 0.044715, %v9498_v12 }
 0x838   : > { %v6865_v53 = vpop.eup %6864  ;;  %v4104_v45 = vmul.f32 %v4040_v58, %v9503_v38  ;;  %v3793_v60 = vpop.f32.mrb[156].mxu0  ;;  %v4403_v9 = vadd.f32 1.0, %v6863_v43  ;;  %6874 = vtanh.f32 %v4288_v40  ;;  %v4164_v44 = vmul.f32 %v4100_v0, %v9494_v3 }
 0x839   : > { %v6867_v55 = vpop.eup %6866  ;;  %v3795_v26 = vpop.f32.mrb[157].mxu0  ;;  %v4404_v7 = vadd.f32 1.0, %v6865_v53  ;;  %v9520_v52 = vmul.f32 0.5, %v3780_v29  ;;  %6876 = vtanh.f32 %v4287_v62  ;;  %v4099_v27 = vmul.f32 %v4035_v42, %v9486_v33 }
 0x83a   : > { %v6869_v31 = vpop.eup %6868  ;;  %v4168_v15 = vmul.f32 %v4104_v45, %v9503_v38  ;;  %v9525_v2 = vadd.f32 %v3793_v60, %v9449_v54  ;;  %v3797_v58 = vpop.f32.mrb[158].mxu0  ;;  %v4407_v61 = vadd.f32 1.0, %v6867_v55  ;;  %v9528_v43 = vadd.f32 %v3795_v26, %v9453_v17 }
 0x83b   : > { %v3799_v40 = vpop.f32.mrb[159].mxu0  ;;  %v4408_v0 = vadd.f32 1.0, %v6869_v31  ;;  %v3963_v53 = vmul.f32 0.5, %v9469_v23  ;;  %v3967_v29 = vmul.f32 0.5, %v9476_v63  ;;  %v4103_v62 = vmul.f32 %v4039_v22, %v9498_v12  ;;  %v6654_v63 = vld [vmem:[%s10791_s11 + $0x100] ss:$8 sps:$4 sm:$0xff]  }
 0x83c   : > { %v9534_v42 = vadd.f32 %v3799_v40, %v9453_v17  ;;  %v4467_v45 = vmul.f32 %v4403_v9, %v3955_v6  ;;  %v4471_v16 = vmul.f32 %v4407_v61, %v3959_v18  ;;  %v4468_v60 = vmul.f32 %v4404_v7, %v3956_v51 }
 0x83d   : > { %v4472_v48 = vmul.f32 %v4408_v0, %v3960_v20  ;;  %v4228_v55 = vadd.f32 %v4164_v44, %v9494_v3  ;;  %v9538_v26 = vmul.f32 0.5, %v9486_v33  ;;  %v4163_v31 = vmul.f32 %v4099_v27, %v9486_v33 }
 0x83e   : > { %v4043_v23 = vmul.f32 0.044715, %v9525_v2  ;;  %v4531_v35 = vpack.c.bf16 %v4471_v16, %v4467_v45  ;;  %v4232_v22 = vadd.f32 %v4168_v15, %v9503_v38  ;;  %v4044_v61 = vmul.f32 0.044715, %v9528_v43  ;;  %v6659_v16 = vld [vmem:[%s10791_s11 + $0x114] ss:$8 sps:$4 sm:$0xff]  }
 0x83f   : > { %v4048_v7 = vmul.f32 0.044715, %v9534_v42  ;;  %v4532_v6 = vpack.c.bf16 %v4472_v48, %v4468_v60  ;;  %v4292_v51 = vmul.f32 0.7978846, %v4228_v55  ;;  %v4167_v20 = vmul.f32 %v4103_v62, %v9498_v12 }
 0x840   : > { %v6871_v18 = vpop.eup %6870  ;;  %v9550_v9 = vadd.f32 %v3797_v58, %v9449_v54  ;;  %v3803_v44 = vpop.f32.mrb[160].mxu0  ;;  %v9556_v27 = vmul.f32 0.5, %v9494_v3  ;;  %v4296_v15 = vmul.f32 0.7978846, %v4232_v22  ;;  %v9562_v62 = vmul.f32 0.5, %v9503_v38 }
 0x841   : > { %v6873_v40 = vpop.eup %6872  ;;  %v9559_v0 = vadd.f32 %v3803_v44, %v9449_v54  ;;  %v3805_v48 = vpop.f32.mrb[161].mxu0  ;;  %4991 = vmatprep.mubr.bf16.mxu1 %v4532_v6  ;;  %v4412_v45 = vadd.f32 1.0, %v6871_v18  ;;  %6878 = vtanh.f32 %v4292_v51  ;;  %v4107_v60 = vmul.f32 %v4043_v23, %v9525_v2  ;;  %v6657_v23 = vld [vmem:[%s10791_s11 + $0x110] ss:$8 sps:$4 sm:$0xff]  }
 0x842   : > { %v6875_v58 = vpop.eup %6874  ;;  %v9566_v55 = vadd.f32 %v3805_v48, %v9453_v17  ;;  %v3807_v3 = vpop.f32.mrb[162].mxu0  ;;  %4992 = vmatmul.mubr.bf16.vlgmr.msra.gmra.mrb[112].mxu1 %v4531_v35  ;;  %v4411_v22 = vadd.f32 1.0, %v6873_v40  ;;  %6880 = vtanh.f32 %v4296_v15  ;;  %v4108_v44 = vmul.f32 %v4044_v61, %v9528_v43  ;;  %v6662_v35 = vld [vmem:[%s10791_s11 + $0x124] ss:$8 sps:$4 sm:$0xff]  }
 0x843   : > { %v6877_v49 = vpop.eup %6876  ;;  %v4112_v6 = vmul.f32 %v4048_v7, %v9534_v42  ;;  %v9571_v18 = vadd.f32 %v3807_v3, %v9449_v54  ;;  %v3809_v38 = vpop.f32.mrb[163].mxu0  ;;  %5073 = vmatpush1.bf16.msra.mxu1 %v6654_v63  ;;  %v4416_v51 = vadd.f32 1.0, %v6875_v58  ;;  %v4047_v15 = vmul.f32 0.044715, %v9550_v9 }
 0x844   : > { %v4051_v61 = vmul.f32 0.044715, %v9559_v0  ;;  %v9582_v7 = vadd.f32 %v3809_v38, %v9453_v17  ;;  %5074 = vmatprep.subr.bf16.mxu1 %v6659_v16  ;;  %v4415_v40 = vadd.f32 1.0, %v6877_v49  ;;  %v4052_v63 = vmul.f32 0.044715, %v9566_v55 }
 0x845   : > { %v4476_v48 = vmul.f32 %v4412_v45, %v9515_v28  ;;  %v4480_v3 = vmul.f32 %v4416_v51, %v9520_v52  ;;  %v4227_v58 = vadd.f32 %v4163_v31, %v9486_v33  ;;  %v4055_v13 = vmul.f32 0.044715, %v9571_v18  ;;  %v6660_v28 = vld [vmem:[%s10791_s11 + $0x120] ss:$8 sps:$4 sm:$0xff]   ;;  %v6665_v52 = vld [vmem:[%s10791_s11 + $0x134] ss:$8 sps:$4 sm:$0xff]  }
 0x846   : > { %v4475_v41 = vmul.f32 %v4411_v22, %v3963_v53  ;;  %v4479_v34 = vmul.f32 %v4415_v40, %v3967_v29  ;;  %v4231_v30 = vadd.f32 %v4167_v20, %v9498_v12  ;;  %v4172_v46 = vmul.f32 %v4108_v44, %v9528_v43 }
 0x847   : > { %v4176_v38 = vmul.f32 %v4112_v6, %v9534_v42  ;;  %5075 = vmatpush1.bf16.msra.mxu1 %v6657_v23  ;;  %v4536_v49 = vpack.c.bf16 %v4480_v3, %v4476_v48  ;;  %v4291_v33 = vmul.f32 0.7978846, %v4227_v58  ;;  %v4111_v53 = vmul.f32 %v4047_v15, %v9550_v9 }
 0x848   : > { %v4056_v29 = vmul.f32 0.044715, %v9582_v7  ;;  %v3813_v31 = vpop.f32.mrb[164].mxu0  ;;  %v4535_v20 = vpack.c.bf16 %v4479_v34, %v4475_v41  ;;  %5076 = vmatprep.subr.bf16.mxu1 %v6662_v35  ;;  %v4295_v16 = vmul.f32 0.7978846, %v4231_v30  ;;  %v4171_v45 = vmul.f32 %v4107_v60, %v9525_v2 }
 0x849   : > { %v4115_v22 = vmul.f32 %v4051_v61, %v9559_v0  ;;  %v9603_v44 = vadd.f32 %v3813_v31, %v9449_v54  ;;  %v3815_v6 = vpop.f32.mrb[165].mxu0  ;;  %5001 = vmatprep.mubr.bf16.mxu1 %v4536_v49  ;;  %6882 = vtanh.f32 %v4291_v33  ;;  %v4116_v23 = vmul.f32 %v4052_v63, %v9566_v55  ;;  %v6663_v35 = vld [vmem:[%s10791_s11 + $0x130] ss:$8 sps:$4 sm:$0xff]  }
 0x84a   : > { %v4119_v51 = vmul.f32 %v4055_v13, %v9571_v18  ;;  %v9608_v15 = vadd.f32 %v3815_v6, %v9453_v17  ;;  %v3817_v41 = vpop.f32.mrb[166].mxu0  ;;  %5002 = vmatmul.mubr.bf16.gmra.mrb[116].mxu1 %v4535_v20  ;;  %6884 = vtanh.f32 %v4295_v16  ;;  %v9617_v61 = vmul.f32 0.5, %v9498_v12  ;;  %v6666_v6 = vld [vmem:[%s10791_s11 + $0x140] ss:$8 sps:$4 sm:$0xff]  }
 0x84b   : > { %v6879_v30 = vpop.eup %6878  ;;  %v9611_v34 = vadd.f32 %v3817_v41, %v9449_v54  ;;  %v3819_v60 = vpop.f32.mrb[167].mxu0  ;;  %5077 = vmatpush1.bf16.msra.mxu1 %v6660_v28  ;;  %v4236_v13 = vadd.f32 %v4172_v46, %v9528_v43  ;;  %v4240_v40 = vadd.f32 %v4176_v38, %v9534_v42  ;;  %v4175_v48 = vmul.f32 %v4111_v53, %v9550_v9  ;;  %v6668_v28 = vld [vmem:[%s10791_s11 + $0x144] ss:$8 sps:$4 sm:$0xff]  }
 0x84c   : > { %v6881_v63 = vpop.eup %6880  ;;  %v4120_v3 = vmul.f32 %v4056_v29, %v9582_v7  ;;  %v9624_v58 = vadd.f32 %v3819_v60, %v9453_v17  ;;  %5078 = vmatprep.subr.bf16.mxu1 %v6665_v52  ;;  %v4420_v49 = vadd.f32 1.0, %v6879_v30  ;;  %v9630_v12 = vmul.f32 %v4115_v22, %v9559_v0  ;;  %v6671_v30 = vld [vmem:[%s10791_s11 + $0x154] ss:$8 sps:$4 sm:$0xff]  }
 0x84d   : > { %v4059_v46 = vmul.f32 0.044715, %v9603_v44  ;;  %v4424_v38 = vadd.f32 1.0, %v6881_v63  ;;  %v4300_v33 = vmul.f32 0.7978846, %v4236_v13  ;;  %v4180_v53 = vmul.f32 %v4116_v23, %v9566_v55 }
 0x84e   : > { %v9635_v29 = vmul.f32 %v4119_v51, %v9571_v18  ;;  %v4060_v31 = vmul.f32 0.044715, %v9608_v15  ;;  %v4304_v52 = vmul.f32 0.7978846, %v4240_v40  ;;  %v4063_v20 = vmul.f32 0.044715, %v9611_v34 }
 0x84f   : > { %5079 = vmatpush1.bf16.msra.mxu1 %v6663_v35  ;;  %v4484_v16 = vmul.f32 %v4420_v49, %v9556_v27  ;;  %v4488_v22 = vmul.f32 %v4424_v38, %v9562_v62  ;;  %6886 = vtanh.f32 %v4300_v33  ;;  %v4184_v23 = vmul.f32 %v4120_v3, %v9582_v7 }
 0x850   : > { %v4064_v51 = vmul.f32 0.044715, %v9624_v58  ;;  %v3823_v41 = vpop.f32.mrb[168].mxu0  ;;  %5080 = vmatprep.subr.bf16.mxu1 %v6668_v28  ;;  %v9650_v60 = vmul.f32 0.5, %v9528_v43  ;;  %6888 = vtanh.f32 %v4304_v52  ;;  %v4123_v27 = vmul.f32 %v4059_v46, %v9603_v44 }
 0x851   : > { %v9654_v62 = vadd.f32 %v3823_v41, %v9449_v54  ;;  %v3825_v35 = vpop.f32.mrb[169].mxu0  ;;  %v4540_v13 = vpack.c.bf16 %v4488_v22, %v4484_v16  ;;  %v4235_v40 = vadd.f32 %v4171_v45, %v9525_v2  ;;  %v4124_v63 = vmul.f32 %v4060_v31, %v9608_v15  ;;  %v6669_v45 = vld [vmem:[%s10791_s11 + $0x150] ss:$8 sps:$4 sm:$0xff]  }
 0x852   : > { %v9659_v3 = vadd.f32 %v3825_v35, %v9453_v17  ;;  %v3827_v49 = vpop.f32.mrb[170].mxu0  ;;  %v9662_v28 = vmul.f32 0.5, %v9534_v42  ;;  %v4239_v43 = vadd.f32 %v4175_v48, %v9550_v9  ;;  %v4127_v46 = vmul.f32 %v4063_v20, %v9611_v34 }
 0x853   : > { %v6883_v38 = vpop.eup %6882  ;;  %5011 = vmatprep.mubr.bf16.mxu1 %v4540_v13  ;;  %v9667_v33 = vadd.f32 %v3827_v49, %v9449_v54  ;;  %v3829_v52 = vpop.f32.mrb[171].mxu0  ;;  %5081 = vmatpush1.bf16.msra.mxu1 %v6666_v6  ;;  %v9673_v31 = vmul.f32 0.5, %v9525_v2  ;;  %v4299_v42 = vmul.f32 0.7978846, %v4235_v40  ;;  %v4128_v48 = vmul.f32 %v4064_v51, %v9624_v58  ;;  %v6674_v6 = vld [vmem:[%s10791_s11 + $0x164] ss:$8 sps:$4 sm:$0xff]  }
 0x854   : > { %v6885_v16 = vpop.eup %6884  ;;  %v4419_v22 = vadd.f32 1.0, %v6883_v38  ;;  %v9677_v20 = vadd.f32 %v3829_v52, %v9453_v17  ;;  %5082 = vmatprep.subr.bf16.mxu1 %v6671_v30  ;;  %v4303_v41 = vmul.f32 0.7978846, %v4239_v43  ;;  %v9683_v35 = vmul.f32 %v4123_v27, %v9603_v44 }
 0x855   : > { %v4067_v2 = vmul.f32 0.044715, %v9654_v62  ;;  %v4423_v13 = vadd.f32 1.0, %v6885_v16  ;;  %6890 = vtanh.f32 %v4299_v42  ;;  %v9687_v40 = vmul.f32 %v4124_v63, %v9608_v15  ;;  %v6672_v16 = vld [vmem:[%s10791_s11 + $0x160] ss:$8 sps:$4 sm:$0xff]  }
 0x856   : > { %v4068_v51 = vmul.f32 0.044715, %v9659_v3  ;;  %v9691_v49 = vmul.f32 0.5, %v9550_v9  ;;  %6892 = vtanh.f32 %v4303_v41  ;;  %v4071_v30 = vmul.f32 0.044715, %v9667_v33 }
 0x857   : > { %v4483_v43 = vmul.f32 %v4419_v22, %v9538_v26  ;;  %v4487_v27 = vmul.f32 %v4423_v13, %v9617_v61  ;;  %5083 = vmatpush1.bf16.msra.mxu1 %v6669_v45  ;;  %v4244_v38 = vadd.f32 %v4180_v53, %v9566_v55  ;;  %v9698_v52 = vmul.f32 %v4127_v46, %v9611_v34 }
 0x858   : > { %v9701_v63 = vmul.f32 %v4128_v48, %v9624_v58  ;;  %v4072_v42 = vmul.f32 0.044715, %v9677_v20  ;;  %v3833_v9 = vpop.f32.mrb[172].mxu0  ;;  %5084 = vmatprep.subr.bf16.mxu1 %v6674_v6  ;;  %v4248_v26 = vadd.f32 %v4184_v23, %v9582_v7  ;;  %v4131_v45 = vmul.f32 %v4067_v2, %v9654_v62  ;;  %v6677_v48 = vld [vmem:[%s10791_s11 + $0x174] ss:$8 sps:$4 sm:$0xff]  }
 0x859   : > { %v6887_v61 = vpop.eup %6886  ;;  %v4539_v53 = vpack.c.bf16 %v4487_v27, %v4483_v43  ;;  %v9710_v46 = vadd.f32 %v3833_v9, %v9449_v54  ;;  %v3835_v22 = vpop.f32.mrb[173].mxu0  ;;  %v4308_v41 = vmul.f32 0.7978846, %v4244_v38  ;;  %v4132_v19 = vmul.f32 %v4068_v51, %v9659_v3 }
 0x85a   : > { %v6889_v13 = vpop.eup %6888  ;;  %v9717_v6 = vadd.f32 %v3835_v22, %v9453_v17  ;;  %v4428_v23 = vadd.f32 1.0, %v6887_v61  ;;  %v3837_v57 = vpop.f32.mrb[174].mxu0  ;;  %v4312_v32 = vmul.f32 0.7978846, %v4248_v26  ;;  %v4135_v2 = vmul.f32 %v4071_v30, %v9667_v33  ;;  %v6675_v26 = vld [vmem:[%s10791_s11 + $0x170] ss:$8 sps:$4 sm:$0xff]  }
 0x85b   : > { %5012 = vmatmul.mubr.bf16.gmra.mrb[120].mxu1 %v4539_v53  ;;  %v4432_v43 = vadd.f32 1.0, %v6889_v13  ;;  %v9721_v27 = vadd.f32 %v3837_v57, %v9449_v54  ;;  %v3839_v9 = vpop.f32.mrb[175].mxu0  ;;  %6894 = vtanh.f32 %v4308_v41  ;;  %v4136_v38 = vmul.f32 %v4072_v42, %v9677_v20 }
 0x85c   : > { %v4075_v50 = vmul.f32 0.044715, %v9710_v46  ;;  %v9726_v51 = vadd.f32 %v3839_v9, %v9453_v17  ;;  %5085 = vmatpush1.bf16.msra.mxu1 %v6672_v16  ;;  %6896 = vtanh.f32 %v4312_v32  ;;  %v4492_v30 = vmul.f32 %v4428_v23, %v9650_v60  ;;  %v6680_v17 = vld [vmem:[%s10791_s11 + $0x184] ss:$8 sps:$4 sm:$0xff]   ;;  %v6683_v23 = vld [vmem:[%s10791_s11 + $0x194] ss:$8 sps:$4 sm:$0xff]  }
 0x85d   : > { %v4496_v57 = vmul.f32 %v4432_v43, %v9662_v28  ;;  %5086 = vmatprep.subr.bf16.mxu1 %v6677_v48  ;;  %v9734_v54 = vmul.f32 0.5, %v9566_v55  ;;  %v9737_v42 = vmul.f32 0.5, %v9582_v7  ;;  %v9743_v16 = vmul.f32 %v4131_v45, %v9654_v62  ;;  %v6678_v45 = vld [vmem:[%s10791_s11 + $0x180] ss:$8 sps:$4 sm:$0xff]  }
 0x85e   : > { %v4076_v32 = vmul.f32 0.044715, %v9717_v6  ;;  %v4243_v60 = vadd.f32 %v9630_v12, %v9559_v0  ;;  %v4247_v28 = vadd.f32 %v9635_v29, %v9571_v18  ;;  %v9751_v61 = vmul.f32 %v4132_v19, %v9659_v3 }
 0x85f   : > { %v6891_v55 = vpop.eup %6890  ;;  %v9754_v7 = vmul.f32 %v4135_v2, %v9667_v33  ;;  %v4544_v53 = vpack.c.bf16 %v4496_v57, %v4492_v30  ;;  %v9757_v22 = vmul.f32 0.5, %v9559_v0  ;;  %v9763_v12 = vmul.f32 %v4136_v38, %v9677_v20 }
 0x860   : > { %v6893_v48 = vpop.eup %6892  ;;  %v4139_v29 = vmul.f32 %v4075_v50, %v9710_v46  ;;  %v4427_v41 = vadd.f32 1.0, %v6891_v55  ;;  %5087 = vmatpush1.bf16.msra.mxu1 %v6675_v26  ;;  %v3876_v19 = vpop.f32.mrb[176].mxu0  ;;  %v4307_v13 = vmul.f32 0.7978846, %v4243_v60  ;;  %v4079_v0 = vmul.f32 0.044715, %v9721_v27 }
 0x861   : > { %5021 = vmatprep.mubr.bf16.mxu1 %v4544_v53  ;;  %v4431_v2 = vadd.f32 1.0, %v6893_v48  ;;  %v9771_v43 = vadd.f32 %v3876_v19, %v9491_v10  ;;  %v3878_v9 = vpop.f32.mrb[177].mxu0  ;;  %v4311_v38 = vmul.f32 0.7978846, %v4247_v28  ;;  %5088 = vmatprep.subr.bf16.mxu1 %v6680_v17  ;;  %v4140_v50 = vmul.f32 %v4076_v32, %v9717_v6 }
 0x862   : > { %v9775_v26 = vadd.f32 %v3878_v9, %v9509_v14  ;;  %v3880_v30 = vpop.f32.mrb[178].mxu0  ;;  %v9778_v57 = vmul.f32 0.5, %v9571_v18  ;;  %6898 = vtanh.f32 %v4307_v13  ;;  %v4491_v60 = vmul.f32 %v4427_v41, %v9673_v31  ;;  %v6681_v18 = vld [vmem:[%s10791_s11 + $0x190] ss:$8 sps:$4 sm:$0xff]  }
 0x863   : > { %v4495_v55 = vmul.f32 %v4431_v2, %v9691_v49  ;;  %v4021_v53 = vmul.f32 0.044715, %v9771_v43  ;;  %v3881_v48 = vadd.f32 %v3880_v30, %v9491_v10  ;;  %v3882_v28 = vpop.f32.mrb[179].mxu0  ;;  %v9785_v17 = vmul.f32 %v4139_v29, %v9710_v46  ;;  %v6686_v29 = vld [vmem:[%s10791_s11 + $0x1a4] ss:$8 sps:$4 sm:$0xff]  }
 0x864   : > { %v4080_v32 = vmul.f32 0.044715, %v9726_v51  ;;  %6900 = vtanh.f32 %v4311_v38  ;;  %v9789_v19 = vadd.f32 %v3882_v28, %v9509_v14  ;;  %5089 = vmatpush1.bf16.msra.mxu1 %v6678_v45  ;;  %v4022_v13 = vmul.f32 0.044715, %v9775_v26 }
 0x865   : > { %v6895_v31 = vpop.eup %6894  ;;  %v4543_v49 = vpack.c.bf16 %v4495_v55, %v4491_v60  ;;  %v4085_v41 = vmul.f32 %v4021_v53, %v9771_v43  ;;  %v4025_v2 = vmul.f32 0.044715, %v3881_v48  ;;  %5090 = vmatprep.subr.bf16.mxu1 %v6683_v23  ;;  %v4143_v38 = vmul.f32 %v4079_v0, %v9721_v27 }
 0x866   : > { %v6897_v9 = vpop.eup %6896  ;;  %v4436_v45 = vadd.f32 1.0, %v6895_v31  ;;  %v4026_v30 = vmul.f32 0.044715, %v9789_v19  ;;  %v4252_v28 = vadd.f32 %v9687_v40, %v9608_v15  ;;  %v4256_v23 = vadd.f32 %v9701_v63, %v9624_v58  ;;  %v6684_v40 = vld [vmem:[%s10791_s11 + $0x1a0] ss:$8 sps:$4 sm:$0xff]  }
 0x867   : > { %5022 = vmatmul.mubr.bf16.gmra.mrb[124].mxu1 %v4543_v49  ;;  %v4149_v60 = vmul.f32 %v4085_v41, %v9771_v43  ;;  %v4440_v55 = vadd.f32 1.0, %v6897_v9  ;;  %v4089_v53 = vmul.f32 %v4025_v2, %v3881_v48  ;;  %v9807_v56 = vmul.f32 %v4140_v50, %v9717_v6 }
 0x868   : > { %v4144_v5 = vmul.f32 %v4080_v32, %v9726_v51  ;;  %5091 = vmatpush1.bf16.msra.mxu1 %v6681_v18  ;;  %v3886_v0 = vpop.f32.mrb[180].mxu0  ;;  %v9811_v31 = vmul.f32 0.5, %v9608_v15  ;;  %v4316_v25 = vmul.f32 0.7978846, %v4252_v28  ;;  %v4086_v49 = vmul.f32 %v4022_v13, %v9775_v26  ;;  %v6689_v32 = vld [vmem:[%s10791_s11 + $0x1b4] ss:$8 sps:$4 sm:$0xff]  }
 0x869   : > { %v4500_v41 = vmul.f32 %v4436_v45, %v9734_v54  ;;  %v4504_v63 = vmul.f32 %v4440_v55, %v9737_v42  ;;  %v4153_v50 = vmul.f32 %v4089_v53, %v3881_v48  ;;  %v3888_v2 = vpop.f32.mrb[181].mxu0  ;;  %5092 = vmatprep.subr.bf16.mxu1 %v6686_v29  ;;  %v4213_v15 = vadd.f32 %v4149_v60, %v9771_v43 }
 0x86a   : > { %v9824_v18 = vadd.f32 %v3886_v0, %v9491_v10  ;;  %v4320_v9 = vmul.f32 0.7978846, %v4256_v23  ;;  %6902 = vtanh.f32 %v4316_v25  ;;  %v3890_v28 = vpop.f32.mrb[182].mxu0  ;;  %v9827_v13 = vmul.f32 %v4143_v38, %v9721_v27  ;;  %v6687_v25 = vld [vmem:[%s10791_s11 + $0x1b0] ss:$8 sps:$4 sm:$0xff]  }
 0x86b   : > { %v4548_v54 = vpack.c.bf16 %v4504_v63, %v4500_v41  ;;  %v4090_v42 = vmul.f32 %v4026_v30, %v9789_v19  ;;  %v9831_v29 = vadd.f32 %v3888_v2, %v9509_v14  ;;  %v3892_v45 = vpop.f32.mrb[183].mxu0  ;;  %v9834_v53 = vmul.f32 %v4144_v5, %v9726_v51  ;;  %v6692_v41 = vld [vmem:[%s10791_s11 + $0x1c4] ss:$8 sps:$4 sm:$0xff]  }
 0x86c   : > { %v6899_v55 = vpop.eup %6898  ;;  %v4217_v60 = vadd.f32 %v4153_v50, %v3881_v48  ;;  %6904 = vtanh.f32 %v4320_v9  ;;  %v9837_v23 = vadd.f32 %v3890_v28, %v9491_v10  ;;  %5093 = vmatpush1.bf16.msra.mxu1 %v6684_v40  ;;  %v9843_v38 = vmul.f32 0.5, %v9771_v43 }
 0x86d   : > { %5031 = vmatprep.mubr.bf16.mxu1 %v4548_v54  ;;  %v9845_v30 = vmul.f32 0.5, %v3881_v48  ;;  %v4435_v0 = vadd.f32 1.0, %v6899_v55  ;;  %v9848_v5 = vmul.f32 0.5, %v9624_v58  ;;  %5094 = vmatprep.subr.bf16.mxu1 %v6689_v32  ;;  %v4277_v63 = vmul.f32 0.7978846, %v4213_v15 }
 0x86e   : > { %v6901_v40 = vpop.eup %6900  ;;  %v9854_v50 = vmul.f32 %v4086_v49, %v9775_v26  ;;  %v4029_v43 = vmul.f32 0.044715, %v9824_v18  ;;  %v4251_v48 = vadd.f32 %v9683_v35, %v9603_v44  ;;  %v6690_v58 = vld [vmem:[%s10791_s11 + $0x1c0] ss:$8 sps:$4 sm:$0xff]   ;;  %v9863_v32 = vmul.f32 %v4090_v42, %v9789_v19 }
 0x86f   : > { %v4439_v2 = vadd.f32 1.0, %v6901_v40  ;;  %v4030_v9 = vmul.f32 0.044715, %v9831_v29  ;;  %v4033_v15 = vmul.f32 0.044715, %v9837_v23  ;;  %v9868_v49 = vmul.f32 0.5, %v9603_v44 }
 0x870   : > { %v4281_v28 = vmul.f32 0.7978846, %v4217_v60  ;;  %v4255_v54 = vadd.f32 %v9698_v52, %v9611_v34  ;;  %v4315_v35 = vmul.f32 0.7978846, %v4251_v48  ;;  %5095 = vmatpush1.bf16.msra.mxu1 %v6687_v25  ;;  %v3896_v55 = vpop.f32.mrb[184].mxu0  ;;  %v4499_v8 = vmul.f32 %v4435_v0, %v9757_v22 }
 0x871   : > { %v4503_v40 = vmul.f32 %v4439_v2, %v9778_v57  ;;  %v9875_v42 = vadd.f32 %v3892_v45, %v9509_v14  ;;  %v9878_v11 = vadd.f32 %v3896_v55, %v9491_v10  ;;  %v3898_v60 = vpop.f32.mrb[185].mxu0  ;;  %5096 = vmatprep.subr.bf16.mxu1 %v6692_v41  ;;  %v6695_v44 = vld [vmem:[%s10791_s11 + $0x1d4] ss:$8 sps:$4 sm:$0xff]   ;;  %v4093_v52 = vmul.f32 %v4029_v43, %v9824_v18 }
 0x872   : > { %v4319_v25 = vmul.f32 0.7978846, %v4255_v54  ;;  %6906 = vtanh.f32 %v4315_v35  ;;  %v9885_v22 = vadd.f32 %v3898_v60, %v9509_v14  ;;  %v3900_v57 = vpop.f32.mrb[186].mxu0  ;;  %v4094_v0 = vmul.f32 %v4030_v9, %v9831_v29 }
 0x873   : > { %6908 = vtanh.f32 %v4277_v63  ;;  %v4547_v45 = vpack.c.bf16 %v4503_v40, %v4499_v8  ;;  %v4097_v48 = vmul.f32 %v4033_v15, %v9837_v23  ;;  %v3902_v2 = vpop.f32.mrb[187].mxu0  ;;  %v4034_v55 = vmul.f32 0.044715, %v9875_v42  ;;  %v6693_v8 = vld [vmem:[%s10791_s11 + $0x1d0] ss:$8 sps:$4 sm:$0xff]  }
 0x874   : > { %v6903_v41 = vpop.eup %6902  ;;  %6910 = vtanh.f32 %v4319_v25  ;;  %v4260_v43 = vadd.f32 %v9751_v61, %v9659_v3  ;;  %v4264_v54 = vadd.f32 %v9763_v12, %v9677_v20  ;;  %5097 = vmatpush1.bf16.msra.mxu1 %v6690_v58  ;;  %v9898_v9 = vmul.f32 0.5, %v9611_v34  ;;  %v6698_v61 = vld [vmem:[%s10791_s11 + $0x1e4] ss:$8 sps:$4 sm:$0xff]  }
 0x875   : > { %6912 = vtanh.f32 %v4281_v28  ;;  %5032 = vmatmul.mubr.bf16.gmra.mrb[128].mxu1 %v4547_v45  ;;  %v4444_v63 = vadd.f32 1.0, %v6903_v41  ;;  %v4037_v15 = vmul.f32 0.044715, %v9878_v11  ;;  %5098 = vmatprep.subr.bf16.mxu1 %v6695_v44  ;;  %v9905_v12 = vmul.f32 %v4093_v52, %v9824_v18 }
 0x876   : > { %v6905_v35 = vpop.eup %6904  ;;  %v4038_v58 = vmul.f32 0.044715, %v9885_v22  ;;  %v4324_v40 = vmul.f32 0.7978846, %v4260_v43  ;;  %v4328_v28 = vmul.f32 0.7978846, %v4264_v54  ;;  %v9909_v60 = vmul.f32 %v4094_v0, %v9831_v29 }
 0x877   : > { %v4448_v34 = vadd.f32 1.0, %v6905_v35  ;;  %v9912_v25 = vmul.f32 %v4097_v48, %v9837_v23  ;;  %v9915_v44 = vmul.f32 0.5, %v9659_v3  ;;  %v4508_v45 = vmul.f32 %v4444_v63, %v9811_v31  ;;  %v6696_v0 = vld [vmem:[%s10791_s11 + $0x1e0] ss:$8 sps:$4 sm:$0xff]  }
 0x878   : > { %v4098_v41 = vmul.f32 %v4034_v55, %v9875_v42  ;;  %6914 = vtanh.f32 %v4324_v40  ;;  %v9920_v52 = vadd.f32 %v3900_v57, %v9491_v10  ;;  %5099 = vmatpush1.bf16.msra.mxu1 %v6693_v8  ;;  %v3906_v43 = vpop.f32.mrb[188].mxu0  ;;  %v4259_v3 = vadd.f32 %v9743_v16, %v9654_v62  ;;  %v6701_v57 = vld [vmem:[%s10791_s11 + $0x1f4] ss:$8 sps:$4 sm:$0xff]  }
 0x879   : > { %v4512_v48 = vmul.f32 %v4448_v34, %v9848_v5  ;;  %6916 = vtanh.f32 %v4328_v28  ;;  %v4263_v31 = vadd.f32 %v9754_v7, %v9667_v33  ;;  %v3908_v55 = vpop.f32.mrb[189].mxu0  ;;  %5100 = vmatprep.subr.bf16.mxu1 %v6698_v61  ;;  %v4101_v54 = vmul.f32 %v4037_v15, %v9878_v11  ;;  %v6699_v7 = vld [vmem:[%s10791_s11 + $0x1f0] ss:$8 sps:$4 sm:$0xff]  }
 0x87a   : > { %v4102_v8 = vmul.f32 %v4038_v58, %v9885_v22  ;;  %v9936_v63 = vadd.f32 %v3902_v2, %v9509_v14  ;;  %v9939_v5 = vadd.f32 %v3906_v43, %v9491_v10  ;;  %v3910_v16 = vpop.f32.mrb[190].mxu0  ;;  %v4323_v35 = vmul.f32 0.7978846, %v4259_v3 }
 0x87b   : > { %v4552_v61 = vpack.c.bf16 %v4512_v48, %v4508_v45  ;;  %v4327_v40 = vmul.f32 0.7978846, %v4263_v31  ;;  %v9945_v28 = vadd.f32 %v3908_v55, %v9509_v14  ;;  %v3912_v15 = vpop.f32.mrb[191].mxu0  ;;  %v4008_v58 = vmul.f32 0.5, %v9677_v20 }
 0x87c   : > { %v6907_v34 = vpop.eup %6906  ;;  %v4041_v2 = vmul.f32 0.044715, %v9920_v52  ;;  %v9950_v43 = vmul.f32 0.5, %v9654_v62  ;;  %v4042_v47 = vmul.f32 0.044715, %v9936_v63  ;;  %5101 = vmatpush1.bf16.msra.mxu1 %v6696_v0  ;;  %v9956_v48 = vmul.f32 %v4098_v41, %v9875_v42 }
 0x87d   : > { %v9953_v36 = vpop.eup %6908  ;;  %5041 = vmatprep.mubr.bf16.mxu1 %v4552_v61  ;;  %v4443_v45 = vadd.f32 1.0, %v6907_v34  ;;  %6918 = vtanh.f32 %v4323_v35  ;;  %v4268_v3 = vadd.f32 %v9807_v56, %v9717_v6  ;;  %5102 = vmatprep.subr.bf16.mxu1 %v6701_v57  ;;  %v9961_v31 = vmul.f32 %v4101_v54, %v9878_v11 }
 0x87e   : > { %v6911_v20 = vpop.eup %6910  ;;  %v9964_v62 = vmul.f32 %v4102_v8, %v9885_v22  ;;  %6920 = vtanh.f32 %v4327_v40  ;;  %v4045_v0 = vmul.f32 0.044715, %v9939_v5  ;;  %v4046_v41 = vmul.f32 0.044715, %v9945_v28 }
 0x87f   : > { %v9967_v55 = vpop.eup %6912  ;;  %v4447_v61 = vadd.f32 1.0, %v6911_v20  ;;  %v4272_v35 = vadd.f32 %v9834_v53, %v9726_v51  ;;  %v4332_v56 = vmul.f32 0.7978846, %v4268_v3  ;;  %v4105_v57 = vmul.f32 %v4041_v2, %v9920_v52 }
 0x880   : > { %v4007_v54 = vmul.f32 0.5, %v9667_v33  ;;  %v4106_v34 = vmul.f32 %v4042_v47, %v9936_v63  ;;  %v9976_v8 = vadd.f32 %v3910_v16, %v9491_v10  ;;  %5103 = vmatpush1.bf16.msra.mxu1 %v6699_v7  ;;  %v3916_v40 = vpop.f32.mrb[192].mxu0  ;;  %v4507_v21 = vmul.f32 %v4443_v45, %v9868_v49 }
 0x881   : > { %v4511_v20 = vmul.f32 %v4447_v61, %v9898_v9  ;;  %v4336_v39 = vmul.f32 0.7978846, %v4272_v35  ;;  %6922 = vtanh.f32 %v4332_v56  ;;  %v3918_v59 = vpop.f32.mrb[193].mxu0  ;;  %v4109_v3 = vmul.f32 %v4045_v0, %v9939_v5 }
 0x882   : > { %v6915_v53 = vpop.eup %6914  ;;  %v4049_v2 = vmul.f32 0.044715, %v9976_v8  ;;  %v4267_v47 = vadd.f32 %v9785_v17, %v9710_v46  ;;  %v4271_v33 = vadd.f32 %v9827_v13, %v9721_v27  ;;  %v3920_v16 = vpop.f32.mrb[194].mxu0  ;;  %v4110_v9 = vmul.f32 %v4046_v41, %v9945_v28 }
 0x883   : > { %v6917_v7 = vpop.eup %6916  ;;  %v4551_v37 = vpack.c.bf16 %v4511_v20, %v4507_v21  ;;  %v4452_v49 = vadd.f32 1.0, %v6915_v53  ;;  %6924 = vtanh.f32 %v4336_v39  ;;  %v3922_v45 = vpop.f32.mrb[195].mxu0  ;;  %v4012_v35 = vmul.f32 0.5, %v9717_v6 }
 0x884   : > { %v4456_v61 = vadd.f32 1.0, %v6917_v7  ;;  %v4331_v0 = vmul.f32 0.7978846, %v4267_v47  ;;  %v4335_v56 = vmul.f32 0.7978846, %v4271_v33  ;;  %v9989_v1 = vmul.f32 %v4105_v57, %v9920_v52 }
 0x885   : > { %5042 = vmatmul.mubr.bf16.gmra.mrb[132].mxu1 %v4551_v37  ;;  %v9992_v17 = vmul.f32 %v4106_v34, %v9936_v63  ;;  %v4016_v13 = vmul.f32 0.5, %v9726_v51  ;;  %v9996_v21 = vadd.f32 %v3912_v15, %v9509_v14  ;;  %v4516_v39 = vmul.f32 %v4452_v49, %v9915_v44 }
 0x886   : > { %v4520_v41 = vmul.f32 %v4456_v61, %v4008_v58  ;;  %v4113_v20 = vmul.f32 %v4049_v2, %v9976_v8  ;;  %6926 = vtanh.f32 %v4331_v0  ;;  %v10001_v37 = vmul.f32 %v4109_v3, %v9939_v5 }
 0x887   : > { %v6919_v6 = vpop.eup %6918  ;;  %v10004_v57 = vmul.f32 %v4110_v9, %v9945_v28  ;;  %6928 = vtanh.f32 %v4335_v56  ;;  %v10007_v34 = vadd.f32 %v3916_v40, %v9491_v10  ;;  %v10010_v44 = vadd.f32 %v3918_v59, %v9509_v14 }
 0x888   : > { %v6921_v51 = vpop.eup %6920  ;;  %v4556_v15 = vpack.c.bf16 %v4520_v41, %v4516_v39  ;;  %v4451_v53 = vadd.f32 1.0, %v6919_v6  ;;  %v4214_v58 = vadd.f32 %v9854_v50, %v9775_v26  ;;  %v3926_v2 = vpop.f32.mrb[196].mxu0  ;;  %v4011_v3 = vmul.f32 0.5, %v9710_v46 }
 0x889   : > { %v4455_v47 = vadd.f32 1.0, %v6921_v51  ;;  %v4015_v33 = vmul.f32 0.5, %v9721_v27  ;;  %v4050_v7 = vmul.f32 0.044715, %v9996_v21  ;;  %v3928_v49 = vpop.f32.mrb[197].mxu0  ;;  %v10018_v40 = vmul.f32 %v4113_v20, %v9976_v8 }
 0x88a   : > { %5051 = vmatprep.mubr.bf16.mxu1 %v4556_v15  ;;  %v4218_v59 = vadd.f32 %v9863_v32, %v9789_v19  ;;  %v4278_v9 = vmul.f32 0.7978846, %v4214_v58  ;;  %v10023_v61 = vadd.f32 %v3920_v16, %v9491_v10  ;;  %v3930_v50 = vpop.f32.mrb[198].mxu0  ;;  %v4515_v46 = vmul.f32 %v4451_v53, %v9950_v43 }
 0x88b   : > { %v6923_v0 = vpop.eup %6922  ;;  %v4519_v56 = vmul.f32 %v4455_v47, %v4007_v54  ;;  %v4053_v27 = vmul.f32 0.044715, %v10007_v34  ;;  %v4405_v39 = vadd.f32 1.0, %v9953_v36  ;;  %v10028_v41 = vpop.f32.mrb[199].mxu0  ;;  %v4054_v6 = vmul.f32 0.044715, %v10010_v44 }
 0x88c   : > { %v4460_v20 = vadd.f32 1.0, %v6923_v0  ;;  %v4282_v51 = vmul.f32 0.7978846, %v4218_v59  ;;  %6930 = vtanh.f32 %v4278_v9  ;;  %v4057_v16 = vmul.f32 0.044715, %v10023_v61 }
 0x88d   : > { %v6925_v32 = vpop.eup %6924  ;;  %v4555_v15 = vpack.c.bf16 %v4519_v56, %v4515_v46  ;;  %v4409_v58 = vadd.f32 1.0, %v9967_v55  ;;  %v10034_v43 = vadd.f32 %v3922_v45, %v9509_v14  ;;  %v4114_v53 = vmul.f32 %v4050_v7, %v9996_v21 }
 0x88e   : > { %v4464_v54 = vadd.f32 1.0, %v6925_v32  ;;  %v10038_v36 = vmul.f32 0.5, %v9775_v26  ;;  %6932 = vtanh.f32 %v4282_v51  ;;  %v4117_v47 = vmul.f32 %v4053_v27, %v10007_v34 }
 0x88f   : > { %5052 = vmatmul.mubr.bf16.gmra.mrb[136].mxu1 %v4555_v15  ;;  %v10042_v59 = vmul.f32 %v4405_v39, %v9843_v38  ;;  %v10045_v9 = vmul.f32 %v4409_v58, %v9845_v30  ;;  %v10048_v55 = vadd.f32 %v3926_v2, %v9491_v10  ;;  %v4524_v0 = vmul.f32 %v4460_v20, %v4012_v35 }
 0x890   : > { %v6927_v45 = vpop.eup %6926  ;;  %v4528_v46 = vmul.f32 %v4464_v54, %v4016_v13  ;;  %v4118_v7 = vmul.f32 %v4054_v6, %v10010_v44  ;;  %v3962_v26 = vmul.f32 0.5, %v9789_v19  ;;  %v3936_v56 = vpop.f32.mrb[200].mxu0  ;;  %v4121_v27 = vmul.f32 %v4057_v16, %v10023_v61 }
 0x891   : > { %v6929_v51 = vpop.eup %6928  ;;  %v4459_v32 = vadd.f32 1.0, %v6927_v45  ;;  %v4058_v30 = vmul.f32 0.044715, %v10034_v43  ;;  %v3938_v39 = vpop.f32.mrb[201].mxu0  ;;  %v10057_v35 = vadd.f32 %v3928_v49, %v9509_v14  ;;  %v4222_v13 = vadd.f32 %v9909_v60, %v9831_v29 }
 0x892   : > { %v4560_v2 = vpack.c.bf16 %v4528_v46, %v4524_v0  ;;  %v4463_v15 = vadd.f32 1.0, %v6929_v51  ;;  %v3940_v19 = vpop.f32.mrb[202].mxu0  ;;  %v10062_v20 = vmul.f32 %v4114_v53, %v9996_v21  ;;  %v10065_v6 = vmul.f32 %v4117_v47, %v10007_v34 }
 0x893   : > { %v4061_v16 = vmul.f32 0.044715, %v10048_v55  ;;  %v4226_v58 = vadd.f32 %v9956_v48, %v9875_v42  ;;  %v3942_v54 = vpop.f32.mrb[203].mxu0  ;;  %v4523_v45 = vmul.f32 %v4459_v32, %v4011_v3  ;;  %v4286_v0 = vmul.f32 0.7978846, %v4222_v13 }
 0x894   : > { %5061 = vmatprep.mubr.bf16.mxu1 %v4560_v2  ;;  %v4527_v49 = vmul.f32 %v4463_v15, %v4015_v33  ;;  %v10071_v46 = vadd.f32 %v3930_v50, %v9491_v10  ;;  %v10074_v60 = vmul.f32 %v4118_v7, %v10010_v44  ;;  %v10077_v53 = vmul.f32 %v4121_v27, %v10023_v61 }
 0x895   : > { %v4122_v47 = vmul.f32 %v4058_v30, %v10034_v43  ;;  %v4290_v51 = vmul.f32 0.7978846, %v4226_v58  ;;  %v4062_v48 = vmul.f32 0.044715, %v10057_v35  ;;  %6934 = vtanh.f32 %v4286_v0 }
 0x896   : > { %v6931_v38 = vpop.eup %6930  ;;  %v4559_v24 = vpack.c.bf16 %v4527_v49, %v4523_v45  ;;  %v4065_v3 = vmul.f32 0.044715, %v10071_v46  ;;  %v4221_v50 = vadd.f32 %v9905_v12, %v9824_v18  ;;  %v4225_v7 = vadd.f32 %v9912_v25, %v9837_v23 }
 0x897   : > { %v4406_v33 = vadd.f32 1.0, %v6931_v38  ;;  %6936 = vtanh.f32 %v4290_v51  ;;  %v4125_v27 = vmul.f32 %v4061_v16, %v10048_v55  ;;  %v3966_v30 = vmul.f32 0.5, %v9831_v29 }
 0x898   : > { %v6933_v32 = vpop.eup %6932  ;;  %5062 = vmatmul.mubr.bf16.gmra.mrb[140].mxu1 %v4559_v24  ;;  %v10090_v2 = vadd.f32 %v10028_v41, %v9509_v14  ;;  %v10093_v15 = vadd.f32 %v3936_v56, %v9491_v10  ;;  %v3946_v38 = vpop.f32.mrb[204].mxu0  ;;  %v4285_v58 = vmul.f32 0.7978846, %v4221_v50  ;;  %v4289_v12 = vmul.f32 0.7978846, %v4225_v7 }
 0x899   : > { %v4410_v13 = vadd.f32 1.0, %v6933_v32  ;;  %v10096_v45 = vadd.f32 %v3938_v39, %v9509_v14  ;;  %v3948_v25 = vpop.f32.mrb[205].mxu0  ;;  %v10099_v24 = vmul.f32 %v4122_v47, %v10034_v43  ;;  %v4126_v29 = vmul.f32 %v4062_v48, %v10057_v35 }
 0x89a   : > { %v3970_v16 = vmul.f32 0.5, %v9875_v42  ;;  %v4129_v41 = vmul.f32 %v4065_v3, %v10071_v46  ;;  %v4470_v56 = vmul.f32 %v4406_v33, %v10038_v36  ;;  %6938 = vtanh.f32 %v4285_v58  ;;  %v3950_v51 = vpop.f32.mrb[206].mxu0 }
 0x89b   : > { %v4474_v49 = vmul.f32 %v4410_v13, %v3962_v26  ;;  %v4066_v0 = vmul.f32 0.044715, %v10090_v2  ;;  %v10107_v39 = vmul.f32 %v4125_v27, %v10048_v55  ;;  %v3965_v50 = vmul.f32 0.5, %v9824_v18  ;;  %v10111_v48 = vpop.f32.mrb[207].mxu0 }
 0x89c   : > { %6940 = vtanh.f32 %v4289_v12  ;;  %v4069_v47 = vmul.f32 0.044715, %v10093_v15  ;;  %v4070_v3 = vmul.f32 0.044715, %v10096_v45  ;;  %v4230_v36 = vadd.f32 %v9964_v62, %v9885_v22 }
 0x89d   : > { %v4534_v42 = vpack.c.bf16 %v4474_v49, %v4470_v56  ;;  %v4234_v26 = vadd.f32 %v9992_v17, %v9936_v63  ;;  %v10119_v33 = vmul.f32 %v4126_v29, %v10057_v35  ;;  %v10122_v7 = vmul.f32 %v4129_v41, %v10071_v46 }
 0x89e   : > { %v3969_v18 = vmul.f32 0.5, %v9837_v23  ;;  %v10126_v32 = vadd.f32 %v3940_v19, %v9491_v10  ;;  %v4130_v27 = vmul.f32 %v4066_v0, %v10090_v2  ;;  %v4294_v13 = vmul.f32 0.7978846, %v4230_v36 }
 0x89f   : > { %5104 = vmatprep.mubr.bf16.mxu1 %v4534_v42  ;;  %v4298_v58 = vmul.f32 0.7978846, %v4234_v26  ;;  %v4229_v62 = vadd.f32 %v9961_v31, %v9878_v11  ;;  %v6935_v17 = vpop.eup %6934  ;;  %v10980_v12 = vpack.c.bf16 %v10045_v9, %v10042_v59  ;;  %v4133_v29 = vmul.f32 %v4069_v47, %v10093_v15 }
 0x8a0   : > { %v4233_v23 = vadd.f32 %v9989_v1, %v9920_v52  ;;  %v10138_v19 = vadd.f32 %v3942_v54, %v9509_v14  ;;  %v10141_v41 = vadd.f32 %v3946_v38, %v9491_v10  ;;  %v4414_v49 = vadd.f32 1.0, %v6935_v17 }
 0x8a1   : > { %5105 = vmatmul.mubr.bf16.vlgmr.msra.gmra.mrb[112].mxu1 %v10980_v12  ;;  %v6937_v56 = vpop.eup %6936  ;;  %v4134_v31 = vmul.f32 %v4070_v3, %v10096_v45  ;;  %6942 = vtanh.f32 %v4294_v13  ;;  %v4293_v0 = vmul.f32 0.7978846, %v4229_v62  ;;  %v4073_v59 = vmul.f32 0.044715, %v10126_v32 }
 0x8a2   : > { %v4418_v42 = vadd.f32 1.0, %v6937_v56  ;;  %6944 = vtanh.f32 %v4298_v58  ;;  %v4297_v9 = vmul.f32 0.7978846, %v4233_v23  ;;  %v3974_v47 = vmul.f32 0.5, %v9885_v22 }
 0x8a3   : > { %v3978_v1 = vmul.f32 0.5, %v9936_v63  ;;  %6946 = vtanh.f32 %v4293_v0  ;;  %v4074_v54 = vmul.f32 0.044715, %v10138_v19  ;;  %v4478_v38 = vmul.f32 %v4414_v49, %v3966_v30 }
 0x8a4   : > { %v4482_v36 = vmul.f32 %v4418_v42, %v3970_v16  ;;  %6948 = vtanh.f32 %v4297_v9  ;;  %v4077_v26 = vmul.f32 0.044715, %v10141_v41  ;;  %v6939_v3 = vpop.eup %6938  ;;  %v10150_v13 = vmul.f32 %v4130_v27, %v10090_v2 }
 0x8a5   : > { %v10153_v58 = vmul.f32 %v4133_v29, %v10093_v15  ;;  %v10156_v62 = vmul.f32 %v4134_v31, %v10096_v45  ;;  %v4238_v22 = vadd.f32 %v10004_v57, %v9945_v28  ;;  %v4413_v30 = vadd.f32 1.0, %v6939_v3 }
 0x8a6   : > { %v6941_v63 = vpop.eup %6940  ;;  %v4538_v17 = vpack.c.bf16 %v4482_v36, %v4478_v38  ;;  %v4137_v16 = vmul.f32 %v4073_v59, %v10126_v32  ;;  %v10162_v12 = vadd.f32 %v3948_v25, %v9509_v14  ;;  %v3973_v27 = vmul.f32 0.5, %v9878_v11 }
 0x8a7   : > { %v4417_v23 = vadd.f32 1.0, %v6941_v63  ;;  %v4242_v29 = vadd.f32 %v10062_v20, %v9996_v21  ;;  %v4302_v56 = vmul.f32 0.7978846, %v4238_v22  ;;  %v3977_v49 = vmul.f32 0.5, %v9920_v52 }
 0x8a8   : > { %5114 = vmatprep.mubr.bf16.mxu1 %v4538_v17  ;;  %v4138_v57 = vmul.f32 %v4074_v54, %v10138_v19  ;;  %v4141_v31 = vmul.f32 %v4077_v26, %v10141_v41  ;;  %v10171_v0 = vadd.f32 %v3950_v51, %v9491_v10  ;;  %v4477_v42 = vmul.f32 %v4413_v30, %v3965_v50 }
 0x8a9   : > { %v4481_v25 = vmul.f32 %v4417_v23, %v3969_v18  ;;  %v4306_v59 = vmul.f32 0.7978846, %v4242_v29  ;;  %6950 = vtanh.f32 %v4302_v56  ;;  %v10174_v11 = vmul.f32 %v4137_v16, %v10126_v32 }
 0x8aa   : > { %v4078_v20 = vmul.f32 0.044715, %v10162_v12  ;;  %v4237_v9 = vadd.f32 %v10001_v37, %v9939_v5  ;;  %v4241_v52 = vadd.f32 %v10018_v40, %v9976_v8  ;;  %v3982_v10 = vmul.f32 0.5, %v9945_v28 }
 0x8ab   : > { %v6943_v54 = vpop.eup %6942  ;;  %v4537_v38 = vpack.c.bf16 %v4481_v25, %v4477_v42  ;;  %v3986_v51 = vmul.f32 0.5, %v9996_v21  ;;  %6952 = vtanh.f32 %v4306_v59  ;;  %v10184_v36 = vmul.f32 %v4138_v57, %v10138_v19 }
 0x8ac   : > { %v6945_v50 = vpop.eup %6944  ;;  %v4422_v18 = vadd.f32 1.0, %v6943_v54  ;;  %v4301_v26 = vmul.f32 0.7978846, %v4237_v9  ;;  %v4305_v3 = vmul.f32 0.7978846, %v4241_v52  ;;  %v10187_v63 = vmul.f32 %v4141_v31, %v10141_v41 }
 0x8ad   : > { %v6947_v22 = vpop.eup %6946  ;;  %5115 = vmatmul.mubr.bf16.gmra.mrb[116].mxu1 %v4537_v38  ;;  %v4426_v37 = vadd.f32 1.0, %v6945_v50  ;;  %v4081_v40 = vmul.f32 0.044715, %v10171_v0  ;;  %v4246_v28 = vadd.f32 %v10074_v60, %v10010_v44  ;;  %v4142_v30 = vmul.f32 %v4078_v20, %v10162_v12 }
 0x8ae   : > { %v6949_v21 = vpop.eup %6948  ;;  %v4421_v17 = vadd.f32 1.0, %v6947_v22  ;;  %6954 = vtanh.f32 %v4301_v26  ;;  %v10195_v16 = vadd.f32 %v10111_v48, %v9509_v14  ;;  %v4486_v23 = vmul.f32 %v4422_v18, %v3974_v47 }
 0x8af   : > { %v4490_v29 = vmul.f32 %v4426_v37, %v3978_v1  ;;  %v4425_v56 = vadd.f32 1.0, %v6949_v21  ;;  %6956 = vtanh.f32 %v4305_v3  ;;  %v3981_v57 = vmul.f32 0.5, %v9939_v5 }
 0x8b0   : > { %v3985_v31 = vmul.f32 0.5, %v9976_v8  ;;  %v4250_v60 = vadd.f32 %v10099_v24, %v10034_v43  ;;  %v4310_v42 = vmul.f32 0.7978846, %v4246_v28  ;;  %v4485_v59 = vmul.f32 %v4421_v17, %v3973_v27 }
 0x8b1   : > { %v4542_v25 = vpack.c.bf16 %v4490_v29, %v4486_v23  ;;  %v4489_v20 = vmul.f32 %v4425_v56, %v3977_v49  ;;  %v4145_v9 = vmul.f32 %v4081_v40, %v10171_v0  ;;  %v4245_v14 = vadd.f32 %v10065_v6, %v10007_v34 }
 0x8b2   : > { %v4314_v52 = vmul.f32 0.7978846, %v4250_v60  ;;  %6958 = vtanh.f32 %v4310_v42  ;;  %v4249_v48 = vadd.f32 %v10077_v53, %v10023_v61  ;;  %v4206_v47 = vmul.f32 %v4142_v30, %v10162_v12 }
 0x8b3   : > { %v6951_v5 = vpop.eup %6950  ;;  %5124 = vmatprep.mubr.bf16.mxu1 %v4542_v25  ;;  %v4541_v8 = vpack.c.bf16 %v4489_v20, %v4485_v59  ;;  %v4082_v24 = vmul.f32 0.044715, %v10195_v16  ;;  %v4254_v1 = vadd.f32 %v10119_v33, %v10057_v35  ;;  %v4309_v49 = vmul.f32 0.7978846, %v4245_v14 }
 0x8b4   : > { %v4430_v27 = vadd.f32 1.0, %v6951_v5  ;;  %6960 = vtanh.f32 %v4314_v52  ;;  %v4313_v54 = vmul.f32 0.7978846, %v4249_v48  ;;  %v3990_v6 = vmul.f32 0.5, %v10010_v44 }
 0x8b5   : > { %v6953_v38 = vpop.eup %6952  ;;  %5125 = vmatmul.mubr.bf16.gmra.mrb[120].mxu1 %v4541_v8  ;;  %v3994_v53 = vmul.f32 0.5, %v10034_v43  ;;  %v4258_v50 = vadd.f32 %v10150_v13, %v10090_v2  ;;  %v4318_v18 = vmul.f32 0.7978846, %v4254_v1  ;;  %v4209_v3 = vmul.f32 %v4145_v9, %v10171_v0 }
 0x8b6   : > { %v4434_v26 = vadd.f32 1.0, %v6953_v38  ;;  %6962 = vtanh.f32 %v4309_v49  ;;  %v4253_v33 = vadd.f32 %v10107_v39, %v10048_v55  ;;  %v4146_v22 = vmul.f32 %v4082_v24, %v10195_v16 }
 0x8b7   : > { %6964 = vtanh.f32 %v4313_v54  ;;  %v4322_v37 = vmul.f32 0.7978846, %v4258_v50  ;;  %v4257_v44 = vadd.f32 %v10122_v7, %v10071_v46  ;;  %v4494_v43 = vmul.f32 %v4430_v27, %v3982_v10 }
 0x8b8   : > { %v6955_v40 = vpop.eup %6954  ;;  %v4498_v28 = vmul.f32 %v4434_v26, %v3986_v51  ;;  %6966 = vtanh.f32 %v4318_v18  ;;  %v4317_v13 = vmul.f32 0.7978846, %v4253_v33  ;;  %v4262_v23 = vadd.f32 %v10156_v62, %v10096_v45 }
 0x8b9   : > { %v6957_v21 = vpop.eup %6956  ;;  %v4429_v17 = vadd.f32 1.0, %v6955_v40  ;;  %6968 = vtanh.f32 %v4322_v37  ;;  %v4321_v30 = vmul.f32 0.7978846, %v4257_v44  ;;  %v4266_v56 = vadd.f32 %v10184_v36, %v10138_v19 }
 0x8ba   : > { %v4546_v39 = vpack.c.bf16 %v4498_v28, %v4494_v43  ;;  %v4433_v29 = vadd.f32 1.0, %v6957_v21  ;;  %6970 = vtanh.f32 %v4317_v13  ;;  %v4210_v7 = vmul.f32 %v4146_v22, %v10195_v16 }
 0x8bb   : > { %v3989_v10 = vmul.f32 0.5, %v10007_v34  ;;  %6972 = vtanh.f32 %v4321_v30  ;;  %v4326_v51 = vmul.f32 0.7978846, %v4262_v23  ;;  %v4493_v42 = vmul.f32 %v4429_v17, %v3981_v57 }
 0x8bc   : > { %v6959_v60 = vpop.eup %6958  ;;  %5134 = vmatprep.mubr.bf16.mxu1 %v4546_v39  ;;  %v4497_v25 = vmul.f32 %v4433_v29, %v3985_v31  ;;  %v4330_v59 = vmul.f32 0.7978846, %v4266_v56  ;;  %v4261_v62 = vadd.f32 %v10153_v58, %v10093_v15  ;;  %v3993_v9 = vmul.f32 0.5, %v10023_v61 }
 0x8bd   : > { %v4438_v20 = vadd.f32 1.0, %v6959_v60  ;;  %6974 = vtanh.f32 %v4326_v51  ;;  %v4265_v36 = vadd.f32 %v10174_v11, %v10126_v32  ;;  %v3998_v34 = vmul.f32 0.5, %v10057_v35 }
 0x8be   : > { %v6961_v52 = vpop.eup %6960  ;;  %v4545_v14 = vpack.c.bf16 %v4497_v25, %v4493_v42  ;;  %6976 = vtanh.f32 %v4330_v59  ;;  %v4325_v48 = vmul.f32 0.7978846, %v4261_v62  ;;  %v4002_v57 = vmul.f32 0.5, %v10090_v2 }
 0x8bf   : > { %v4442_v5 = vadd.f32 1.0, %v6961_v52  ;;  %v4329_v31 = vmul.f32 0.7978846, %v4265_v36  ;;  %v4270_v8 = vadd.f32 %v4206_v47, %v10162_v12  ;;  %v4502_v24 = vmul.f32 %v4438_v20, %v3990_v6 }
 0x8c0   : > { %v6963_v58 = vpop.eup %6962  ;;  %5135 = vmatmul.mubr.bf16.gmra.mrb[124].mxu1 %v4545_v14  ;;  %v3997_v61 = vmul.f32 0.5, %v10048_v55  ;;  %6978 = vtanh.f32 %v4325_v48  ;;  %v4274_v11 = vadd.f32 %v4210_v7, %v10195_v16  ;;  %v4269_v2 = vadd.f32 %v10187_v63, %v10141_v41 }
 0x8c1   : > { %v6965_v1 = vpop.eup %6964  ;;  %v4506_v27 = vmul.f32 %v4442_v5, %v3994_v53  ;;  %v4437_v49 = vadd.f32 1.0, %v6963_v58  ;;  %6980 = vtanh.f32 %v4329_v31  ;;  %v4334_v35 = vmul.f32 0.7978846, %v4270_v8 }
 0x8c2   : > { %v6967_v54 = vpop.eup %6966  ;;  %v4441_v38 = vadd.f32 1.0, %v6965_v1  ;;  %v4338_v50 = vmul.f32 0.7978846, %v4274_v11  ;;  %v4273_v47 = vadd.f32 %v4209_v3, %v10171_v0  ;;  %v4333_v53 = vmul.f32 0.7978846, %v4269_v2 }
 0x8c3   : > { %v6969_v18 = vpop.eup %6968  ;;  %v4550_v6 = vpack.c.bf16 %v4506_v27, %v4502_v24  ;;  %v4501_v26 = vmul.f32 %v4437_v49, %v3989_v10  ;;  %v4446_v55 = vadd.f32 1.0, %v6967_v54  ;;  %6982 = vtanh.f32 %v4334_v35 }
 0x8c4   : > { %v6971_v33 = vpop.eup %6970  ;;  %v4505_v22 = vmul.f32 %v4441_v38, %v3993_v9  ;;  %v4450_v37 = vadd.f32 1.0, %v6969_v18  ;;  %6984 = vtanh.f32 %v4338_v50  ;;  %v4001_v43 = vmul.f32 0.5, %v10071_v46  ;;  %v10981_v50 = vld [vmem:[#allocation38_spill] sm:$0xff] }
 0x8c5   : > { %v6973_v44 = vpop.eup %6972  ;;  %5144 = vmatprep.mubr.bf16.mxu1 %v4550_v6  ;;  %v4510_v40 = vmul.f32 %v4446_v55, %v3998_v34  ;;  %v4445_v28 = vadd.f32 1.0, %v6971_v33  ;;  %v4337_v13 = vmul.f32 0.7978846, %v4273_v47  ;;  %6986 = vtanh.f32 %v4333_v53 }
 0x8c6   : > { %v4549_v63 = vpack.c.bf16 %v4505_v22, %v4501_v26  ;;  %v4514_v21 = vmul.f32 %v4450_v37, %v4002_v57  ;;  %v4449_v3 = vadd.f32 1.0, %v6973_v44  ;;  %v4006_v7 = vmul.f32 0.5, %v10096_v45  ;;  %v10982_v26 = vld [vmem:[#allocation12_spill] sm:$0xff]  ;;  %v10983_v37 = vld [vmem:[#allocation11_spill] sm:$0xff] }
 0x8c7   : > { %v6975_v17 = vpop.eup %6974  ;;  %6988 = vtanh.f32 %v4337_v13  ;;  %v4509_v39 = vmul.f32 %v4445_v28, %v3997_v61  ;;  %v4010_v10 = vmul.f32 0.5, %v10138_v19  ;;  %v4005_v20 = vmul.f32 0.5, %v10093_v15  ;;  %v10985_v28 = vld [vmem:[#allocation10_spill] sm:$0xff] }
 0x8c8   : > { %v6977_v30 = vpop.eup %6976  ;;  %5145 = vmatmul.mubr.bf16.gmra.mrb[128].mxu1 %v4549_v63  ;;  %v4554_v23 = vpack.c.bf16 %v4514_v21, %v4510_v40  ;;  %v4513_v29 = vmul.f32 %v4449_v3, %v4001_v43  ;;  %v4454_v56 = vadd.f32 1.0, %v6975_v17  ;;  %v4009_v9 = vmul.f32 0.5, %v10126_v32  ;;  %v10984_v40 = vld [vmem:[#allocation16_spill] sm:$0xff] }
 0x8c9   : > { %v4458_v51 = vadd.f32 1.0, %v6977_v30  ;;  %v4014_v19 = vmul.f32 0.5, %v10162_v12  ;;  %v4018_v57 = vmul.f32 0.5, %v10195_v16  ;;  %v4013_v11 = vmul.f32 0.5, %v10141_v41  ;;  %v4627_v16 = vld [vmem:[%s10792_s12] sm:$0x3] }
 0x8ca   : > { %v6979_v46 = vpop.eup %6978  ;;  %5154 = vmatprep.mubr.bf16.mxu1 %v4554_v23  ;;  %v4553_v60 = vpack.c.bf16 %v4513_v29, %v4509_v39  ;;  %v4518_v25 = vmul.f32 %v4454_v56, %v4006_v7  ;;  %v4017_v1 = vmul.f32 0.5, %v10171_v0  ;;  %v10252_v38 = vrot.slane %v4627_v16, %v7830_v4  ;;  %v10986_v29 = vld [vmem:[#allocation15_spill] sm:$0xff] }
 0x8cb   : > { %v6981_v42 = vpop.eup %6980  ;;  %v4522_v59 = vmul.f32 %v4458_v51, %v4010_v10  ;;  %v4453_v62 = vadd.f32 1.0, %v6979_v46  ;;  %v10255_v2 = vrot.slane %v4627_v16, %v10981_v50  ;;  %v10987_v51 = vld [vmem:[#allocation14_spill] sm:$0xff]  ;;  %v10994_v16 = vld [vmem:[#allocation23_spill] sm:$0xff] }
 0x8cc   : > { %v4457_v36 = vadd.f32 1.0, %v6981_v42  ;;  %v10988_v42 = vld [vmem:[#allocation20_spill] sm:$0xff] }
 0x8cd   : > { %v6983_v52 = vpop.eup %6982  ;;  %v4558_v14 = vpack.c.bf16 %v4522_v59, %v4518_v25  ;;  %v4517_v48 = vmul.f32 %v4453_v62, %v4005_v20  ;;  %v10989_v59 = vld [vmem:[#allocation13_spill] sm:$0xff] }
 0x8ce   : > { %v6985_v34 = vpop.eup %6984  ;;  %v4521_v45 = vmul.f32 %v4457_v36, %v4009_v9  ;;  %v4462_v5 = vadd.f32 1.0, %v6983_v52 }
 0x8cf   : > { %v4466_v31 = vadd.f32 1.0, %v6985_v34  ;;  %v6987_v8 = vpop.eup %6986 }
 0x8d0   : > { %5155 = vmatmul.mubr.bf16.gmra.mrb[132].mxu1 %v4553_v60  ;;  %v4557_v58 = vpack.c.bf16 %v4521_v45, %v4517_v48  ;;  %v4526_v15 = vmul.f32 %v4462_v5, %v4014_v19  ;;  %v4461_v32 = vadd.f32 1.0, %v6987_v8  ;;  %v10990_v45 = vld [vmem:[#allocation19_spill] sm:$0xff] }
 0x8d1   : > { %v6989_v24 = vpop.eup %6988  ;;  %5164 = vmatprep.mubr.bf16.mxu1 %v4558_v14  ;;  %v4530_v61 = vmul.f32 %v4466_v31, %v4018_v57  ;;  %v10991_v31 = vld [vmem:[#allocation18_spill] sm:$0xff] }
 0x8d2   : > { %v4465_v27 = vadd.f32 1.0, %v6989_v24  ;;  %v4525_v35 = vmul.f32 %v4461_v32, %v4013_v11  ;;  %v10992_v24 = vld [vmem:[#allocation24_spill] sm:$0xff] }
 0x8d3   : > { %v4562_v49 = vpack.c.bf16 %v4530_v61, %v4526_v15  ;;  %v10993_v61 = vld [vmem:[#allocation17_spill] sm:$0xff] }
 0x8d4   : > { %v4529_v54 = vmul.f32 %v4465_v27, %v4017_v1 }
 0x8d6   : > { %v4561_v12 = vpack.c.bf16 %v4529_v54, %v4525_v35 }
 0x8d8   : > { %5165 = vmatmul.mubr.bf16.gmra.mrb[136].mxu1 %v4557_v58 }
 0x8d9   : > { %5174 = vmatprep.mubr.bf16.mxu1 %v4562_v49 }
 0x8e0   : > { %5175 = vmatmul.mubr.bf16.gmra.mrb[140].mxu1 %v4561_v12 }
 0x974   : > { %v5106_v41 = vpop.f32.mrb[112].mxu1 }
 0x975   : > { %v6197_v0 = vadd.f32 %v5106_v41, %v10252_v38  ;;  %v5108_v47 = vpop.f32.mrb[113].mxu1 }
 0x976   : > { %v6198_v18 = vadd.f32 %v5108_v47, %v10255_v2  ;;  %v5110_v6 = vpop.f32.mrb[114].mxu1 }
 0x977   : > { %v10260_v55 = vadd.f32 %v6197_v0, %v10982_v26  ;;  %v6199_v33 = vadd.f32 %v5110_v6, %v10252_v38  ;;  %v5112_v22 = vpop.f32.mrb[115].mxu1 }
 0x978   : > { %v10264_v53 = vadd.f32 %v6198_v18, %v10983_v37  ;;  %v6200_v44 = vadd.f32 %v5112_v22, %v10255_v2  ;;  %v10995_v18 = vld [vmem:[#allocation22_spill] sm:$0xff]  ;;  %v10997_v37 = vld [vmem:[#allocation21_spill] sm:$0xff] }
 0x979   : > { %v10268_v43 = vadd.f32 %v6199_v33, %v10984_v40  ;;  %v10996_v33 = vld [vmem:[#allocation28_spill] sm:$0xff] }
 0x97a   : > { %v10271_v13 = vadd.f32 %v6200_v44, %v10985_v28  ;;  %v5219_v63 = vadd.f32 %v10264_v53, %v10260_v55 }
 0x97c   : > { %5220 = vadd.xlane.f32.xlu0 %v5219_v63  ;;  %v5222_v21 = vadd.f32 %v10271_v13, %v10268_v43 }
 0x97e   : > { %5223 = vadd.xlane.f32.xlu1 %v5222_v21 }
 0x980   : > { %v5116_v3 = vpop.f32.mrb[116].mxu1 }
 0x981   : > { %v6201_v17 = vadd.f32 %v5116_v3, %v10252_v38  ;;  %v5118_v30 = vpop.f32.mrb[117].mxu1 }
 0x982   : > { %v6202_v23 = vadd.f32 %v5118_v30, %v10255_v2  ;;  %v5120_v39 = vpop.f32.mrb[118].mxu1 }
 0x983   : > { %v10280_v56 = vadd.f32 %v6201_v17, %v10986_v29  ;;  %v6203_v7 = vadd.f32 %v5120_v39, %v10252_v38  ;;  %v5122_v10 = vpop.f32.mrb[119].mxu1 }
 0x984   : > { %v10284_v46 = vadd.f32 %v6202_v23, %v10987_v51  ;;  %v6204_v60 = vadd.f32 %v5122_v10, %v10255_v2  ;;  %v10998_v23 = vld [vmem:[#allocation27_spill] sm:$0xff]  ;;  %v10999_v10 = vld [vmem:[#allocation26_spill] sm:$0xff] }
 0x985   : > { %v10288_v25 = vadd.f32 %v6203_v7, %v10988_v42  ;;  %v11000_v42 = vld [vmem:[#allocation32_spill] sm:$0xff] }
 0x986   : > { %v10291_v62 = vadd.f32 %v6204_v60, %v10989_v59  ;;  %v5225_v20 = vadd.f32 %v10284_v46, %v10280_v56 }
 0x988   : > { %v5126_v9 = vpop.f32.mrb[120].mxu1  ;;  %5226 = vadd.xlane.f32.xlu0 %v5225_v20  ;;  %v5228_v36 = vadd.f32 %v10291_v62, %v10288_v25  ;;  %v11001_v20 = vld [vmem:[#allocation25_spill] sm:$0xff] }
 0x989   : > { %v6205_v52 = vadd.f32 %v5126_v9, %v10252_v38  ;;  %v5128_v14 = vpop.f32.mrb[121].mxu1 }
 0x98a   : > { %v6206_v34 = vadd.f32 %v5128_v14, %v10255_v2  ;;  %v5130_v48 = vpop.f32.mrb[122].mxu1  ;;  %5229 = vadd.xlane.f32.xlu1 %v5228_v36 }
 0x98b   : > { %v10300_v5 = vadd.f32 %v6205_v52, %v10990_v45  ;;  %v6207_v19 = vadd.f32 %v5130_v48, %v10252_v38  ;;  %v5132_v57 = vpop.f32.mrb[123].mxu1 }
 0x98c   : > { %v10304_v8 = vadd.f32 %v6206_v34, %v10991_v31  ;;  %v6208_v58 = vadd.f32 %v5132_v57, %v10255_v2  ;;  %v11002_v57 = vld [vmem:[#allocation31_spill] sm:$0xff] }
 0x98d   : > { %v10308_v15 = vadd.f32 %v6207_v19, %v10992_v24 }
 0x98e   : > { %v10311_v32 = vadd.f32 %v6208_v58, %v10993_v61  ;;  %v5231_v11 = vadd.f32 %v10304_v8, %v10300_v5  ;;  %v11003_v61 = vld [vmem:[#allocation30_spill] sm:$0xff] }
 0x990   : > { %5232 = vadd.xlane.f32.xlu0 %v5231_v11  ;;  %v5234_v1 = vadd.f32 %v10311_v32, %v10308_v15 }
 0x992   : > { %5235 = vadd.xlane.f32.xlu1 %v5234_v1 }
 0x993   : > { %v5136_v27 = vpop.f32.mrb[124].mxu1 }
 0x994   : > { %v6209_v49 = vadd.f32 %v5136_v27, %v10252_v38  ;;  %v5138_v35 = vpop.f32.mrb[125].mxu1  ;;  %v11004_v27 = vld [vmem:[#allocation36_spill] sm:$0xff] }
 0x995   : > { %v6210_v54 = vadd.f32 %v5138_v35, %v10255_v2  ;;  %v5140_v12 = vpop.f32.mrb[126].mxu1  ;;  %v11005_v35 = vld [vmem:[#allocation29_spill] sm:$0xff] }
 0x996   : > { %v10320_v41 = vadd.f32 %v6209_v49, %v10994_v16  ;;  %v6211_v0 = vadd.f32 %v5140_v12, %v10252_v38  ;;  %v5142_v47 = vpop.f32.mrb[127].mxu1 }
 0x997   : > { %v10324_v6 = vadd.f32 %v6210_v54, %v10995_v18  ;;  %v6212_v26 = vadd.f32 %v5142_v47, %v10255_v2 }
 0x998   : > { %v10328_v22 = vadd.f32 %v6211_v0, %v10996_v33 }
 0x999   : > { %v10331_v44 = vadd.f32 %v6212_v26, %v10997_v37  ;;  %v5237_v40 = vadd.f32 %v10324_v6, %v10320_v41  ;;  %v11006_v37 = vld [vmem:[#allocation35_spill] sm:$0xff] }
 0x99b   : > { %v5146_v28 = vpop.f32.mrb[128].mxu1  ;;  %5238 = vadd.xlane.f32.xlu0 %v5237_v40  ;;  %v5240_v63 = vadd.f32 %v10331_v44, %v10328_v22 }
 0x99c   : > { %v6213_v21 = vadd.f32 %v5146_v28, %v10252_v38  ;;  %v5148_v3 = vpop.f32.mrb[129].mxu1 }
 0x99d   : > { %v6214_v17 = vadd.f32 %v5148_v3, %v10255_v2  ;;  %v5150_v30 = vpop.f32.mrb[130].mxu1  ;;  %5241 = vadd.xlane.f32.xlu1 %v5240_v63 }
 0x99e   : > { %v10340_v39 = vadd.f32 %v6213_v21, %v10998_v23  ;;  %v6215_v29 = vadd.f32 %v5150_v30, %v10252_v38  ;;  %v5152_v7 = vpop.f32.mrb[131].mxu1  ;;  %v11007_v21 = vld [vmem:[#allocation34_spill] sm:$0xff]  ;;  %v11008_v30 = vld [vmem:[#allocation39_spill] sm:$0xff] }
 0x99f   : > { %v10344_v51 = vadd.f32 %v6214_v17, %v10999_v10  ;;  %v6216_v60 = vadd.f32 %v5152_v7, %v10255_v2 }
 0x9a0   : > { %v10348_v59 = vadd.f32 %v6215_v29, %v11000_v42  ;;  %v11009_v29 = vld [vmem:[#allocation33_spill] sm:$0xff] }
 0x9a1   : > { %v10351_v9 = vadd.f32 %v6216_v60, %v11001_v20  ;;  %v5243_v36 = vadd.f32 %v10344_v51, %v10340_v39 }
 0x9a3   : > { %v5156_v52 = vpop.f32.mrb[132].mxu1  ;;  %5244 = vadd.xlane.f32.xlu0 %v5243_v36  ;;  %v5246_v14 = vadd.f32 %v10351_v9, %v10348_v59 }
 0x9a4   : > { %v6217_v34 = vadd.f32 %v5156_v52, %v10252_v38  ;;  %v5158_v48 = vpop.f32.mrb[133].mxu1 }
 0x9a5   : > { %v6218_v45 = vadd.f32 %v5158_v48, %v10255_v2  ;;  %v5160_v19 = vpop.f32.mrb[134].mxu1  ;;  %5247 = vadd.xlane.f32.xlu1 %v5246_v14 }
 0x9a6   : > { %v10360_v31 = vadd.f32 %v6217_v34, %v11002_v57  ;;  %v6219_v58 = vadd.f32 %v5160_v19, %v10252_v38  ;;  %v5162_v24 = vpop.f32.mrb[135].mxu1  ;;  %v11010_v34 = vld [vmem:[#allocation42_spill] sm:$0xff]  ;;  %v11011_v57 = vld [vmem:[#allocation40_spill] sm:$0xff] }
 0x9a7   : > { %v10364_v11 = vadd.f32 %v6218_v45, %v11003_v61  ;;  %v6220_v1 = vadd.f32 %v5162_v24, %v10255_v2  ;;  %v11012_v61 = vld [vmem:[#allocation43_spill] sm:$0xff] }
 0x9a8   : > { %v10368_v49 = vadd.f32 %v6219_v58, %v11004_v27  ;;  %v11013_v27 = vld [vmem:[#allocation41_spill] sm:$0xff] }
 0x9a9   : > { %v10371_v54 = vadd.f32 %v6220_v1, %v11005_v35  ;;  %v5249_v12 = vadd.f32 %v10364_v11, %v10360_v31 }
 0x9ab   : > { %v5166_v16 = vpop.f32.mrb[136].mxu1  ;;  %5250 = vadd.xlane.f32.xlu0 %v5249_v12  ;;  %v5252_v0 = vadd.f32 %v10371_v54, %v10368_v49 }
 0x9ac   : > { %v6221_v47 = vadd.f32 %v5166_v16, %v10252_v38  ;;  %v5168_v18 = vpop.f32.mrb[137].mxu1 }
 0x9ad   : > { %v6222_v26 = vadd.f32 %v5168_v18, %v10255_v2  ;;  %v5170_v33 = vpop.f32.mrb[138].mxu1  ;;  %5253 = vadd.xlane.f32.xlu1 %v5252_v0 }
 0x9ae   : > { %v10380_v40 = vadd.f32 %v6221_v47, %v11006_v37  ;;  %v6223_v28 = vadd.f32 %v5170_v33, %v10252_v38  ;;  %v5172_v63 = vpop.f32.mrb[139].mxu1 }
 0x9af   : > { %v10384_v3 = vadd.f32 %v6222_v26, %v11007_v21  ;;  %v6224_v17 = vadd.f32 %v5172_v63, %v10255_v2 }
 0x9b0   : > { %v10388_v23 = vadd.f32 %v6223_v28, %v11008_v30 }
 0x9b1   : > { %v10391_v7 = vadd.f32 %v6224_v17, %v11009_v29  ;;  %v5255_v10 = vadd.f32 %v10384_v3, %v10380_v40 }
 0x9b3   : > { %v5176_v60 = vpop.f32.mrb[140].mxu1  ;;  %5256 = vadd.xlane.f32.xlu0 %v5255_v10  ;;  %v5258_v42 = vadd.f32 %v10391_v7, %v10388_v23 }
 0x9b4   : > { %v6225_v20 = vadd.f32 %v5176_v60, %v10252_v38  ;;  %v5178_v36 = vpop.f32.mrb[141].mxu1 }
 0x9b5   : > { %v6226_v52 = vadd.f32 %v5178_v36, %v10255_v2  ;;  %v5180_v14 = vpop.f32.mrb[142].mxu1  ;;  %5259 = vadd.xlane.f32.xlu1 %v5258_v42 }
 0x9b6   : > { %v10400_v48 = vadd.f32 %v6225_v20, %v11010_v34  ;;  %v6227_v45 = vadd.f32 %v5180_v14, %v10252_v38  ;;  %v5182_v19 = vpop.f32.mrb[143].mxu1 }
 0x9b7   : > { %v10404_v58 = vadd.f32 %v6226_v52, %v11011_v57  ;;  %v6228_v24 = vadd.f32 %v5182_v19, %v10255_v2 }
 0x9b8   : > { %v10408_v1 = vadd.f32 %v6227_v45, %v11012_v61 }
 0x9b9   : > { %v10411_v35 = vadd.f32 %v6228_v24, %v11013_v27  ;;  %v5261_v12 = vadd.f32 %v10404_v58, %v10400_v48 }
 0x9bb   : > { %5262 = vadd.xlane.f32.xlu0 %v5261_v12  ;;  %v5264_v16 = vadd.f32 %v10411_v35, %v10408_v1 }
 0x9bd   : > { %5265 = vadd.xlane.f32.xlu1 %v5264_v16 }
 0xa09   : > { %v5221_v38 = vpop.xlane.xlu0 %5220 }
 0xa0a   : > { %v5267_v0 = vmul.f32 0.00390625, %v5221_v38 }
 0xa0b   : > { %v5224_v47 = vpop.xlane.xlu1 %5223 }
 0xa0c   : > { %v10418_v18 = vsub.f32 %v10260_v55, %v5267_v0  ;;  %v10421_v2 = vsub.f32 %v10264_v53, %v5267_v0  ;;  %v5268_v26 = vmul.f32 0.00390625, %v5224_v47 }
 0xa0e   : > { %v5315_v33 = vmul.f32 %v10418_v18, %v10418_v18  ;;  %v5316_v37 = vmul.f32 %v10421_v2, %v10421_v2  ;;  %v10428_v28 = vsub.f32 %v10268_v43, %v5268_v26  ;;  %v10431_v63 = vsub.f32 %v10271_v13, %v5268_v26 }
 0xa10   : > { %v5317_v55 = vmul.f32 %v10428_v28, %v10428_v28  ;;  %v5318_v53 = vmul.f32 %v10431_v63, %v10431_v63  ;;  %v5347_v21 = vadd.f32 %v5316_v37, %v5315_v33 }
 0xa12   : > { %5348 = vadd.xlane.f32.xlu0 %v5347_v21  ;;  %v5350_v17 = vadd.f32 %v5318_v53, %v5317_v55 }
 0xa14   : > { %5351 = vadd.xlane.f32.xlu1 %v5350_v17 }
 0xa15   : > { %v5227_v30 = vpop.xlane.xlu0 %5226 }
 0xa16   : > { %v5269_v29 = vmul.f32 0.00390625, %v5227_v30 }
 0xa17   : > { %v5230_v10 = vpop.xlane.xlu1 %5229 }
 0xa18   : > { %v10438_v60 = vsub.f32 %v10280_v56, %v5269_v29  ;;  %v10441_v43 = vsub.f32 %v10284_v46, %v5269_v29  ;;  %v5270_v13 = vmul.f32 0.00390625, %v5230_v10 }
 0xa1a   : > { %v5319_v42 = vmul.f32 %v10438_v60, %v10438_v60  ;;  %v5320_v20 = vmul.f32 %v10441_v43, %v10441_v43  ;;  %v10448_v36 = vsub.f32 %v10288_v25, %v5270_v13  ;;  %v10451_v52 = vsub.f32 %v10291_v62, %v5270_v13 }
 0xa1c   : > { %v5321_v56 = vmul.f32 %v10448_v36, %v10448_v36  ;;  %v5322_v46 = vmul.f32 %v10451_v52, %v10451_v52  ;;  %v5353_v14 = vadd.f32 %v5320_v20, %v5319_v42 }
 0xa1d   : > { %v5233_v34 = vpop.xlane.xlu0 %5232 }
 0xa1e   : > { %v5271_v45 = vmul.f32 0.00390625, %v5233_v34  ;;  %5354 = vadd.xlane.f32.xlu0 %v5353_v14  ;;  %v5356_v19 = vadd.f32 %v5322_v46, %v5321_v56 }
 0xa1f   : > { %v5236_v57 = vpop.xlane.xlu1 %5235 }
 0xa20   : > { %v10458_v24 = vsub.f32 %v10300_v5, %v5271_v45  ;;  %v10461_v25 = vsub.f32 %v10304_v8, %v5271_v45  ;;  %v5272_v62 = vmul.f32 0.00390625, %v5236_v57  ;;  %5357 = vadd.xlane.f32.xlu1 %v5356_v19 }
 0xa22   : > { %v5323_v61 = vmul.f32 %v10458_v24, %v10458_v24  ;;  %v5324_v27 = vmul.f32 %v10461_v25, %v10461_v25  ;;  %v10468_v12 = vsub.f32 %v10308_v15, %v5272_v62  ;;  %v10471_v16 = vsub.f32 %v10311_v32, %v5272_v62 }
 0xa24   : > { %v5325_v5 = vmul.f32 %v10468_v12, %v10468_v12  ;;  %v5326_v8 = vmul.f32 %v10471_v16, %v10471_v16  ;;  %v5359_v38 = vadd.f32 %v5324_v27, %v5323_v61 }
 0xa26   : > { %5360 = vadd.xlane.f32.xlu0 %v5359_v38  ;;  %v5362_v0 = vadd.f32 %v5326_v8, %v5325_v5 }
 0xa28   : > { %v5239_v47 = vpop.xlane.xlu0 %5238  ;;  %5363 = vadd.xlane.f32.xlu1 %v5362_v0 }
 0xa29   : > { %v5273_v26 = vmul.f32 0.00390625, %v5239_v47 }
 0xa2a   : > { %v5242_v33 = vpop.xlane.xlu1 %5241 }
 0xa2b   : > { %v10478_v37 = vsub.f32 %v10320_v41, %v5273_v26  ;;  %v10481_v15 = vsub.f32 %v10324_v6, %v5273_v26  ;;  %v5274_v32 = vmul.f32 0.00390625, %v5242_v33 }
 0xa2d   : > { %v5327_v55 = vmul.f32 %v10478_v37, %v10478_v37  ;;  %v5328_v53 = vmul.f32 %v10481_v15, %v10481_v15  ;;  %v10488_v21 = vsub.f32 %v10328_v22, %v5274_v32  ;;  %v10491_v17 = vsub.f32 %v10331_v44, %v5274_v32 }
 0xa2f   : > { %v5329_v41 = vmul.f32 %v10488_v21, %v10488_v21  ;;  %v5330_v6 = vmul.f32 %v10491_v17, %v10491_v17  ;;  %v5365_v30 = vadd.f32 %v5328_v53, %v5327_v55 }
 0xa30   : > { %v5245_v29 = vpop.xlane.xlu0 %5244 }
 0xa31   : > { %v5275_v10 = vmul.f32 0.00390625, %v5245_v29  ;;  %5366 = vadd.xlane.f32.xlu0 %v5365_v30  ;;  %v5368_v13 = vadd.f32 %v5330_v6, %v5329_v41 }
 0xa32   : > { %v5248_v42 = vpop.xlane.xlu1 %5247 }
 0xa33   : > { %v10498_v20 = vsub.f32 %v10340_v39, %v5275_v10  ;;  %v10501_v22 = vsub.f32 %v10344_v51, %v5275_v10  ;;  %v5276_v44 = vmul.f32 0.00390625, %v5248_v42  ;;  %5369 = vadd.xlane.f32.xlu1 %v5368_v13 }
 0xa35   : > { %v5331_v56 = vmul.f32 %v10498_v20, %v10498_v20  ;;  %v5332_v46 = vmul.f32 %v10501_v22, %v10501_v22  ;;  %v10508_v14 = vsub.f32 %v10348_v59, %v5276_v44  ;;  %v10511_v34 = vsub.f32 %v10351_v9, %v5276_v44 }
 0xa37   : > { %v5333_v39 = vmul.f32 %v10508_v14, %v10508_v14  ;;  %v5334_v51 = vmul.f32 %v10511_v34, %v10511_v34  ;;  %v5371_v45 = vadd.f32 %v5332_v46, %v5331_v56 }
 0xa38   : > { %v5251_v19 = vpop.xlane.xlu0 %5250 }
 0xa39   : > { %v5277_v57 = vmul.f32 0.00390625, %v5251_v19  ;;  %5372 = vadd.xlane.f32.xlu0 %v5371_v45  ;;  %v5374_v62 = vadd.f32 %v5334_v51, %v5333_v39 }
 0xa3a   : > { %v5254_v61 = vpop.xlane.xlu1 %5253 }
 0xa3b   : > { %v10518_v27 = vsub.f32 %v10360_v31, %v5277_v57  ;;  %v10521_v59 = vsub.f32 %v10364_v11, %v5277_v57  ;;  %v5278_v9 = vmul.f32 0.00390625, %v5254_v61  ;;  %5375 = vadd.xlane.f32.xlu1 %v5374_v62 }
 0xa3d   : > { %v5335_v5 = vmul.f32 %v10518_v27, %v10518_v27  ;;  %v5336_v8 = vmul.f32 %v10521_v59, %v10521_v59  ;;  %v10528_v38 = vsub.f32 %v10368_v49, %v5278_v9  ;;  %v10531_v0 = vsub.f32 %v10371_v54, %v5278_v9 }
 0xa3f   : > { %v5337_v31 = vmul.f32 %v10528_v38, %v10528_v38  ;;  %v5338_v11 = vmul.f32 %v10531_v0, %v10531_v0  ;;  %v5377_v47 = vadd.f32 %v5336_v8, %v5335_v5 }
 0xa40   : > { %v5257_v26 = vpop.xlane.xlu0 %5256 }
 0xa41   : > { %v5279_v33 = vmul.f32 0.00390625, %v5257_v26  ;;  %5378 = vadd.xlane.f32.xlu0 %v5377_v47  ;;  %v5380_v32 = vadd.f32 %v5338_v11, %v5337_v31  ;;  %v5217_v31 = vld [vmem:[%s10793_s13] sm:$0x3] }
 0xa42   : > { %v5260_v55 = vpop.xlane.xlu1 %5259  ;;  %v5218_v11 = vld [vmem:[%s10794_s14] sm:$0x3]  ;;  %v10585_v26 = vrot.slane %v5217_v31, %v7830_v4 }
 0xa43   : > { %v10538_v53 = vsub.f32 %v10380_v40, %v5279_v33  ;;  %v10541_v49 = vsub.f32 %v10384_v3, %v5279_v33  ;;  %v5280_v54 = vmul.f32 0.00390625, %v5260_v55  ;;  %5381 = vadd.xlane.f32.xlu1 %v5380_v32  ;;  %v10588_v33 = vrot.slane %v5217_v31, %v10981_v50 }
 0xa45   : > { %v5339_v41 = vmul.f32 %v10538_v53, %v10538_v53  ;;  %v5340_v6 = vmul.f32 %v10541_v49, %v10541_v49  ;;  %v10548_v30 = vsub.f32 %v10388_v23, %v5280_v54  ;;  %v10551_v29 = vsub.f32 %v10391_v7, %v5280_v54 }
 0xa46   : > { %v10591_v54 = vrot.slane %v5218_v11, %v7830_v4 }
 0xa47   : > { %v5341_v40 = vmul.f32 %v10548_v30, %v10548_v30  ;;  %v5342_v3 = vmul.f32 %v10551_v29, %v10551_v29  ;;  %v5383_v10 = vadd.f32 %v5340_v6, %v5339_v41  ;;  %v10594_v41 = vrot.slane %v5218_v11, %v10981_v50 }
 0xa48   : > { %v5263_v13 = vpop.xlane.xlu0 %5262 }
 0xa49   : > { %v5281_v42 = vmul.f32 0.00390625, %v5263_v13  ;;  %5384 = vadd.xlane.f32.xlu0 %v5383_v10  ;;  %v5386_v44 = vadd.f32 %v5342_v3, %v5341_v40 }
 0xa4a   : > { %v5266_v56 = vpop.xlane.xlu1 %5265 }
 0xa4b   : > { %v10558_v46 = vsub.f32 %v10400_v48, %v5281_v42  ;;  %v10561_v23 = vsub.f32 %v10404_v58, %v5281_v42  ;;  %v5282_v7 = vmul.f32 0.00390625, %v5266_v56  ;;  %5387 = vadd.xlane.f32.xlu1 %v5386_v44 }
 0xa4d   : > { %v5343_v39 = vmul.f32 %v10558_v46, %v10558_v46  ;;  %v5344_v51 = vmul.f32 %v10561_v23, %v10561_v23  ;;  %v10568_v45 = vsub.f32 %v10408_v1, %v5282_v7  ;;  %v10571_v19 = vsub.f32 %v10411_v35, %v5282_v7 }
 0xa4f   : > { %v5345_v48 = vmul.f32 %v10568_v45, %v10568_v45  ;;  %v5346_v58 = vmul.f32 %v10571_v19, %v10571_v19  ;;  %v5389_v57 = vadd.f32 %v5344_v51, %v5343_v39 }
 0xa51   : > { %5390 = vadd.xlane.f32.xlu0 %v5389_v57  ;;  %v5392_v62 = vadd.f32 %v5346_v58, %v5345_v48 }
 0xa53   : > { %5393 = vadd.xlane.f32.xlu1 %v5392_v62 }
 0xa9f   : > { %v5349_v61 = vpop.xlane.xlu0 %5348 }
 0xaa0   : > { %v5395_v9 = vmul.f32 0.00390625, %v5349_v61 }
 0xaa1   : > { %v5352_v5 = vpop.xlane.xlu1 %5351 }
 0xaa2   : > { %v5411_v8 = vadd.f32 1e-05, %v5395_v9  ;;  %v5396_v1 = vmul.f32 0.00390625, %v5352_v5 }
 0xaa4   : > { %6990 = vrsqrt.f32 %v5411_v8  ;;  %v5412_v35 = vadd.f32 1e-05, %v5396_v1 }
 0xaa6   : > { %6992 = vrsqrt.f32 %v5412_v35 }
 0xaab   : > { %v5355_v47 = vpop.xlane.xlu0 %5354 }
 0xaac   : > { %v5397_v32 = vmul.f32 0.00390625, %v5355_v47 }
 0xaad   : > { %v5358_v6 = vpop.xlane.xlu1 %5357 }
 0xaae   : > { %v6991_v55 = vpop.eup %6990  ;;  %v5413_v10 = vadd.f32 1e-05, %v5397_v32  ;;  %v5398_v13 = vmul.f32 0.00390625, %v5358_v6 }
 0xaaf   : > { %v5443_v40 = vmul.f32 %v6991_v55, %v10418_v18  ;;  %v5444_v3 = vmul.f32 %v6991_v55, %v10421_v2 }
 0xab0   : > { %v6993_v42 = vpop.eup %6992  ;;  %6994 = vrsqrt.f32 %v5413_v10  ;;  %v5414_v50 = vadd.f32 1e-05, %v5398_v13 }
 0xab1   : > { %v5486_v44 = vmul.f32 %v10585_v26, %v5443_v40  ;;  %v5487_v56 = vmul.f32 %v10588_v33, %v5444_v3  ;;  %v5445_v4 = vmul.f32 %v6993_v42, %v10428_v28  ;;  %v5446_v7 = vmul.f32 %v6993_v42, %v10431_v63 }
 0xab2   : > { %6996 = vrsqrt.f32 %v5414_v50 }
 0xab3   : > { %v5529_v39 = vadd.f32 %v10591_v54, %v5486_v44  ;;  %v5530_v51 = vadd.f32 %v10594_v41, %v5487_v56  ;;  %v5488_v18 = vmul.f32 %v10585_v26, %v5445_v4  ;;  %v5489_v2 = vmul.f32 %v10588_v33, %v5446_v7  ;;  %v5361_v48 = vpop.xlane.xlu0 %5360 }
 0xab4   : > { %v5399_v58 = vmul.f32 0.00390625, %v5361_v48 }
 0xab5   : > { %5561 = vst [vmem:[%s10608_s26] sm:$0xff] %v5529_v39  ;;  %5562 = vst [vmem:[%s10608_s26 + $0x8] sm:$0xff] %v5530_v51  ;;  %v5531_v28 = vadd.f32 %v10591_v54, %v5488_v18  ;;  %v5532_v63 = vadd.f32 %v10594_v41, %v5489_v2  ;;  %v5364_v57 = vpop.xlane.xlu1 %5363 }
 0xab6   : > { %v5415_v62 = vadd.f32 1e-05, %v5399_v58  ;;  %v5400_v61 = vmul.f32 0.00390625, %v5364_v57 }
 0xab7   : > { %5563 = vst [vmem:[%s10608_s26 + $0x10] sm:$0xff] %v5531_v28  ;;  %5564 = vst [vmem:[%s10608_s26 + $0x18] sm:$0xff] %v5532_v63 }
 0xab8   : > { %6998 = vrsqrt.f32 %v5415_v62  ;;  %v5416_v9 = vadd.f32 1e-05, %v5400_v61 }
 0xaba   : > { %7000 = vrsqrt.f32 %v5416_v9  ;;  %v6995_v5 = vpop.eup %6994 }
 0xabb   : > { %v5447_v8 = vmul.f32 %v6995_v5, %v10438_v60  ;;  %v5448_v1 = vmul.f32 %v6995_v5, %v10441_v43 }
 0xabc   : > { %v6997_v35 = vpop.eup %6996 }
 0xabd   : > { %v5490_v31 = vmul.f32 %v10585_v26, %v5447_v8  ;;  %v5491_v11 = vmul.f32 %v10588_v33, %v5448_v1  ;;  %v5449_v47 = vmul.f32 %v6997_v35, %v10448_v36  ;;  %v5450_v32 = vmul.f32 %v6997_v35, %v10451_v52 }
 0xabe   : > { %v5367_v55 = vpop.xlane.xlu0 %5366 }
 0xabf   : > { %v5401_v6 = vmul.f32 0.00390625, %v5367_v55  ;;  %v5533_v40 = vadd.f32 %v10591_v54, %v5490_v31  ;;  %v5534_v3 = vadd.f32 %v10594_v41, %v5491_v11  ;;  %v5492_v60 = vmul.f32 %v10585_v26, %v5449_v47 }
 0xac0   : > { %v5493_v43 = vmul.f32 %v10588_v33, %v5450_v32  ;;  %v5370_v10 = vpop.xlane.xlu1 %5369 }
 0xac1   : > { %v5417_v13 = vadd.f32 1e-05, %v5401_v6  ;;  %v5402_v42 = vmul.f32 0.00390625, %v5370_v10  ;;  %5565 = vst [vmem:[%s10608_s26 + $0x20] sm:$0xff] %v5533_v40  ;;  %5566 = vst [vmem:[%s10608_s26 + $0x28] sm:$0xff] %v5534_v3  ;;  %v5535_v36 = vadd.f32 %v10591_v54, %v5492_v60 }
 0xac2   : > { %v6999_v44 = vpop.eup %6998  ;;  %v5536_v52 = vadd.f32 %v10594_v41, %v5493_v43 }
 0xac3   : > { %v5451_v56 = vmul.f32 %v6999_v44, %v10458_v24  ;;  %v5452_v4 = vmul.f32 %v6999_v44, %v10461_v25  ;;  %7002 = vrsqrt.f32 %v5417_v13  ;;  %v5418_v7 = vadd.f32 1e-05, %v5402_v42  ;;  %5567 = vst [vmem:[%s10608_s26 + $0x30] sm:$0xff] %v5535_v36 }
 0xac4   : > { %v7001_v50 = vpop.eup %7000  ;;  %5568 = vst [vmem:[%s10608_s26 + $0x38] sm:$0xff] %v5536_v52 }
 0xac5   : > { %v5494_v39 = vmul.f32 %v10585_v26, %v5451_v56  ;;  %v5495_v51 = vmul.f32 %v10588_v33, %v5452_v4  ;;  %v5453_v18 = vmul.f32 %v7001_v50, %v10468_v12  ;;  %v5454_v2 = vmul.f32 %v7001_v50, %v10471_v16 }
 0xac6   : > { %7004 = vrsqrt.f32 %v5418_v7  ;;  %v5373_v24 = vpop.xlane.xlu0 %5372 }
 0xac7   : > { %v5537_v25 = vadd.f32 %v10591_v54, %v5494_v39  ;;  %v5538_v48 = vadd.f32 %v10594_v41, %v5495_v51  ;;  %v5496_v28 = vmul.f32 %v10585_v26, %v5453_v18  ;;  %v5497_v63 = vmul.f32 %v10588_v33, %v5454_v2 }
 0xac8   : > { %v5403_v58 = vmul.f32 0.00390625, %v5373_v24  ;;  %v5376_v57 = vpop.xlane.xlu1 %5375 }
 0xac9   : > { %5569 = vst [vmem:[%s10608_s26 + $0x40] sm:$0xff] %v5537_v25  ;;  %5570 = vst [vmem:[%s10608_s26 + $0x48] sm:$0xff] %v5538_v48  ;;  %v5539_v12 = vadd.f32 %v10591_v54, %v5496_v28  ;;  %v5540_v62 = vadd.f32 %v10594_v41, %v5497_v63  ;;  %v5404_v16 = vmul.f32 0.00390625, %v5376_v57 }
 0xaca   : > { %v5419_v61 = vadd.f32 1e-05, %v5403_v58 }
 0xacb   : > { %5571 = vst [vmem:[%s10608_s26 + $0x50] sm:$0xff] %v5539_v12  ;;  %5572 = vst [vmem:[%s10608_s26 + $0x58] sm:$0xff] %v5540_v62  ;;  %v5420_v9 = vadd.f32 1e-05, %v5404_v16 }
 0xacc   : > { %7006 = vrsqrt.f32 %v5419_v61 }
 0xacd   : > { %v7003_v5 = vpop.eup %7002  ;;  %7008 = vrsqrt.f32 %v5420_v9 }
 0xace   : > { %v5455_v8 = vmul.f32 %v7003_v5, %v10478_v37  ;;  %v5456_v1 = vmul.f32 %v7003_v5, %v10481_v15  ;;  %v5379_v35 = vpop.xlane.xlu0 %5378 }
 0xacf   : > { %v5405_v31 = vmul.f32 0.00390625, %v5379_v35 }
 0xad0   : > { %v7005_v11 = vpop.eup %7004  ;;  %v5498_v47 = vmul.f32 %v10585_v26, %v5455_v8  ;;  %v5499_v32 = vmul.f32 %v10588_v33, %v5456_v1  ;;  %v5382_v55 = vpop.xlane.xlu1 %5381 }
 0xad1   : > { %v5457_v6 = vmul.f32 %v7005_v11, %v10488_v21  ;;  %v5458_v40 = vmul.f32 %v7005_v11, %v10491_v17  ;;  %v5421_v3 = vadd.f32 1e-05, %v5405_v31  ;;  %v5406_v60 = vmul.f32 0.00390625, %v5382_v55 }
 0xad2   : > { %v5541_v37 = vadd.f32 %v10591_v54, %v5498_v47  ;;  %v5542_v15 = vadd.f32 %v10594_v41, %v5499_v32 }
 0xad3   : > { %v5500_v43 = vmul.f32 %v10585_v26, %v5457_v6  ;;  %v5501_v10 = vmul.f32 %v10588_v33, %v5458_v40  ;;  %7010 = vrsqrt.f32 %v5421_v3  ;;  %v5422_v13 = vadd.f32 1e-05, %v5406_v60 }
 0xad4   : > { %5573 = vst [vmem:[%s10608_s26 + $0x60] sm:$0xff] %v5541_v37  ;;  %5574 = vst [vmem:[%s10608_s26 + $0x68] sm:$0xff] %v5542_v15 }
 0xad5   : > { %v5543_v21 = vadd.f32 %v10591_v54, %v5500_v43  ;;  %v5544_v17 = vadd.f32 %v10594_v41, %v5501_v10  ;;  %7012 = vrsqrt.f32 %v5422_v13 }
 0xad6   : > { %v7007_v42 = vpop.eup %7006  ;;  %v5385_v44 = vpop.xlane.xlu0 %5384 }
 0xad7   : > { %v7009_v36 = vpop.eup %7008  ;;  %5575 = vst [vmem:[%s10608_s26 + $0x70] sm:$0xff] %v5543_v21  ;;  %5576 = vst [vmem:[%s10608_s26 + $0x78] sm:$0xff] %v5544_v17  ;;  %v5459_v52 = vmul.f32 %v7007_v42, %v10498_v20  ;;  %v5460_v56 = vmul.f32 %v7007_v42, %v10501_v22  ;;  %v5407_v4 = vmul.f32 0.00390625, %v5385_v44 }
 0xad8   : > { %v5461_v7 = vmul.f32 %v7009_v36, %v10508_v14  ;;  %v5462_v50 = vmul.f32 %v7009_v36, %v10511_v34  ;;  %v5388_v39 = vpop.xlane.xlu1 %5387 }
 0xad9   : > { %v5502_v51 = vmul.f32 %v10585_v26, %v5459_v52  ;;  %v5503_v18 = vmul.f32 %v10588_v33, %v5460_v56  ;;  %v5423_v2 = vadd.f32 1e-05, %v5407_v4  ;;  %v5408_v24 = vmul.f32 0.00390625, %v5388_v39 }
 0xada   : > { %v5504_v20 = vmul.f32 %v10585_v26, %v5461_v7  ;;  %v5505_v22 = vmul.f32 %v10588_v33, %v5462_v50 }
 0xadb   : > { %v5545_v25 = vadd.f32 %v10591_v54, %v5502_v51  ;;  %v5546_v14 = vadd.f32 %v10594_v41, %v5503_v18  ;;  %7014 = vrsqrt.f32 %v5423_v2  ;;  %v5424_v34 = vadd.f32 1e-05, %v5408_v24 }
 0xadc   : > { %v5547_v48 = vadd.f32 %v10591_v54, %v5504_v20  ;;  %v5548_v28 = vadd.f32 %v10594_v41, %v5505_v22 }
 0xadd   : > { %v7011_v63 = vpop.eup %7010  ;;  %5577 = vst [vmem:[%s10608_s26 + $0x80] sm:$0xff] %v5545_v25  ;;  %5578 = vst [vmem:[%s10608_s26 + $0x88] sm:$0xff] %v5546_v14  ;;  %7016 = vrsqrt.f32 %v5424_v34 }
 0xade   : > { %5579 = vst [vmem:[%s10608_s26 + $0x90] sm:$0xff] %v5547_v48  ;;  %5580 = vst [vmem:[%s10608_s26 + $0x98] sm:$0xff] %v5548_v28  ;;  %v5463_v58 = vmul.f32 %v7011_v63, %v10518_v27  ;;  %v5464_v57 = vmul.f32 %v7011_v63, %v10521_v59  ;;  %v5391_v12 = vpop.xlane.xlu0 %5390 }
 0xadf   : > { %v7013_v62 = vpop.eup %7012  ;;  %v5409_v16 = vmul.f32 0.00390625, %v5391_v12 }
 0xae0   : > { %v5506_v61 = vmul.f32 %v10585_v26, %v5463_v58  ;;  %v5507_v9 = vmul.f32 %v10588_v33, %v5464_v57  ;;  %v5465_v5 = vmul.f32 %v7013_v62, %v10528_v38  ;;  %v5466_v8 = vmul.f32 %v7013_v62, %v10531_v0  ;;  %v5394_v1 = vpop.xlane.xlu1 %5393 }
 0xae1   : > { %v5425_v35 = vadd.f32 1e-05, %v5409_v16  ;;  %v5410_v27 = vmul.f32 0.00390625, %v5394_v1 }
 0xae2   : > { %v5549_v59 = vadd.f32 %v10591_v54, %v5506_v61  ;;  %v5550_v31 = vadd.f32 %v10594_v41, %v5507_v9  ;;  %v5508_v11 = vmul.f32 %v10585_v26, %v5465_v5  ;;  %v5509_v47 = vmul.f32 %v10588_v33, %v5466_v8 }
 0xae3   : > { %7018 = vrsqrt.f32 %v5425_v35  ;;  %v5426_v32 = vadd.f32 1e-05, %v5410_v27 }
 0xae4   : > { %5581 = vst [vmem:[%s10608_s26 + $0xa0] sm:$0xff] %v5549_v59  ;;  %5582 = vst [vmem:[%s10608_s26 + $0xa8] sm:$0xff] %v5550_v31  ;;  %v5551_v38 = vadd.f32 %v10591_v54, %v5508_v11  ;;  %v5552_v0 = vadd.f32 %v10594_v41, %v5509_v47 }
 0xae5   : > { %v7015_v55 = vpop.eup %7014  ;;  %7020 = vrsqrt.f32 %v5426_v32 }
 0xae6   : > { %5583 = vst [vmem:[%s10608_s26 + $0xb0] sm:$0xff] %v5551_v38  ;;  %5584 = vst [vmem:[%s10608_s26 + $0xb8] sm:$0xff] %v5552_v0  ;;  %v5467_v6 = vmul.f32 %v7015_v55, %v10538_v53  ;;  %v5468_v40 = vmul.f32 %v7015_v55, %v10541_v49 }
 0xae7   : > { %v7017_v3 = vpop.eup %7016 }
 0xae8   : > { %v5510_v60 = vmul.f32 %v10585_v26, %v5467_v6  ;;  %v5511_v37 = vmul.f32 %v10588_v33, %v5468_v40  ;;  %v5469_v15 = vmul.f32 %v7017_v3, %v10548_v30  ;;  %v5470_v43 = vmul.f32 %v7017_v3, %v10551_v29 }
 0xaea   : > { %v5553_v10 = vadd.f32 %v10591_v54, %v5510_v60  ;;  %v5554_v13 = vadd.f32 %v10594_v41, %v5511_v37  ;;  %v5512_v21 = vmul.f32 %v10585_v26, %v5469_v15  ;;  %v5513_v53 = vmul.f32 %v10588_v33, %v5470_v43 }
 0xaec   : > { %5585 = vst [vmem:[%s10608_s26 + $0xc0] sm:$0xff] %v5553_v10  ;;  %5586 = vst [vmem:[%s10608_s26 + $0xc8] sm:$0xff] %v5554_v13  ;;  %v5555_v49 = vadd.f32 %v10591_v54, %v5512_v21  ;;  %v5556_v17 = vadd.f32 %v10594_v41, %v5513_v53 }
 0xaed   : > { %v7019_v42 = vpop.eup %7018 }
 0xaee   : > { %5587 = vst [vmem:[%s10608_s26 + $0xd0] sm:$0xff] %v5555_v49  ;;  %5588 = vst [vmem:[%s10608_s26 + $0xd8] sm:$0xff] %v5556_v17  ;;  %v5471_v30 = vmul.f32 %v7019_v42, %v10558_v46  ;;  %v5472_v29 = vmul.f32 %v7019_v42, %v10561_v23 }
 0xaef   : > { %v7021_v44 = vpop.eup %7020 }
 0xaf0   : > { %v5514_v36 = vmul.f32 %v10585_v26, %v5471_v30  ;;  %v5515_v52 = vmul.f32 %v10588_v33, %v5472_v29  ;;  %v5473_v56 = vmul.f32 %v7021_v44, %v10568_v45  ;;  %v5474_v4 = vmul.f32 %v7021_v44, %v10571_v19 }
 0xaf2   : > { %v5557_v46 = vadd.f32 %v10591_v54, %v5514_v36  ;;  %v5558_v7 = vadd.f32 %v10594_v41, %v5515_v52  ;;  %v5516_v23 = vmul.f32 %v10585_v26, %v5473_v56  ;;  %v5517_v50 = vmul.f32 %v10588_v33, %v5474_v4 }
 0xaf4   : > { %5589 = vst [vmem:[%s10608_s26 + $0xe0] sm:$0xff] %v5557_v46  ;;  %5590 = vst [vmem:[%s10608_s26 + $0xe8] sm:$0xff] %v5558_v7  ;;  %v5559_v45 = vadd.f32 %v10591_v54, %v5516_v23  ;;  %v5560_v19 = vadd.f32 %v10594_v41, %v5517_v50 }
 0xaf6   : > { %5591 = vst [vmem:[%s10608_s26 + $0xf0] sm:$0xff] %v5559_v45  ;;  %5592 = vst [vmem:[%s10608_s26 + $0xf8] sm:$0xff] %v5560_v19 }
 0xaf7   : > { %7035 = shalt.err (!%p7032_p3)
}
 0xaf8   : > { %s7036_s30 = scalar_lea.hbm %s10727_s27, 4096  ;;  %s7040_s20 = scalar_lea.hbm %s10795_s15, 8192 }
 0xaf9   : > { %p7037_p4 = scmp.ne.s32.totalorder %s10727_s27, %s7036_s30  ;;  %p7041_p9 = scmp.lt.u32.totalorder %s10727_s27, %s10795_s15 }
 0xafa   : > { %p7042_p10 = scmp.lt.u32.totalorder %s7040_s20, %s7036_s30  ;;  %p7044_p12 = scmp.lt.u32.totalorder %s7036_s30, %s10727_s27 }
 0xafb   : > { %p7038_p7 = pnand %p7037_p4, %p7208_p5 }
 0xafc   : > { %p7043_p11 = por %p7042_p10, %p7041_p9 }
 0xafd   : > { %p7039_p8 = pneg %p7038_p7 }
 0xafe   : > { %p7045_p13 = por %p7044_p12, %p7043_p11 }
 0xb00   : > { %p7046_p0 = pnand %p7045_p13, %p7039_p8 }
 0xb02   : > { %7049 = shalt.err (!%p7046_p0)
}
 0xb03   : > { %s7088_s16 = smov 256   ;;  %s7089_s23 = smov 16  }
 0xb04   : > { %6261 = dma.vmem_to_hbm [thread:$0]  (%p7208_p5), %s10729_s29, 4096, %s10727_s27, %s10739_s22, %s7088_s16, %s7088_s16, %s7089_s23  }
 0xb05 PF: > { %s11014_s25 = sld [smem:[#allocation5_spill]]  ;;  %p6267_p1 = scmp.ge.s32.totalorder %s7084_s21, 2 }
 0xb07   : > { %p6264_p2 = pnand %p6267_p1, %p7212_p6 }
 0xb0b   : > { %s5622_s18 = sand.u32 1, %s11014_s25  }
 0xb0c   : > { %s5623_s30 = scalar_lea.sflag [#allocation3], %s5622_s18 }
 0xb0d   : > { %7067 = dma.done.wait (!%p6264_p2), %s5623_s30, 4096  }
 0xb0e   : > { %7069 = vsyncadd (!%p6264_p2), %s5623_s30, 4294963200  ;;  %s11016_s21 = sld [smem:[#allocation7_spill]]  ;;  %s11017_s20 = sld [smem:[#allocation6_spill]] }
 0xb0f   : > { %s11018_s24 = sld [smem:[#allocation8_spill]]  ;;  %s11019_s18 = smov %s7076_s19 }
 0xb14   : > { %p25_p3 = scmp.ge.s32.totalorder %s11016_s21, 4   ;;  %s11020_s19 = smov %s11017_s20 }
 0xb15   : > { %s11021_s20 = smov %s11018_s24 }
 0xb16   :  { %27 = sbr.rel (!%p25_p3) target bundleno = 3 (0x3), region = 116 }
 0xb1d   :  { %5628 = vsyncpa [#allocation3], 1 }
 0xb1e   :  { %5630 = vsyncpa [#allocation3 + $0x1], 1 }

</bundles_post_ra>
